<compile_context>
chip_gen: v7x
topology: tpu7x:2x2x1
jax: 0.10.0
libtpu: 0.0.40
codegen_flags: <defaults>
</compile_context>

<pallas_src>
import jax
import jax.numpy as jnp
from jax.experimental import pallas as pl
from jax.experimental.pallas import tpu as pltpu


def _round_up(x, m):
    return (x + m - 1) // m * m


# ----------------------------- Pallas kernels -----------------------------

def _conv1_kernel(p_ref, w_ref, b_ref, o_ref):
    # p_ref: (1, 676, 9) bf16 im2col patches of one image
    # w_ref: (9, 32) bf16, b_ref: (1, 32) f32, o_ref: (1, 676, 32) bf16
    acc = jnp.dot(p_ref[0], w_ref[...], preferred_element_type=jnp.float32)
    acc = jnp.maximum(acc + b_ref[...], 0.0)          # conv1 bias + ReLU
    o_ref[0] = acc.astype(o_ref.dtype)


def _conv2_pool_kernel(p_ref, w_ref, b_ref, o_ref):
    # p_ref: (1, 576, 288) bf16 corner-ordered patches of one image:
    #   row = corner*144 + (ph*12 + pw), corner = 2*hi + wi, conv output pixel
    #   (2*ph + hi, 2*pw + wi).  F.max_pool2d(x, 2) is then an elementwise max
    #   over four 144-row, sublane-aligned blocks -> fused here in VMEM.
    # w_ref: (288, 64) bf16, b_ref: (1, 64) f32, o_ref: (1, 144, 64) bf16
    y = jnp.dot(p_ref[0], w_ref[...], preferred_element_type=jnp.float32)
    y = y + b_ref[...]        # NOTE: reference Net has no ReLU after conv2
    pooled = jnp.maximum(jnp.maximum(y[0:144], y[144:288]),
                         jnp.maximum(y[288:432], y[432:576]))
    o_ref[0] = pooled.astype(o_ref.dtype)


def _fc_kernel(x_ref, w1_ref, b1_ref, w2_ref, b2_ref, o_ref):
    # fc1 + ReLU + fc2 fused: the (TB, 128) hidden activation never hits HBM.
    h = jnp.dot(x_ref[...], w1_ref[...], preferred_element_type=jnp.float32)
    h = jnp.maximum(h + b1_ref[...], 0.0)
    o = jnp.dot(h.astype(w2_ref.dtype), w2_ref[...],
                preferred_element_type=jnp.float32)
    o_ref[...] = o + b2_ref[...]


# ----------------------------- pallas_call wrappers -----------------------------

def conv1_call(p1, w1, b1):
    n = p1.shape[0]
    return pl.pallas_call(
        _conv1_kernel,
        out_shape=jax.ShapeDtypeStruct((n, 676, 32), jnp.bfloat16),
        grid_spec=pl.GridSpec(
            grid=(n,),
            in_specs=[
                pl.BlockSpec((1, 676, 9), lambda i: (i, 0, 0)),
                pl.BlockSpec((9, 32), lambda i: (0, 0)),
                pl.BlockSpec((1, 32), lambda i: (0, 0)),
            ],
            out_specs=pl.BlockSpec((1, 676, 32), lambda i: (i, 0, 0)),
        ),
        compiler_params=pltpu.CompilerParams(
            dimension_semantics=("parallel",)),
    )(p1, w1, b1)


def conv2_pool_call(p2, w2, b2):
    n = p2.shape[0]
    flops = 2 * n * 576 * 288 * 64
    bytes_accessed = p2.size * 2 + w2.size * 2 + n * 144 * 64 * 2
    return pl.pallas_call(
        _conv2_pool_kernel,
        out_shape=jax.ShapeDtypeStruct((n, 144, 64), jnp.bfloat16),
        grid_spec=pl.GridSpec(
            grid=(n,),
            in_specs=[
                pl.BlockSpec((1, 576, 288), lambda i: (i, 0, 0)),
                pl.BlockSpec((288, 64), lambda i: (0, 0)),
                pl.BlockSpec((1, 64), lambda i: (0, 0)),
            ],
            out_specs=pl.BlockSpec((1, 144, 64), lambda i: (i, 0, 0)),
        ),
        compiler_params=pltpu.CompilerParams(
            dimension_semantics=("parallel",)),
        cost_estimate=pl.CostEstimate(flops=flops, transcendentals=0,
                                      bytes_accessed=bytes_accessed),
    )(p2, w2, b2)


def fc_call(x, w1, b1, w2, b2, row_tile):
    m = x.shape[0]
    assert m % row_tile == 0
    flops = 2 * m * (9216 * 128 + 128 * 128)
    bytes_accessed = x.size * 2 + w1.size * 2 + w2.size * 2 + m * 128 * 4
    return pl.pallas_call(
        _fc_kernel,
        out_shape=jax.ShapeDtypeStruct((m, 128), jnp.float32),
        grid_spec=pl.GridSpec(
            grid=(m // row_tile,),
            in_specs=[
                pl.BlockSpec((row_tile, 9216), lambda i: (i, 0)),
                pl.BlockSpec((9216, 128), lambda i: (0, 0)),
                pl.BlockSpec((1, 128), lambda i: (0, 0)),
                pl.BlockSpec((128, 128), lambda i: (0, 0)),
                pl.BlockSpec((1, 128), lambda i: (0, 0)),
            ],
            out_specs=pl.BlockSpec((row_tile, 128), lambda i: (i, 0)),
        ),
        compiler_params=pltpu.CompilerParams(
            dimension_semantics=("parallel",)),
        cost_estimate=pl.CostEstimate(flops=flops, transcendentals=0,
                                      bytes_accessed=bytes_accessed),
    )(x, w1, b1, w2, b2)


# ----------------------------- Glue (plain JAX) -----------------------------

def im2col(x, kh, kw):
    """x: (N, H, W, C) -> (N, Ho, Wo, kh*kw*C), stride 1, VALID padding.
    Patch element order is (i, j, c), matching the repacked conv weights."""
    n, h, w, c = x.shape
    ho, wo = h - kh + 1, w - kw + 1
    cols = [x[:, i:i + ho, j:j + wo, :] for i in range(kh) for j in range(kw)]
    patches = jnp.stack(cols, axis=-2)              # (N, Ho, Wo, kh*kw, C)
    return patches.reshape(n, ho, wo, kh * kw * c)


def init_params(key):
    """Deterministic PyTorch-default-style (uniform +/- 1/sqrt(fan_in)) init."""
    ks = jax.random.split(key, 8)

    def u(k, shape, fan_in):
        bound = 1.0 / jnp.sqrt(jnp.float32(fan_in))
        return jax.random.uniform(k, shape, jnp.float32, -bound, bound)

    return dict(
        conv1_w=u(ks[0], (32, 1, 3, 3), 1 * 3 * 3),     # (out_c, in_c, kh, kw)
        conv1_b=u(ks[1], (32,), 1 * 3 * 3),
        conv2_w=u(ks[2], (64, 32, 3, 3), 32 * 3 * 3),
        conv2_b=u(ks[3], (64,), 32 * 3 * 3),
        fc1_w=u(ks[4], (128, 9216), 9216),              # torch Linear: (out, in)
        fc1_b=u(ks[5], (128,), 9216),
        fc2_w=u(ks[6], (10, 128), 128),
        fc2_b=u(ks[7], (10,), 128),
    )


def prepare_params(params, dtype=jnp.bfloat16):
    """One-time weight repacking (done OUTSIDE the jitted forward):
    conv reshapes, fc1 transpose + flatten-order permutation, fc2 lane pad."""
    w1 = jnp.transpose(params['conv1_w'], (2, 3, 1, 0)).reshape(9, 32).astype(dtype)
    b1 = params['conv1_b'].reshape(1, 32).astype(jnp.float32)
    w2 = jnp.transpose(params['conv2_w'], (2, 3, 1, 0)).reshape(288, 64).astype(dtype)
    b2 = params['conv2_b'].reshape(1, 64).astype(jnp.float32)
    # torch.flatten(NCHW) feeds fc1 with index c*144 + p; our pooled tensor is
    # flattened as p*64 + c, so permute fc1 weight rows once here instead of
    # transposing the activation every forward.
    w_fc1 = params['fc1_w'].T.reshape(64, 144, 128)          # (c, p, out)
    w_fc1 = jnp.transpose(w_fc1, (1, 0, 2)).reshape(9216, 128).astype(dtype)
    b_fc1 = params['fc1_b'].reshape(1, 128).astype(jnp.float32)
    # fc2: pad output dim 10 -> 128 for lane-dense stores (sliced in wrapper).
    w_fc2 = jnp.zeros((128, 128), jnp.float32).at[:, :10].set(params['fc2_w'].T)
    w_fc2 = w_fc2.astype(dtype)
    b_fc2 = jnp.zeros((1, 128), jnp.float32).at[0, :10].set(params['fc2_b'])
    return dict(w1=w1, b1=b1, w2=w2, b2=b2,
                w_fc1=w_fc1, b_fc1=b_fc1, w_fc2=w_fc2, b_fc2=b_fc2)


def net_forward(prep, x_nchw):
    n = x_nchw.shape[0]
    x = jnp.transpose(x_nchw, (0, 2, 3, 1)).astype(jnp.bfloat16)   # (N,28,28,1)

    # conv1 (1->32, 3x3, stride 1) + ReLU
    p1 = im2col(x, 3, 3).reshape(n, 676, 9)
    y1 = conv1_call(p1, prep['w1'], prep['b1'])                    # (N,676,32) bf16
    y1 = y1.reshape(n, 26, 26, 32)

    # conv2 (32->64, 3x3) + fused 2x2 max-pool.  Corner-ordered im2col: rows
    # grouped by pool-window corner so the pool is a max over aligned blocks.
    # TODO(synk): conv2 patches are still materialized in HBM by XLA (9x
    # expansion of y1); an in-kernel halo/shifted-matmul formulation would
    # remove that traffic for very large batches.
    pt = im2col(y1, 3, 3)                                          # (N,24,24,288)
    p2 = jnp.transpose(pt.reshape(n, 12, 2, 12, 2, 288),
                       (0, 2, 4, 1, 3, 5)).reshape(n, 576, 288)
    pooled = conv2_pool_call(p2, prep['w2'], prep['b2'])           # (N,144,64) bf16

    # dropout1 / dropout2: identity in eval mode
    # TODO(synk): training-mode Dropout2d/Dropout masking not implemented.

    # flatten -> (N, 9216); fc1 weights were pre-permuted to this order so it
    # matches torch.flatten(x, 1) on NCHW exactly.
    flat = pooled.reshape(n, 9216)

    # fc1 + ReLU + fc2 (one fused kernel; batch rows padded to the row tile)
    row_tile = min(128, _round_up(n, 8))
    n_pad = _round_up(n, row_tile)
    flat = jnp.pad(flat, ((0, n_pad - n), (0, 0)))
    out = fc_call(flat, prep['w_fc1'], prep['b_fc1'],
                  prep['w_fc2'], prep['b_fc2'], row_tile)
    return out[:n, :10]                                            # (N,10) f32 logits


if __name__ == "__main__":
    key = jax.random.PRNGKey(0)
    pkey, xkey = jax.random.split(key)
    params = init_params(pkey)
    prep = prepare_params(params)        # one-time repack, outside jit
    # fc1 expects 9216 = 64*12*12 features -> input must be (N, 1, 28, 28)
    x = jax.random.normal(xkey, (2, 1, 28, 28), jnp.float32)

    fwd = jax.jit(net_forward)
    out = fwd(prep, x)
    out = jax.block_until_ready(out)
    assert out.shape == (2, 10) and out.dtype == jnp.float32
    print("KERNEL_OK")
</pallas_src>

<mosaic_0001>
module attributes {stable_mosaic.version = 11 : i64} {
  func.func @_conv1_kernel(%arg0: i32, %arg1: memref<1x676x9xbf16, #tpu.memory_space<vmem>>, %arg2: memref<9x32xbf16, #tpu.memory_space<vmem>>, %arg3: memref<1x32xf32, #tpu.memory_space<vmem>>, %arg4: memref<1x676x32xbf16, #tpu.memory_space<vmem>>) attributes {dimension_semantics = [#tpu.dimension_semantics<parallel>], iteration_bounds = array<i64: 2>, scalar_prefetch = 0 : i64, scratch_operands = 0 : i64, tpu.core_type = #tpu.core_type<tc>, window_params = [{transform_indices = @transform_0, window_bounds = array<i64: 1, 676, 9>}, {pipeline_mode = #tpu.pipeline_mode<synchronous>, transform_indices = @transform_1, window_bounds = array<i64: 9, 32>}, {pipeline_mode = #tpu.pipeline_mode<synchronous>, transform_indices = @transform_2, window_bounds = array<i64: 1, 32>}, {transform_indices = @transform_3, window_bounds = array<i64: 1, 676, 32>}]} {
    %c0 = arith.constant 0 : index
    %c0_0 = arith.constant 0 : index
    %c0_1 = arith.constant 0 : index
    %0 = vector.load %arg1[%c0, %c0_0, %c0_1] : memref<1x676x9xbf16, #tpu.memory_space<vmem>>, vector<1x676x9xbf16>
    %1 = vector.shape_cast %0 : vector<1x676x9xbf16> to vector<676x9xbf16>
    %c0_2 = arith.constant 0 : index
    %c0_3 = arith.constant 0 : index
    %2 = vector.load %arg2[%c0_2, %c0_3] : memref<9x32xbf16, #tpu.memory_space<vmem>>, vector<9x32xbf16>
    %cst = arith.constant dense<0.000000e+00> : vector<676x32xf32>
    %3 = tpu.matmul %1, %2, %cst {dimension_numbers = #tpu.dot_dimension_numbers<[1], [0], [0], [1], [0, 0, 1, 1], [], []>} : vector<676x9xbf16>, vector<9x32xbf16>, vector<676x32xf32> -> vector<676x32xf32>
    %c0_4 = arith.constant 0 : index
    %c0_5 = arith.constant 0 : index
    %4 = vector.load %arg3[%c0_4, %c0_5] : memref<1x32xf32, #tpu.memory_space<vmem>>, vector<1x32xf32>
    %5 = vector.broadcast %4 : vector<1x32xf32> to vector<676x32xf32>
    %6 = arith.addf %3, %5 : vector<676x32xf32>
    %cst_6 = arith.constant 0.000000e+00 : f32
    %7 = vector.broadcast %cst_6 : f32 to vector<676x32xf32>
    %8 = arith.maximumf %6, %7 : vector<676x32xf32>
    %9 = arith.truncf %8 : vector<676x32xf32> to vector<676x32xbf16>
    %c0_7 = arith.constant 0 : index
    %c0_8 = arith.constant 0 : index
    %c0_9 = arith.constant 0 : index
    %10 = vector.load %arg4[%c0_7, %c0_8, %c0_9] : memref<1x676x32xbf16, #tpu.memory_space<vmem>>, vector<1x676x32xbf16>
    %11 = vector.shape_cast %10 : vector<1x676x32xbf16> to vector<676x32xbf16>
    %12 = vector.shape_cast %9 : vector<676x32xbf16> to vector<1x676x32xbf16>
    tpu.vector_store %arg4[%c0_7, %c0_8, %c0_9], %12 {strides = array<i32>} : memref<1x676x32xbf16, #tpu.memory_space<vmem>>, vector<1x676x32xbf16>,
    return
  }
  func.func @transform_0(%arg0: i32) -> (i32, i32, i32) {
    %c0_i32 = arith.constant 0 : i32
    %c0_i32_0 = arith.constant 0 : i32
    %c0_i32_1 = arith.constant 0 : i32
    return %arg0, %c0_i32, %c0_i32_0 : i32, i32, i32
  }
  func.func @transform_1(%arg0: i32) -> (i32, i32) {
    %c0_i32 = arith.constant 0 : i32
    %c0_i32_0 = arith.constant 0 : i32
    %c0_i32_1 = arith.constant 0 : i32
    return %c0_i32, %c0_i32_0 : i32, i32
  }
  func.func @transform_2(%arg0: i32) -> (i32, i32) {
    %c0_i32 = arith.constant 0 : i32
    %c0_i32_0 = arith.constant 0 : i32
    %c0_i32_1 = arith.constant 0 : i32
    return %c0_i32, %c0_i32_0 : i32, i32
  }
  func.func @transform_3(%arg0: i32) -> (i32, i32, i32) {
    %c0_i32 = arith.constant 0 : i32
    %c0_i32_0 = arith.constant 0 : i32
    %c0_i32_1 = arith.constant 0 : i32
    return %arg0, %c0_i32, %c0_i32_0 : i32, i32, i32
  }
}

module attributes {stable_mosaic.version = 11 : i64} {
  func.func @_conv2_pool_kernel(%arg0: i32, %arg1: memref<1x576x288xbf16, #tpu.memory_space<vmem>>, %arg2: memref<288x64xbf16, #tpu.memory_space<vmem>>, %arg3: memref<1x64xf32, #tpu.memory_space<vmem>>, %arg4: memref<1x144x64xbf16, #tpu.memory_space<vmem>>) attributes {dimension_semantics = [#tpu.dimension_semantics<parallel>], iteration_bounds = array<i64: 2>, scalar_prefetch = 0 : i64, scratch_operands = 0 : i64, tpu.core_type = #tpu.core_type<tc>, window_params = [{transform_indices = @transform_0, window_bounds = array<i64: 1, 576, 288>}, {pipeline_mode = #tpu.pipeline_mode<synchronous>, transform_indices = @transform_1, window_bounds = array<i64: 288, 64>}, {pipeline_mode = #tpu.pipeline_mode<synchronous>, transform_indices = @transform_2, window_bounds = array<i64: 1, 64>}, {transform_indices = @transform_3, window_bounds = array<i64: 1, 144, 64>}]} {
    %c0 = arith.constant 0 : index
    %c0_0 = arith.constant 0 : index
    %c0_1 = arith.constant 0 : index
    %0 = vector.load %arg1[%c0, %c0_0, %c0_1] : memref<1x576x288xbf16, #tpu.memory_space<vmem>>, vector<1x576x288xbf16>
    %1 = vector.shape_cast %0 : vector<1x576x288xbf16> to vector<576x288xbf16>
    %c0_2 = arith.constant 0 : index
    %c0_3 = arith.constant 0 : index
    %2 = vector.load %arg2[%c0_2, %c0_3] : memref<288x64xbf16, #tpu.memory_space<vmem>>, vector<288x64xbf16>
    %cst = arith.constant dense<0.000000e+00> : vector<576x64xf32>
    %3 = tpu.matmul %1, %2, %cst {dimension_numbers = #tpu.dot_dimension_numbers<[1], [0], [0], [1], [0, 0, 1, 1], [], []>} : vector<576x288xbf16>, vector<288x64xbf16>, vector<576x64xf32> -> vector<576x64xf32>
    %c0_4 = arith.constant 0 : index
    %c0_5 = arith.constant 0 : index
    %4 = vector.load %arg3[%c0_4, %c0_5] : memref<1x64xf32, #tpu.memory_space<vmem>>, vector<1x64xf32>
    %5 = vector.broadcast %4 : vector<1x64xf32> to vector<576x64xf32>
    %6 = arith.addf %3, %5 : vector<576x64xf32>
    %7 = vector.extract_strided_slice %6 {offsets = [0, 0], sizes = [144, 64], strides = [1, 1]} : vector<576x64xf32> to vector<144x64xf32>
    %8 = vector.extract_strided_slice %6 {offsets = [144, 0], sizes = [144, 64], strides = [1, 1]} : vector<576x64xf32> to vector<144x64xf32>
    %9 = arith.maximumf %7, %8 : vector<144x64xf32>
    %10 = vector.extract_strided_slice %6 {offsets = [288, 0], sizes = [144, 64], strides = [1, 1]} : vector<576x64xf32> to vector<144x64xf32>
    %11 = vector.extract_strided_slice %6 {offsets = [432, 0], sizes = [144, 64], strides = [1, 1]} : vector<576x64xf32> to vector<144x64xf32>
    %12 = arith.maximumf %10, %11 : vector<144x64xf32>
    %13 = arith.maximumf %9, %12 : vector<144x64xf32>
    %14 = arith.truncf %13 : vector<144x64xf32> to vector<144x64xbf16>
    %c0_6 = arith.constant 0 : index
    %c0_7 = arith.constant 0 : index
    %c0_8 = arith.constant 0 : index
    %15 = vector.load %arg4[%c0_6, %c0_7, %c0_8] : memref<1x144x64xbf16, #tpu.memory_space<vmem>>, vector<1x144x64xbf16>
    %16 = vector.shape_cast %15 : vector<1x144x64xbf16> to vector<144x64xbf16>
    %17 = vector.shape_cast %14 : vector<144x64xbf16> to vector<1x144x64xbf16>
    tpu.vector_store %arg4[%c0_6, %c0_7, %c0_8], %17 {strides = array<i32>} : memref<1x144x64xbf16, #tpu.memory_space<vmem>>, vector<1x144x64xbf16>,
    return
  }
  func.func @transform_0(%arg0: i32) -> (i32, i32, i32) {
    %c0_i32 = arith.constant 0 : i32
    %c0_i32_0 = arith.constant 0 : i32
    %c0_i32_1 = arith.constant 0 : i32
    return %arg0, %c0_i32, %c0_i32_0 : i32, i32, i32
  }
  func.func @transform_1(%arg0: i32) -> (i32, i32) {
    %c0_i32 = arith.constant 0 : i32
    %c0_i32_0 = arith.constant 0 : i32
    %c0_i32_1 = arith.constant 0 : i32
    return %c0_i32, %c0_i32_0 : i32, i32
  }
  func.func @transform_2(%arg0: i32) -> (i32, i32) {
    %c0_i32 = arith.constant 0 : i32
    %c0_i32_0 = arith.constant 0 : i32
    %c0_i32_1 = arith.constant 0 : i32
    return %c0_i32, %c0_i32_0 : i32, i32
  }
  func.func @transform_3(%arg0: i32) -> (i32, i32, i32) {
    %c0_i32 = arith.constant 0 : i32
    %c0_i32_0 = arith.constant 0 : i32
    %c0_i32_1 = arith.constant 0 : i32
    return %arg0, %c0_i32, %c0_i32_0 : i32, i32, i32
  }
}

module attributes {stable_mosaic.version = 11 : i64} {
  func.func @_fc_kernel(%arg0: i32, %arg1: memref<8x9216xbf16, #tpu.memory_space<vmem>>, %arg2: memref<9216x128xbf16, #tpu.memory_space<vmem>>, %arg3: memref<1x128xf32, #tpu.memory_space<vmem>>, %arg4: memref<128x128xbf16, #tpu.memory_space<vmem>>, %arg5: memref<1x128xf32, #tpu.memory_space<vmem>>, %arg6: memref<8x128xf32, #tpu.memory_space<vmem>>) attributes {dimension_semantics = [#tpu.dimension_semantics<parallel>], iteration_bounds = array<i64: 1>, scalar_prefetch = 0 : i64, scratch_operands = 0 : i64, tpu.core_type = #tpu.core_type<tc>, window_params = [{transform_indices = @transform_0, window_bounds = array<i64: 8, 9216>}, {pipeline_mode = #tpu.pipeline_mode<synchronous>, transform_indices = @transform_1, window_bounds = array<i64: 9216, 128>}, {pipeline_mode = #tpu.pipeline_mode<synchronous>, transform_indices = @transform_2, window_bounds = array<i64: 1, 128>}, {pipeline_mode = #tpu.pipeline_mode<synchronous>, transform_indices = @transform_3, window_bounds = array<i64: 128, 128>}, {pipeline_mode = #tpu.pipeline_mode<synchronous>, transform_indices = @transform_4, window_bounds = array<i64: 1, 128>}, {transform_indices = @transform_5, window_bounds = array<i64: 8, 128>}]} {
    %c0 = arith.constant 0 : index
    %c0_0 = arith.constant 0 : index
    %0 = vector.load %arg1[%c0, %c0_0] : memref<8x9216xbf16, #tpu.memory_space<vmem>>, vector<8x9216xbf16>
    %c0_1 = arith.constant 0 : index
    %c0_2 = arith.constant 0 : index
    %1 = vector.load %arg2[%c0_1, %c0_2] : memref<9216x128xbf16, #tpu.memory_space<vmem>>, vector<9216x128xbf16>
    %cst = arith.constant dense<0.000000e+00> : vector<8x128xf32>
    %2 = tpu.matmul %0, %1, %cst {dimension_numbers = #tpu.dot_dimension_numbers<[1], [0], [0], [1], [0, 0, 1, 1], [], []>} : vector<8x9216xbf16>, vector<9216x128xbf16>, vector<8x128xf32> -> vector<8x128xf32>
    %c0_3 = arith.constant 0 : index
    %c0_4 = arith.constant 0 : index
    %3 = vector.load %arg3[%c0_3, %c0_4] : memref<1x128xf32, #tpu.memory_space<vmem>>, vector<1x128xf32>
    %4 = vector.broadcast %3 : vector<1x128xf32> to vector<8x128xf32>
    %5 = arith.addf %2, %4 : vector<8x128xf32>
    %cst_5 = arith.constant 0.000000e+00 : f32
    %6 = vector.broadcast %cst_5 : f32 to vector<8x128xf32>
    %7 = arith.maximumf %5, %6 : vector<8x128xf32>
    %8 = arith.truncf %7 : vector<8x128xf32> to vector<8x128xbf16>
    %c0_6 = arith.constant 0 : index
    %c0_7 = arith.constant 0 : index
    %9 = vector.load %arg4[%c0_6, %c0_7] : memref<128x128xbf16, #tpu.memory_space<vmem>>, vector<128x128xbf16>
    %cst_8 = arith.constant dense<0.000000e+00> : vector<8x128xf32>
    %10 = tpu.matmul %8, %9, %cst_8 {dimension_numbers = #tpu.dot_dimension_numbers<[1], [0], [0], [1], [0, 0, 1, 1], [], []>} : vector<8x128xbf16>, vector<128x128xbf16>, vector<8x128xf32> -> vector<8x128xf32>
    %c0_9 = arith.constant 0 : index
    %c0_10 = arith.constant 0 : index
    %11 = vector.load %arg5[%c0_9, %c0_10] : memref<1x128xf32, #tpu.memory_space<vmem>>, vector<1x128xf32>
    %12 = vector.broadcast %11 : vector<1x128xf32> to vector<8x128xf32>
    %13 = arith.addf %10, %12 : vector<8x128xf32>
    %c0_11 = arith.constant 0 : index
    %c0_12 = arith.constant 0 : index
    %14 = vector.load %arg6[%c0_11, %c0_12] : memref<8x128xf32, #tpu.memory_space<vmem>>, vector<8x128xf32>
    tpu.vector_store %arg6[%c0_11, %c0_12], %13 {strides = array<i32>} : memref<8x128xf32, #tpu.memory_space<vmem>>, vector<8x128xf32>,
    return
  }
  func.func @transform_0(%arg0: i32) -> (i32, i32) {
    %c0_i32 = arith.constant 0 : i32
    %c0_i32_0 = arith.constant 0 : i32
    return %arg0, %c0_i32 : i32, i32
  }
  func.func @transform_1(%arg0: i32) -> (i32, i32) {
    %c0_i32 = arith.constant 0 : i32
    %c0_i32_0 = arith.constant 0 : i32
    %c0_i32_1 = arith.constant 0 : i32
    return %c0_i32, %c0_i32_0 : i32, i32
  }
  func.func @transform_2(%arg0: i32) -> (i32, i32) {
    %c0_i32 = arith.constant 0 : i32
    %c0_i32_0 = arith.constant 0 : i32
    %c0_i32_1 = arith.constant 0 : i32
    return %c0_i32, %c0_i32_0 : i32, i32
  }
  func.func @transform_3(%arg0: i32) -> (i32, i32) {
    %c0_i32 = arith.constant 0 : i32
    %c0_i32_0 = arith.constant 0 : i32
    %c0_i32_1 = arith.constant 0 : i32
    return %c0_i32, %c0_i32_0 : i32, i32
  }
  func.func @transform_4(%arg0: i32) -> (i32, i32) {
    %c0_i32 = arith.constant 0 : i32
    %c0_i32_0 = arith.constant 0 : i32
    %c0_i32_1 = arith.constant 0 : i32
    return %c0_i32, %c0_i32_0 : i32, i32
  }
  func.func @transform_5(%arg0: i32) -> (i32, i32) {
    %c0_i32 = arith.constant 0 : i32
    %c0_i32_0 = arith.constant 0 : i32
    return %arg0, %c0_i32 : i32, i32
  }
}

</mosaic_0001>

<bundles_post_ra>
// kernel: net_forward.3
= control target key start
LH: loop header
LB: loop body
LE: loop exit
PB: predicated region body
PF: predicated region fallthrough
CT: control target
= control target key end

     0   :  { %8 = vsyncpa [#allocation3], 0  ;;  %s2819_s0 = inlined_call_operand.vmem [shape: bf16[2,676,9], index: 0, kind: input, shape index: {}]   ;;  %s2820_s1 = inlined_call_operand.hbm [shape: bf16[9,32], index: 1, kind: input, shape index: {}]   ;;  %s2821_s2 = inlined_call_operand.hbm [shape: f32[1,32], index: 2, kind: input, shape index: {}]   ;;  %s2822_s3 = inlined_call_operand.vmem [shape: bf16[2,676,32], index: 3, kind: output, shape index: {}]  }
   0x1   :  { %9 = vsyncpa [#allocation5], 0  ;;  %s2284_s12 = smov 0  }
   0x2 LB: > { %s2290_s13 = sadd.s32 4294967295, %s2255_s12   ;;  %p1617_p0 = scmp.ge.s32.totalorder %s2255_s12, 1  ;;  %s2255_s12 = sphi %s2284_s12, %s15_s12  }
   0x3   : > { %p114_p1 = scmp.lt.s32.totalorder %s2255_s12, 3  ;;  %s2257_s14 = smov [#allocation2]  }
   0x4   : > { %s126_s15 = sshll.u32 %s2257_s14, 4  ;;  %p2823_p3 = scmp.eq.s32.totalorder %s2290_s13, 0  ;;  %s127_s15 = int_to_ptr.vmem [resolvable:$true] %s126_s15 }
   0x5   : > { %p2294_p2 = pnand %p1617_p0, %p114_p1  ;;  %s2258_s17 = smov [#allocation4]  }
   0x6   : > { %s140_s18 = sshll.u32 %s2258_s17, 4  ;;  %s2185_s22 = scalar_lea.hbm %s2820_s1, 128  ;;  %s2307_s18 = int_to_ptr.vmem [resolvable:$true] %s140_s18 }
   0x7   : > { %s2825_s16 = scalar_select %p2294_p2, 1, 0 }
   0x8   : > { %p2115_p4 = pneg %p2294_p2  ;;  %p2186_p6 = scmp.ne.s32.totalorder %s2820_s1, %s2185_s22 }
   0x9   : > { %p2192_p10 = scmp.lt.u32.totalorder %s2185_s22, %s2820_s1 }
   0xa   : > { %p2303_p5 = pnand %p2823_p3, %p2115_p4 }
   0xc   : > { %p2187_p7 = pneg %p2303_p5 }
   0xe   : > { %p2188_p8 = pnand %p2187_p7, %p2186_p6 }
  0x10   : > { %p2189_p9 = pneg %p2188_p8 }
  0x12   : > { %p2194_p11 = pnand %p2192_p10, %p2189_p9 }
  0x14   : > { %2197 = shalt.err (!%p2194_p11)
}
  0x15   : > { %s2198_s27 = scalar_lea.vmem %s127_s15, 128  ;;  %p2206_p1 = scmp.lt.s32.totalorder %s127_s15, %s127_s15 }
  0x16   : > { %p2199_p12 = scmp.ne.s32.totalorder %s127_s15, %s2198_s27  ;;  %p2207_p4 = scmp.lt.s32.totalorder %s2198_s27, %s2198_s27 }
  0x18   : > { %p2201_p13 = pnand %p2199_p12, %p2187_p7  ;;  %p2208_p3 = por %p2207_p4, %p2206_p1 }
  0x1a   : > { %p2202_p0 = pneg %p2201_p13 }
  0x1c   : > { %p2209_p2 = pnand %p2208_p3, %p2202_p0 }
  0x1e   : > { %2212 = shalt.err (!%p2209_p2)
}
  0x1f   : > { %s2259_s28 = smov 64   ;;  %s2260_s29 = smov 4  }
  0x20   : > { %2118 = dma.hbm_to_vmem [thread:$0]  (!%p2303_p5), %s2820_s1, 128, %s127_s15, [#allocation3], %s2259_s28, %s2259_s28, %s2260_s29  }
  0x21   : > { %s2213_s7 = scalar_lea.hbm %s2821_s2, 16 }
  0x22   : > { %p2214_p6 = scmp.ne.s32.totalorder %s2821_s2, %s2213_s7  ;;  %p2220_p8 = scmp.lt.u32.totalorder %s2213_s7, %s2821_s2 }
  0x24   : > { %p2216_p2 = pnand %p2214_p6, %p2187_p7 }
  0x26   : > { %p2217_p3 = pneg %p2216_p2 }
  0x28   : > { %p2222_p9 = pnand %p2220_p8, %p2217_p3 }
  0x2a   : > { %2225 = shalt.err (!%p2222_p9)
}
  0x2b   : > { %s2226_s14 = scalar_lea.vmem %s2307_s18, 16  ;;  %s2233_s15 = scalar_lea.vmem %s2307_s18, 32 }
  0x2c   : > { %p2227_p10 = scmp.ne.s32.totalorder %s2307_s18, %s2226_s14  ;;  %p2234_p13 = scmp.lt.s32.totalorder %s2307_s18, %s2307_s18 }
  0x2d   : > { %p2235_p0 = scmp.lt.s32.totalorder %s2233_s15, %s2226_s14 }
  0x2e   : > { %p2229_p11 = pnand %p2227_p10, %p2187_p7 }
  0x2f   : > { %p2236_p1 = por %p2235_p0, %p2234_p13 }
  0x30   : > { %p2230_p12 = pneg %p2229_p11 }
  0x32   : > { %p2237_p4 = pnand %p2236_p1, %p2230_p12 }
  0x34   : > { %2240 = shalt.err (!%p2237_p4)
}
  0x35   : > { %2121 = dma.hbm_to_vmem [thread:$0]  (!%p2303_p5), %s2821_s2, 16, %s2307_s18, [#allocation5]  }
  0x36   : > { %p2827_p6 = scmp.ne.s32.totalorder %s2825_s16, 0 }
  0x37   : > { %p2828_p7 = scmp.eq.s32.totalorder (!%p2827_p6), %s2290_s13, 0 }
  0x38   : > { %161 = sbr.rel (%p2827_p6) target bundleno = 466 (0x1d2), region = 32 }
  0x3f   : > { %2246 = dma.done.wait (%p2828_p7), [#allocation3], 128   ;;  %p2829_p2 = pmov %p2828_p7 }
  0x41   : > { %2248 = vsyncadd (%p2829_p2), [#allocation3], 4294967168  ;;  %p2830_p3 = pmov %p2829_p2 }
  0x42   : > { %p2831_p8 = pmov %p2829_p2 }
  0x43   : > { %2250 = dma.done.wait (%p2830_p3), [#allocation5], 16  }
  0x44   : > { %2252 = vsyncadd (%p2831_p8), [#allocation5], 4294967280  ;;  %vm642_vm0 = vcmask 1043456   ;;  %v2261_v0 = vmov 0.0   ;;  %p189_p5 = scmp.lt.s32.totalorder %s2290_s13, 1  ;;  %vm2262_vm1 = vmmov 0  }
  0x45   : > { %1930 = vmatprep.subr.bf16.mxu0 %v2261_v0  ;;  %2104 = vmatprep.subr.bf16.mxu1 %v2261_v0  ;;  %vm643_vm2 = vcmask 1044480   ;;  %v2263_v1 = vmov 65535   ;;  %v2141_v4 = vld [vmem:[#allocation2] sm:$0x1f]   ;;  %vm512_vm3 = vcmask 72704   ;;  %vm1451_vm4 = vcmask 257024  }
  0x46   : > { %1932 = vmatprep.mubr.msk.bf16.mxu0 %vm2262_vm1, %v2261_v0  ;;  %2020 = vmatprep.mubr.msk.bf16.mxu1 %vm2262_vm1, %v2261_v0  ;;  %v644_v2 = vsel %vm642_vm0, 4294967295, %v2263_v1  ;;  %s2833_s13 = smov (!%p189_p5, %s2290_s13), 1  ;;  %v2553_v49 = vld [vmem:[#allocation4] ss:$0 sm:$0xff]  ;;  %vm1536_vm5 = vcmask 254976  }
  0x47   : > { %s2106_s16 = smul.u32 340, %s2833_s13  ;;  %v645_v3 = vsel %vm643_vm2, %v644_v2, 0 }
  0x48   : > { %v647_v5 = vand.u32 %v2141_v4, %v645_v3 }
  0x49   : > { %s2383_s21 = scalar_lea.vmem %s2819_s0, %s2106_s16  ;;  %s2564_s24 = scalar_lea.vmem %s2822_s3, %s2106_s16 }
  0x4a   : > { %v2142_v6 = vld [vmem:[%s2383_s21] sm:$0xff]   ;;  %v2143_v7 = vld [vmem:[%s2383_s21 + $0xb0] sm:$0xff]   ;;  %1931 = vmatpush3.bf16.msra.mxu0 %v647_v5  ;;  %2105 = vmatpush3.bf16.msra.mxu1 %v647_v5  ;;  %v2144_v8 = vld [vmem:[%s2383_s21 + $0x8] sm:$0xff]  }
  0x4b   : > { %v2145_v9 = vld [vmem:[%s2383_s21 + $0xb8] sm:$0xff]   ;;  %v2146_v10 = vld [vmem:[%s2383_s21 + $0x10] sm:$0xff]   ;;  %v2147_v11 = vld [vmem:[%s2383_s21 + $0xc0] sm:$0xff]  }
  0x4c   : > { %v2148_v12 = vld [vmem:[%s2383_s21 + $0x18] sm:$0xff]   ;;  %v2149_v13 = vld [vmem:[%s2383_s21 + $0xc8] sm:$0xff]   ;;  %v2150_v14 = vld [vmem:[%s2383_s21 + $0x20] sm:$0xff]  }
  0x4d   : > { %1933 = vmatmul.mubr.msk.bf16.vlgmr.msra.gmra.mrb[0].mxu0 %vm512_vm3, %v2142_v6  ;;  %2021 = vmatmul.mubr.msk.bf16.vlgmr.msra.gmra.mrb[0].mxu1 %vm512_vm3, %v2143_v7  ;;  %v2151_v15 = vld [vmem:[%s2383_s21 + $0xd0] sm:$0xff]   ;;  %v2152_v16 = vld [vmem:[%s2383_s21 + $0x28] sm:$0xff]   ;;  %v2153_v17 = vld [vmem:[%s2383_s21 + $0xd8] sm:$0xff]  }
  0x4e   : > { %1936 = vmatprep.mubr.msk.bf16.mxu0 %vm2262_vm1, %v2261_v0  ;;  %2024 = vmatprep.mubr.msk.bf16.mxu1 %vm2262_vm1, %v2261_v0  ;;  %v2154_v18 = vld [vmem:[%s2383_s21 + $0x30] sm:$0xff]   ;;  %v2155_v19 = vld [vmem:[%s2383_s21 + $0xe0] sm:$0xff]   ;;  %v2156_v20 = vld [vmem:[%s2383_s21 + $0x38] sm:$0xff]  }
  0x4f   : > { %v2157_v21 = vld [vmem:[%s2383_s21 + $0xe8] sm:$0xff]   ;;  %v2158_v22 = vld [vmem:[%s2383_s21 + $0x40] sm:$0xff]   ;;  %v2159_v23 = vld [vmem:[%s2383_s21 + $0xf0] sm:$0xff]  }
  0x50   : > { %v2160_v24 = vld [vmem:[%s2383_s21 + $0x48] sm:$0xff]   ;;  %v2161_v25 = vld [vmem:[%s2383_s21 + $0xf8] sm:$0xff]   ;;  %v2162_v26 = vld [vmem:[%s2383_s21 + $0x50] sm:$0xff]  }
  0x51   : > { %v2163_v27 = vld [vmem:[%s2383_s21 + $0x100] sm:$0xff]   ;;  %v2164_v28 = vld [vmem:[%s2383_s21 + $0x58] sm:$0xff]   ;;  %v2165_v29 = vld [vmem:[%s2383_s21 + $0x108] sm:$0xff]  }
  0x52   : > { %v2166_v30 = vld [vmem:[%s2383_s21 + $0x60] sm:$0xff]   ;;  %v2167_v31 = vld [vmem:[%s2383_s21 + $0x110] sm:$0xff]   ;;  %v2168_v32 = vld [vmem:[%s2383_s21 + $0x68] sm:$0xff]  }
  0x53   : > { %v2169_v33 = vld [vmem:[%s2383_s21 + $0x118] sm:$0xff]   ;;  %v2170_v34 = vld [vmem:[%s2383_s21 + $0x70] sm:$0xff]   ;;  %v2171_v35 = vld [vmem:[%s2383_s21 + $0x120] sm:$0xff]  }
  0x54   : > { %v2172_v36 = vld [vmem:[%s2383_s21 + $0x78] sm:$0xff]   ;;  %v2173_v37 = vld [vmem:[%s2383_s21 + $0x128] sm:$0xff]   ;;  %v2174_v38 = vld [vmem:[%s2383_s21 + $0x80] sm:$0xff]  }
  0x55   : > { %1937 = vmatmul.mubr.msk.bf16.gmra.mrb[4].mxu0 %vm512_vm3, %v2144_v8  ;;  %2025 = vmatmul.mubr.msk.bf16.gmra.mrb[4].mxu1 %vm512_vm3, %v2145_v9  ;;  %v2175_v39 = vld [vmem:[%s2383_s21 + $0x130] sm:$0xff]   ;;  %v2176_v40 = vld [vmem:[%s2383_s21 + $0x88] sm:$0xff]   ;;  %v2177_v41 = vld [vmem:[%s2383_s21 + $0x138] sm:$0xff]  }
  0x56   : > { %1940 = vmatprep.mubr.msk.bf16.mxu0 %vm2262_vm1, %v2261_v0  ;;  %2028 = vmatprep.mubr.msk.bf16.mxu1 %vm2262_vm1, %v2261_v0  ;;  %v2178_v42 = vld [vmem:[%s2383_s21 + $0x90] sm:$0xff]   ;;  %v2179_v43 = vld [vmem:[%s2383_s21 + $0x140] sm:$0xff]   ;;  %v2180_v44 = vld [vmem:[%s2383_s21 + $0x98] sm:$0xff]  }
  0x57   : > { %v2181_v45 = vld [vmem:[%s2383_s21 + $0x148] sm:$0xff]   ;;  %v2182_v46 = vld [vmem:[%s2383_s21 + $0xa0] sm:$0xff]   ;;  %v2183_v47 = vld [vmem:[%s2383_s21 + $0x150] ss:$0 sps:$4 sm:$0x33]  }
  0x58   : > { %v2184_v48 = vld [vmem:[%s2383_s21 + $0xa8] sm:$0xff]  }
  0x5d   : > { %1941 = vmatmul.mubr.msk.bf16.gmra.mrb[8].mxu0 %vm512_vm3, %v2146_v10  ;;  %2029 = vmatmul.mubr.msk.bf16.gmra.mrb[8].mxu1 %vm512_vm3, %v2147_v11 }
  0x5e   : > { %1944 = vmatprep.mubr.msk.bf16.mxu0 %vm2262_vm1, %v2261_v0  ;;  %2032 = vmatprep.mubr.msk.bf16.mxu1 %vm2262_vm1, %v2261_v0 }
  0x65   : > { %1945 = vmatmul.mubr.msk.bf16.gmra.mrb[12].mxu0 %vm512_vm3, %v2148_v12  ;;  %2033 = vmatmul.mubr.msk.bf16.gmra.mrb[12].mxu1 %vm512_vm3, %v2149_v13 }
  0x66   : > { %1948 = vmatprep.mubr.msk.bf16.mxu0 %vm2262_vm1, %v2261_v0  ;;  %2036 = vmatprep.mubr.msk.bf16.mxu1 %vm2262_vm1, %v2261_v0 }
  0x6d   : > { %1949 = vmatmul.mubr.msk.bf16.gmra.mrb[16].mxu0 %vm512_vm3, %v2150_v14  ;;  %2037 = vmatmul.mubr.msk.bf16.gmra.mrb[16].mxu1 %vm512_vm3, %v2151_v15 }
  0x6e   : > { %1952 = vmatprep.mubr.msk.bf16.mxu0 %vm2262_vm1, %v2261_v0  ;;  %2040 = vmatprep.mubr.msk.bf16.mxu1 %vm2262_vm1, %v2261_v0 }
  0x75   : > { %1953 = vmatmul.mubr.msk.bf16.gmra.mrb[20].mxu0 %vm512_vm3, %v2152_v16  ;;  %2041 = vmatmul.mubr.msk.bf16.gmra.mrb[20].mxu1 %vm512_vm3, %v2153_v17 }
  0x76   : > { %1956 = vmatprep.mubr.msk.bf16.mxu0 %vm2262_vm1, %v2261_v0  ;;  %2044 = vmatprep.mubr.msk.bf16.mxu1 %vm2262_vm1, %v2261_v0 }
  0x7d   : > { %1957 = vmatmul.mubr.msk.bf16.gmra.mrb[24].mxu0 %vm512_vm3, %v2154_v18  ;;  %2045 = vmatmul.mubr.msk.bf16.gmra.mrb[24].mxu1 %vm512_vm3, %v2155_v19 }
  0x7e   : > { %1960 = vmatprep.mubr.msk.bf16.mxu0 %vm2262_vm1, %v2261_v0  ;;  %2048 = vmatprep.mubr.msk.bf16.mxu1 %vm2262_vm1, %v2261_v0 }
  0x85   : > { %1961 = vmatmul.mubr.msk.bf16.gmra.mrb[28].mxu0 %vm512_vm3, %v2156_v20  ;;  %2049 = vmatmul.mubr.msk.bf16.gmra.mrb[28].mxu1 %vm512_vm3, %v2157_v21 }
  0x86   : > { %1964 = vmatprep.mubr.msk.bf16.mxu0 %vm2262_vm1, %v2261_v0  ;;  %2052 = vmatprep.mubr.msk.bf16.mxu1 %vm2262_vm1, %v2261_v0 }
  0x8d   : > { %1965 = vmatmul.mubr.msk.bf16.gmra.mrb[32].mxu0 %vm512_vm3, %v2158_v22  ;;  %2053 = vmatmul.mubr.msk.bf16.gmra.mrb[32].mxu1 %vm512_vm3, %v2159_v23 }
  0x8e   : > { %1968 = vmatprep.mubr.msk.bf16.mxu0 %vm2262_vm1, %v2261_v0  ;;  %2056 = vmatprep.mubr.msk.bf16.mxu1 %vm2262_vm1, %v2261_v0 }
  0x95   : > { %1969 = vmatmul.mubr.msk.bf16.gmra.mrb[36].mxu0 %vm512_vm3, %v2160_v24  ;;  %2057 = vmatmul.mubr.msk.bf16.gmra.mrb[36].mxu1 %vm512_vm3, %v2161_v25 }
  0x96   : > { %1972 = vmatprep.mubr.msk.bf16.mxu0 %vm2262_vm1, %v2261_v0  ;;  %2060 = vmatprep.mubr.msk.bf16.mxu1 %vm2262_vm1, %v2261_v0 }
  0x9d   : > { %1973 = vmatmul.mubr.msk.bf16.gmra.mrb[40].mxu0 %vm512_vm3, %v2162_v26  ;;  %2061 = vmatmul.mubr.msk.bf16.gmra.mrb[40].mxu1 %vm512_vm3, %v2163_v27 }
  0x9e   : > { %1976 = vmatprep.mubr.msk.bf16.mxu0 %vm2262_vm1, %v2261_v0  ;;  %2064 = vmatprep.mubr.msk.bf16.mxu1 %vm2262_vm1, %v2261_v0 }
  0xa5   : > { %1977 = vmatmul.mubr.msk.bf16.gmra.mrb[44].mxu0 %vm512_vm3, %v2164_v28  ;;  %2065 = vmatmul.mubr.msk.bf16.gmra.mrb[44].mxu1 %vm512_vm3, %v2165_v29 }
  0xa6   : > { %1980 = vmatprep.mubr.msk.bf16.mxu0 %vm2262_vm1, %v2261_v0  ;;  %2068 = vmatprep.mubr.msk.bf16.mxu1 %vm2262_vm1, %v2261_v0 }
  0xad   : > { %1981 = vmatmul.mubr.msk.bf16.gmra.mrb[48].mxu0 %vm512_vm3, %v2166_v30  ;;  %2069 = vmatmul.mubr.msk.bf16.gmra.mrb[48].mxu1 %vm512_vm3, %v2167_v31 }
  0xae   : > { %1984 = vmatprep.mubr.msk.bf16.mxu0 %vm2262_vm1, %v2261_v0  ;;  %2072 = vmatprep.mubr.msk.bf16.mxu1 %vm2262_vm1, %v2261_v0 }
  0xb5   : > { %1985 = vmatmul.mubr.msk.bf16.gmra.mrb[52].mxu0 %vm512_vm3, %v2168_v32  ;;  %2073 = vmatmul.mubr.msk.bf16.gmra.mrb[52].mxu1 %vm512_vm3, %v2169_v33 }
  0xb6   : > { %1988 = vmatprep.mubr.msk.bf16.mxu0 %vm2262_vm1, %v2261_v0  ;;  %2076 = vmatprep.mubr.msk.bf16.mxu1 %vm2262_vm1, %v2261_v0 }
  0xbd   : > { %1989 = vmatmul.mubr.msk.bf16.gmra.mrb[56].mxu0 %vm512_vm3, %v2170_v34  ;;  %2077 = vmatmul.mubr.msk.bf16.gmra.mrb[56].mxu1 %vm512_vm3, %v2171_v35 }
  0xbe   : > { %1992 = vmatprep.mubr.msk.bf16.mxu0 %vm2262_vm1, %v2261_v0  ;;  %2080 = vmatprep.mubr.msk.bf16.mxu1 %vm2262_vm1, %v2261_v0 }
  0xc5   : > { %1993 = vmatmul.mubr.msk.bf16.gmra.mrb[60].mxu0 %vm512_vm3, %v2172_v36  ;;  %2081 = vmatmul.mubr.msk.bf16.gmra.mrb[60].mxu1 %vm512_vm3, %v2173_v37 }
  0xc6   : > { %1996 = vmatprep.mubr.msk.bf16.mxu0 %vm2262_vm1, %v2261_v0  ;;  %2084 = vmatprep.mubr.msk.bf16.mxu1 %vm2262_vm1, %v2261_v0 }
  0xcd   : > { %1997 = vmatmul.mubr.msk.bf16.gmra.mrb[64].mxu0 %vm512_vm3, %v2174_v38  ;;  %2085 = vmatmul.mubr.msk.bf16.gmra.mrb[64].mxu1 %vm512_vm3, %v2175_v39 }
  0xce   : > { %2000 = vmatprep.mubr.msk.bf16.mxu0 %vm2262_vm1, %v2261_v0  ;;  %2088 = vmatprep.mubr.msk.bf16.mxu1 %vm2262_vm1, %v2261_v0 }
  0xd5   : > { %2001 = vmatmul.mubr.msk.bf16.gmra.mrb[68].mxu0 %vm512_vm3, %v2176_v40  ;;  %2089 = vmatmul.mubr.msk.bf16.gmra.mrb[68].mxu1 %vm512_vm3, %v2177_v41 }
  0xd6   : > { %2004 = vmatprep.mubr.msk.bf16.mxu0 %vm2262_vm1, %v2261_v0  ;;  %2092 = vmatprep.mubr.msk.bf16.mxu1 %vm2262_vm1, %v2261_v0 }
  0xdd   : > { %2005 = vmatmul.mubr.msk.bf16.gmra.mrb[72].mxu0 %vm512_vm3, %v2178_v42  ;;  %2093 = vmatmul.mubr.msk.bf16.gmra.mrb[72].mxu1 %vm512_vm3, %v2179_v43 }
  0xde   : > { %2008 = vmatprep.mubr.msk.bf16.mxu0 %vm2262_vm1, %v2261_v0  ;;  %2096 = vmatprep.mubr.msk.bf16.mxu1 %vm2262_vm1, %v2261_v0 }
  0xe5   : > { %2009 = vmatmul.mubr.msk.bf16.gmra.mrb[76].mxu0 %vm512_vm3, %v2180_v44  ;;  %2097 = vmatmul.mubr.msk.bf16.gmra.mrb[76].mxu1 %vm512_vm3, %v2181_v45 }
  0xe6   : > { %2012 = vmatprep.mubr.msk.bf16.mxu0 %vm2262_vm1, %v2261_v0  ;;  %2100 = vmatprep.mubr.msk.bf16.mxu1 %vm2262_vm1, %v2261_v0 }
  0xed   : > { %2013 = vmatmul.mubr.msk.bf16.gmra.mrb[80].mxu0 %vm512_vm3, %v2182_v46  ;;  %2101 = vmatmul.mubr.msk.bf16.gmra.mrb[80].mxu1 %vm512_vm3, %v2183_v47 }
  0xee   : > { %2016 = vmatprep.mubr.msk.bf16.mxu0 %vm2262_vm1, %v2261_v0 }
  0xf5   : > { %2017 = vmatmul.mubr.msk.bf16.gmra.mrb[84].mxu0 %vm512_vm3, %v2184_v48 }
 0x120   : > { %v683_v50 = vpop.f32.mrb[0].mxu0  ;;  %v859_v51 = vpop.f32.mrb[0].mxu1 }
 0x121   : > { %v684_v52 = vadd.f32 %v2553_v49, %v683_v50  ;;  %v1934_v53 = vpop.f32.mrb[1].mxu0  ;;  %v860_v54 = vadd.f32 %v2553_v49, %v859_v51  ;;  %v2022_v55 = vpop.f32.mrb[1].mxu1 }
 0x122   : > { %v686_v56 = vpop.f32.mrb[2].mxu0  ;;  %v862_v57 = vpop.f32.mrb[2].mxu1 }
 0x123   : > { %v1025_v58 = vmax.f32 %v684_v52, 0.0  ;;  %v687_v59 = vadd.f32 %v2553_v49, %v686_v56  ;;  %v1935_v60 = vpop.f32.mrb[3].mxu0  ;;  %v1069_v61 = vmax.f32 %v860_v54, 0.0  ;;  %v863_v62 = vadd.f32 %v2553_v49, %v862_v57  ;;  %v2023_v63 = vpop.f32.mrb[3].mxu1 }
 0x125   : > { %v1801_v0 = vpack.c.bf16 %v1025_v58, %v1025_v58  ;;  %v1026_v1 = vmax.f32 %v687_v59, 0.0  ;;  %v1845_v2 = vpack.c.bf16 %v1069_v61, %v1069_v61  ;;  %v1070_v3 = vmax.f32 %v863_v62, 0.0 }
 0x127   : > { %1452 = vst.msk [vmem:[%s2564_s24] sm:$0xf] %vm1451_vm4, %v1801_v0  ;;  %v1802_v4 = vpack.c.bf16 %v1026_v1, %v1026_v1  ;;  %1496 = vst.msk [vmem:[%s2564_s24 + $0xb0] sm:$0xf] %vm1451_vm4, %v1845_v2  ;;  %v1846_v5 = vpack.c.bf16 %v1070_v3, %v1070_v3 }
 0x128   : > { %v691_v6 = vpop.f32.mrb[4].mxu0  ;;  %v867_v7 = vpop.f32.mrb[4].mxu1 }
 0x129   : > { %1453 = vst.msk [vmem:[%s2564_s24 + $0x4] sm:$0xf] %vm1451_vm4, %v1802_v4  ;;  %v692_v8 = vadd.f32 %v2553_v49, %v691_v6  ;;  %v1938_v9 = vpop.f32.mrb[5].mxu0  ;;  %1497 = vst.msk [vmem:[%s2564_s24 + $0xb4] sm:$0xf] %vm1451_vm4, %v1846_v5  ;;  %v868_v10 = vadd.f32 %v2553_v49, %v867_v7  ;;  %v2026_v11 = vpop.f32.mrb[5].mxu1 }
 0x12a   : > { %v694_v12 = vpop.f32.mrb[6].mxu0  ;;  %v870_v13 = vpop.f32.mrb[6].mxu1 }
 0x12b   : > { %v1027_v14 = vmax.f32 %v692_v8, 0.0  ;;  %v695_v15 = vadd.f32 %v2553_v49, %v694_v12  ;;  %v1939_v16 = vpop.f32.mrb[7].mxu0  ;;  %v1071_v17 = vmax.f32 %v868_v10, 0.0  ;;  %v871_v18 = vadd.f32 %v2553_v49, %v870_v13  ;;  %v2027_v19 = vpop.f32.mrb[7].mxu1 }
 0x12d   : > { %v1803_v20 = vpack.c.bf16 %v1027_v14, %v1027_v14  ;;  %v1028_v21 = vmax.f32 %v695_v15, 0.0  ;;  %v1847_v22 = vpack.c.bf16 %v1071_v17, %v1071_v17  ;;  %v1072_v23 = vmax.f32 %v871_v18, 0.0 }
 0x12f   : > { %1454 = vst.msk [vmem:[%s2564_s24 + $0x8] sm:$0xf] %vm1451_vm4, %v1803_v20  ;;  %v1804_v24 = vpack.c.bf16 %v1028_v21, %v1028_v21  ;;  %1498 = vst.msk [vmem:[%s2564_s24 + $0xb8] sm:$0xf] %vm1451_vm4, %v1847_v22  ;;  %v1848_v25 = vpack.c.bf16 %v1072_v23, %v1072_v23 }
 0x130   : > { %v699_v26 = vpop.f32.mrb[8].mxu0  ;;  %v875_v27 = vpop.f32.mrb[8].mxu1 }
 0x131   : > { %1455 = vst.msk [vmem:[%s2564_s24 + $0xc] sm:$0xf] %vm1451_vm4, %v1804_v24  ;;  %v700_v28 = vadd.f32 %v2553_v49, %v699_v26  ;;  %v1942_v29 = vpop.f32.mrb[9].mxu0  ;;  %1499 = vst.msk [vmem:[%s2564_s24 + $0xbc] sm:$0xf] %vm1451_vm4, %v1848_v25  ;;  %v876_v30 = vadd.f32 %v2553_v49, %v875_v27  ;;  %v2030_v31 = vpop.f32.mrb[9].mxu1 }
 0x132   : > { %v702_v32 = vpop.f32.mrb[10].mxu0  ;;  %v878_v33 = vpop.f32.mrb[10].mxu1 }
 0x133   : > { %v1029_v34 = vmax.f32 %v700_v28, 0.0  ;;  %v703_v35 = vadd.f32 %v2553_v49, %v702_v32  ;;  %v1943_v36 = vpop.f32.mrb[11].mxu0  ;;  %v1073_v37 = vmax.f32 %v876_v30, 0.0  ;;  %v879_v38 = vadd.f32 %v2553_v49, %v878_v33  ;;  %v2031_v39 = vpop.f32.mrb[11].mxu1 }
 0x135   : > { %v1805_v40 = vpack.c.bf16 %v1029_v34, %v1029_v34  ;;  %v1030_v41 = vmax.f32 %v703_v35, 0.0  ;;  %v1849_v42 = vpack.c.bf16 %v1073_v37, %v1073_v37  ;;  %v1074_v43 = vmax.f32 %v879_v38, 0.0 }
 0x137   : > { %1456 = vst.msk [vmem:[%s2564_s24 + $0x10] sm:$0xf] %vm1451_vm4, %v1805_v40  ;;  %v1806_v44 = vpack.c.bf16 %v1030_v41, %v1030_v41  ;;  %1500 = vst.msk [vmem:[%s2564_s24 + $0xc0] sm:$0xf] %vm1451_vm4, %v1849_v42  ;;  %v1850_v45 = vpack.c.bf16 %v1074_v43, %v1074_v43 }
 0x138   : > { %v707_v46 = vpop.f32.mrb[12].mxu0  ;;  %v883_v47 = vpop.f32.mrb[12].mxu1 }
 0x139   : > { %1457 = vst.msk [vmem:[%s2564_s24 + $0x14] sm:$0xf] %vm1451_vm4, %v1806_v44  ;;  %v708_v48 = vadd.f32 %v2553_v49, %v707_v46  ;;  %v1946_v50 = vpop.f32.mrb[13].mxu0  ;;  %1501 = vst.msk [vmem:[%s2564_s24 + $0xc4] sm:$0xf] %vm1451_vm4, %v1850_v45  ;;  %v884_v51 = vadd.f32 %v2553_v49, %v883_v47  ;;  %v2034_v52 = vpop.f32.mrb[13].mxu1 }
 0x13a   : > { %v710_v53 = vpop.f32.mrb[14].mxu0  ;;  %v886_v54 = vpop.f32.mrb[14].mxu1 }
 0x13b   : > { %v1031_v55 = vmax.f32 %v708_v48, 0.0  ;;  %v711_v56 = vadd.f32 %v2553_v49, %v710_v53  ;;  %v1947_v57 = vpop.f32.mrb[15].mxu0  ;;  %v1075_v58 = vmax.f32 %v884_v51, 0.0  ;;  %v887_v59 = vadd.f32 %v2553_v49, %v886_v54  ;;  %v2035_v60 = vpop.f32.mrb[15].mxu1 }
 0x13d   : > { %v1807_v61 = vpack.c.bf16 %v1031_v55, %v1031_v55  ;;  %v1032_v62 = vmax.f32 %v711_v56, 0.0  ;;  %v1851_v63 = vpack.c.bf16 %v1075_v58, %v1075_v58  ;;  %v1076_v0 = vmax.f32 %v887_v59, 0.0 }
 0x13f   : > { %1458 = vst.msk [vmem:[%s2564_s24 + $0x18] sm:$0xf] %vm1451_vm4, %v1807_v61  ;;  %v1808_v1 = vpack.c.bf16 %v1032_v62, %v1032_v62  ;;  %1502 = vst.msk [vmem:[%s2564_s24 + $0xc8] sm:$0xf] %vm1451_vm4, %v1851_v63  ;;  %v1852_v2 = vpack.c.bf16 %v1076_v0, %v1076_v0 }
 0x140   : > { %v715_v3 = vpop.f32.mrb[16].mxu0  ;;  %v891_v4 = vpop.f32.mrb[16].mxu1 }
 0x141   : > { %1459 = vst.msk [vmem:[%s2564_s24 + $0x1c] sm:$0xf] %vm1451_vm4, %v1808_v1  ;;  %v716_v5 = vadd.f32 %v2553_v49, %v715_v3  ;;  %v1950_v6 = vpop.f32.mrb[17].mxu0  ;;  %1503 = vst.msk [vmem:[%s2564_s24 + $0xcc] sm:$0xf] %vm1451_vm4, %v1852_v2  ;;  %v892_v7 = vadd.f32 %v2553_v49, %v891_v4  ;;  %v2038_v8 = vpop.f32.mrb[17].mxu1 }
 0x142   : > { %v718_v9 = vpop.f32.mrb[18].mxu0  ;;  %v894_v10 = vpop.f32.mrb[18].mxu1 }
 0x143   : > { %v1033_v11 = vmax.f32 %v716_v5, 0.0  ;;  %v719_v12 = vadd.f32 %v2553_v49, %v718_v9  ;;  %v1951_v13 = vpop.f32.mrb[19].mxu0  ;;  %v1077_v14 = vmax.f32 %v892_v7, 0.0  ;;  %v895_v15 = vadd.f32 %v2553_v49, %v894_v10  ;;  %v2039_v16 = vpop.f32.mrb[19].mxu1 }
 0x145   : > { %v1809_v17 = vpack.c.bf16 %v1033_v11, %v1033_v11  ;;  %v1034_v18 = vmax.f32 %v719_v12, 0.0  ;;  %v1853_v19 = vpack.c.bf16 %v1077_v14, %v1077_v14  ;;  %v1078_v20 = vmax.f32 %v895_v15, 0.0 }
 0x147   : > { %1460 = vst.msk [vmem:[%s2564_s24 + $0x20] sm:$0xf] %vm1451_vm4, %v1809_v17  ;;  %v1810_v21 = vpack.c.bf16 %v1034_v18, %v1034_v18  ;;  %1504 = vst.msk [vmem:[%s2564_s24 + $0xd0] sm:$0xf] %vm1451_vm4, %v1853_v19  ;;  %v1854_v22 = vpack.c.bf16 %v1078_v20, %v1078_v20 }
 0x148   : > { %v723_v23 = vpop.f32.mrb[20].mxu0  ;;  %v899_v24 = vpop.f32.mrb[20].mxu1 }
 0x149   : > { %1461 = vst.msk [vmem:[%s2564_s24 + $0x24] sm:$0xf] %vm1451_vm4, %v1810_v21  ;;  %v724_v25 = vadd.f32 %v2553_v49, %v723_v23  ;;  %v1954_v26 = vpop.f32.mrb[21].mxu0  ;;  %1505 = vst.msk [vmem:[%s2564_s24 + $0xd4] sm:$0xf] %vm1451_vm4, %v1854_v22  ;;  %v900_v27 = vadd.f32 %v2553_v49, %v899_v24  ;;  %v2042_v28 = vpop.f32.mrb[21].mxu1 }
 0x14a   : > { %v726_v29 = vpop.f32.mrb[22].mxu0  ;;  %v902_v30 = vpop.f32.mrb[22].mxu1 }
 0x14b   : > { %v1035_v31 = vmax.f32 %v724_v25, 0.0  ;;  %v727_v32 = vadd.f32 %v2553_v49, %v726_v29  ;;  %v1955_v33 = vpop.f32.mrb[23].mxu0  ;;  %v1079_v34 = vmax.f32 %v900_v27, 0.0  ;;  %v903_v35 = vadd.f32 %v2553_v49, %v902_v30  ;;  %v2043_v36 = vpop.f32.mrb[23].mxu1 }
 0x14d   : > { %v1811_v37 = vpack.c.bf16 %v1035_v31, %v1035_v31  ;;  %v1036_v38 = vmax.f32 %v727_v32, 0.0  ;;  %v1855_v39 = vpack.c.bf16 %v1079_v34, %v1079_v34  ;;  %v1080_v40 = vmax.f32 %v903_v35, 0.0 }
 0x14f   : > { %1462 = vst.msk [vmem:[%s2564_s24 + $0x28] sm:$0xf] %vm1451_vm4, %v1811_v37  ;;  %v1812_v41 = vpack.c.bf16 %v1036_v38, %v1036_v38  ;;  %1506 = vst.msk [vmem:[%s2564_s24 + $0xd8] sm:$0xf] %vm1451_vm4, %v1855_v39  ;;  %v1856_v42 = vpack.c.bf16 %v1080_v40, %v1080_v40 }
 0x150   : > { %v731_v43 = vpop.f32.mrb[24].mxu0  ;;  %v907_v44 = vpop.f32.mrb[24].mxu1 }
 0x151   : > { %1463 = vst.msk [vmem:[%s2564_s24 + $0x2c] sm:$0xf] %vm1451_vm4, %v1812_v41  ;;  %v732_v45 = vadd.f32 %v2553_v49, %v731_v43  ;;  %v1958_v46 = vpop.f32.mrb[25].mxu0  ;;  %1507 = vst.msk [vmem:[%s2564_s24 + $0xdc] sm:$0xf] %vm1451_vm4, %v1856_v42  ;;  %v908_v47 = vadd.f32 %v2553_v49, %v907_v44  ;;  %v2046_v48 = vpop.f32.mrb[25].mxu1 }
 0x152   : > { %v734_v50 = vpop.f32.mrb[26].mxu0  ;;  %v910_v51 = vpop.f32.mrb[26].mxu1 }
 0x153   : > { %v1037_v52 = vmax.f32 %v732_v45, 0.0  ;;  %v735_v53 = vadd.f32 %v2553_v49, %v734_v50  ;;  %v1959_v54 = vpop.f32.mrb[27].mxu0  ;;  %v1081_v55 = vmax.f32 %v908_v47, 0.0  ;;  %v911_v56 = vadd.f32 %v2553_v49, %v910_v51  ;;  %v2047_v57 = vpop.f32.mrb[27].mxu1 }
 0x155   : > { %v1813_v58 = vpack.c.bf16 %v1037_v52, %v1037_v52  ;;  %v1038_v59 = vmax.f32 %v735_v53, 0.0  ;;  %v1857_v60 = vpack.c.bf16 %v1081_v55, %v1081_v55  ;;  %v1082_v61 = vmax.f32 %v911_v56, 0.0 }
 0x157   : > { %1464 = vst.msk [vmem:[%s2564_s24 + $0x30] sm:$0xf] %vm1451_vm4, %v1813_v58  ;;  %v1814_v62 = vpack.c.bf16 %v1038_v59, %v1038_v59  ;;  %1508 = vst.msk [vmem:[%s2564_s24 + $0xe0] sm:$0xf] %vm1451_vm4, %v1857_v60  ;;  %v1858_v63 = vpack.c.bf16 %v1082_v61, %v1082_v61 }
 0x158   : > { %v739_v0 = vpop.f32.mrb[28].mxu0  ;;  %v915_v1 = vpop.f32.mrb[28].mxu1 }
 0x159   : > { %1465 = vst.msk [vmem:[%s2564_s24 + $0x34] sm:$0xf] %vm1451_vm4, %v1814_v62  ;;  %v740_v2 = vadd.f32 %v2553_v49, %v739_v0  ;;  %v1962_v3 = vpop.f32.mrb[29].mxu0  ;;  %1509 = vst.msk [vmem:[%s2564_s24 + $0xe4] sm:$0xf] %vm1451_vm4, %v1858_v63  ;;  %v916_v4 = vadd.f32 %v2553_v49, %v915_v1  ;;  %v2050_v5 = vpop.f32.mrb[29].mxu1 }
 0x15a   : > { %v742_v6 = vpop.f32.mrb[30].mxu0  ;;  %v918_v7 = vpop.f32.mrb[30].mxu1 }
 0x15b   : > { %v1039_v8 = vmax.f32 %v740_v2, 0.0  ;;  %v743_v9 = vadd.f32 %v2553_v49, %v742_v6  ;;  %v1963_v10 = vpop.f32.mrb[31].mxu0  ;;  %v1083_v11 = vmax.f32 %v916_v4, 0.0  ;;  %v919_v12 = vadd.f32 %v2553_v49, %v918_v7  ;;  %v2051_v13 = vpop.f32.mrb[31].mxu1 }
 0x15d   : > { %v1815_v14 = vpack.c.bf16 %v1039_v8, %v1039_v8  ;;  %v1040_v15 = vmax.f32 %v743_v9, 0.0  ;;  %v1859_v16 = vpack.c.bf16 %v1083_v11, %v1083_v11  ;;  %v1084_v17 = vmax.f32 %v919_v12, 0.0 }
 0x15f   : > { %1466 = vst.msk [vmem:[%s2564_s24 + $0x38] sm:$0xf] %vm1451_vm4, %v1815_v14  ;;  %v1816_v18 = vpack.c.bf16 %v1040_v15, %v1040_v15  ;;  %1510 = vst.msk [vmem:[%s2564_s24 + $0xe8] sm:$0xf] %vm1451_vm4, %v1859_v16  ;;  %v1860_v19 = vpack.c.bf16 %v1084_v17, %v1084_v17 }
 0x160   : > { %v747_v20 = vpop.f32.mrb[32].mxu0  ;;  %v923_v21 = vpop.f32.mrb[32].mxu1 }
 0x161   : > { %1467 = vst.msk [vmem:[%s2564_s24 + $0x3c] sm:$0xf] %vm1451_vm4, %v1816_v18  ;;  %v748_v22 = vadd.f32 %v2553_v49, %v747_v20  ;;  %v1966_v23 = vpop.f32.mrb[33].mxu0  ;;  %1511 = vst.msk [vmem:[%s2564_s24 + $0xec] sm:$0xf] %vm1451_vm4, %v1860_v19  ;;  %v924_v24 = vadd.f32 %v2553_v49, %v923_v21  ;;  %v2054_v25 = vpop.f32.mrb[33].mxu1 }
 0x162   : > { %v750_v26 = vpop.f32.mrb[34].mxu0  ;;  %v926_v27 = vpop.f32.mrb[34].mxu1 }
 0x163   : > { %v1041_v28 = vmax.f32 %v748_v22, 0.0  ;;  %v751_v29 = vadd.f32 %v2553_v49, %v750_v26  ;;  %v1967_v30 = vpop.f32.mrb[35].mxu0  ;;  %v1085_v31 = vmax.f32 %v924_v24, 0.0  ;;  %v927_v32 = vadd.f32 %v2553_v49, %v926_v27  ;;  %v2055_v33 = vpop.f32.mrb[35].mxu1 }
 0x165   : > { %v1817_v34 = vpack.c.bf16 %v1041_v28, %v1041_v28  ;;  %v1042_v35 = vmax.f32 %v751_v29, 0.0  ;;  %v1861_v36 = vpack.c.bf16 %v1085_v31, %v1085_v31  ;;  %v1086_v37 = vmax.f32 %v927_v32, 0.0 }
 0x167   : > { %1468 = vst.msk [vmem:[%s2564_s24 + $0x40] sm:$0xf] %vm1451_vm4, %v1817_v34  ;;  %v1818_v38 = vpack.c.bf16 %v1042_v35, %v1042_v35  ;;  %1512 = vst.msk [vmem:[%s2564_s24 + $0xf0] sm:$0xf] %vm1451_vm4, %v1861_v36  ;;  %v1862_v39 = vpack.c.bf16 %v1086_v37, %v1086_v37 }
 0x168   : > { %v755_v40 = vpop.f32.mrb[36].mxu0  ;;  %v931_v41 = vpop.f32.mrb[36].mxu1 }
 0x169   : > { %1469 = vst.msk [vmem:[%s2564_s24 + $0x44] sm:$0xf] %vm1451_vm4, %v1818_v38  ;;  %v756_v42 = vadd.f32 %v2553_v49, %v755_v40  ;;  %v1970_v43 = vpop.f32.mrb[37].mxu0  ;;  %1513 = vst.msk [vmem:[%s2564_s24 + $0xf4] sm:$0xf] %vm1451_vm4, %v1862_v39  ;;  %v932_v44 = vadd.f32 %v2553_v49, %v931_v41  ;;  %v2058_v45 = vpop.f32.mrb[37].mxu1 }
 0x16a   : > { %v758_v46 = vpop.f32.mrb[38].mxu0  ;;  %v934_v47 = vpop.f32.mrb[38].mxu1 }
 0x16b   : > { %v1043_v48 = vmax.f32 %v756_v42, 0.0  ;;  %v759_v50 = vadd.f32 %v2553_v49, %v758_v46  ;;  %v1971_v51 = vpop.f32.mrb[39].mxu0  ;;  %v1087_v52 = vmax.f32 %v932_v44, 0.0  ;;  %v935_v53 = vadd.f32 %v2553_v49, %v934_v47  ;;  %v2059_v54 = vpop.f32.mrb[39].mxu1 }
 0x16d   : > { %v1819_v55 = vpack.c.bf16 %v1043_v48, %v1043_v48  ;;  %v1044_v56 = vmax.f32 %v759_v50, 0.0  ;;  %v1863_v57 = vpack.c.bf16 %v1087_v52, %v1087_v52  ;;  %v1088_v58 = vmax.f32 %v935_v53, 0.0 }
 0x16f   : > { %1470 = vst.msk [vmem:[%s2564_s24 + $0x48] sm:$0xf] %vm1451_vm4, %v1819_v55  ;;  %v1820_v59 = vpack.c.bf16 %v1044_v56, %v1044_v56  ;;  %1514 = vst.msk [vmem:[%s2564_s24 + $0xf8] sm:$0xf] %vm1451_vm4, %v1863_v57  ;;  %v1864_v60 = vpack.c.bf16 %v1088_v58, %v1088_v58 }
 0x170   : > { %v763_v61 = vpop.f32.mrb[40].mxu0  ;;  %v939_v62 = vpop.f32.mrb[40].mxu1 }
 0x171   : > { %1471 = vst.msk [vmem:[%s2564_s24 + $0x4c] sm:$0xf] %vm1451_vm4, %v1820_v59  ;;  %v764_v63 = vadd.f32 %v2553_v49, %v763_v61  ;;  %v1974_v0 = vpop.f32.mrb[41].mxu0  ;;  %1515 = vst.msk [vmem:[%s2564_s24 + $0xfc] sm:$0xf] %vm1451_vm4, %v1864_v60  ;;  %v940_v1 = vadd.f32 %v2553_v49, %v939_v62  ;;  %v2062_v2 = vpop.f32.mrb[41].mxu1 }
 0x172   : > { %v766_v3 = vpop.f32.mrb[42].mxu0  ;;  %v942_v4 = vpop.f32.mrb[42].mxu1 }
 0x173   : > { %v1045_v5 = vmax.f32 %v764_v63, 0.0  ;;  %v767_v6 = vadd.f32 %v2553_v49, %v766_v3  ;;  %v1975_v7 = vpop.f32.mrb[43].mxu0  ;;  %v1089_v8 = vmax.f32 %v940_v1, 0.0  ;;  %v943_v9 = vadd.f32 %v2553_v49, %v942_v4  ;;  %v2063_v10 = vpop.f32.mrb[43].mxu1 }
 0x175   : > { %v1821_v11 = vpack.c.bf16 %v1045_v5, %v1045_v5  ;;  %v1046_v12 = vmax.f32 %v767_v6, 0.0  ;;  %v1865_v13 = vpack.c.bf16 %v1089_v8, %v1089_v8  ;;  %v1090_v14 = vmax.f32 %v943_v9, 0.0 }
 0x177   : > { %1472 = vst.msk [vmem:[%s2564_s24 + $0x50] sm:$0xf] %vm1451_vm4, %v1821_v11  ;;  %v1822_v15 = vpack.c.bf16 %v1046_v12, %v1046_v12  ;;  %1516 = vst.msk [vmem:[%s2564_s24 + $0x100] sm:$0xf] %vm1451_vm4, %v1865_v13  ;;  %v1866_v16 = vpack.c.bf16 %v1090_v14, %v1090_v14 }
 0x178   : > { %v771_v17 = vpop.f32.mrb[44].mxu0  ;;  %v947_v18 = vpop.f32.mrb[44].mxu1 }
 0x179   : > { %1473 = vst.msk [vmem:[%s2564_s24 + $0x54] sm:$0xf] %vm1451_vm4, %v1822_v15  ;;  %v772_v19 = vadd.f32 %v2553_v49, %v771_v17  ;;  %v1978_v20 = vpop.f32.mrb[45].mxu0  ;;  %1517 = vst.msk [vmem:[%s2564_s24 + $0x104] sm:$0xf] %vm1451_vm4, %v1866_v16  ;;  %v948_v21 = vadd.f32 %v2553_v49, %v947_v18  ;;  %v2066_v22 = vpop.f32.mrb[45].mxu1 }
 0x17a   : > { %v774_v23 = vpop.f32.mrb[46].mxu0  ;;  %v950_v24 = vpop.f32.mrb[46].mxu1 }
 0x17b   : > { %v1047_v25 = vmax.f32 %v772_v19, 0.0  ;;  %v775_v26 = vadd.f32 %v2553_v49, %v774_v23  ;;  %v1979_v27 = vpop.f32.mrb[47].mxu0  ;;  %v1091_v28 = vmax.f32 %v948_v21, 0.0  ;;  %v951_v29 = vadd.f32 %v2553_v49, %v950_v24  ;;  %v2067_v30 = vpop.f32.mrb[47].mxu1 }
 0x17d   : > { %v1823_v31 = vpack.c.bf16 %v1047_v25, %v1047_v25  ;;  %v1048_v32 = vmax.f32 %v775_v26, 0.0  ;;  %v1867_v33 = vpack.c.bf16 %v1091_v28, %v1091_v28  ;;  %v1092_v34 = vmax.f32 %v951_v29, 0.0 }
 0x17f   : > { %1474 = vst.msk [vmem:[%s2564_s24 + $0x58] sm:$0xf] %vm1451_vm4, %v1823_v31  ;;  %v1824_v35 = vpack.c.bf16 %v1048_v32, %v1048_v32  ;;  %1518 = vst.msk [vmem:[%s2564_s24 + $0x108] sm:$0xf] %vm1451_vm4, %v1867_v33  ;;  %v1868_v36 = vpack.c.bf16 %v1092_v34, %v1092_v34 }
 0x180   : > { %v779_v37 = vpop.f32.mrb[48].mxu0  ;;  %v955_v38 = vpop.f32.mrb[48].mxu1 }
 0x181   : > { %1475 = vst.msk [vmem:[%s2564_s24 + $0x5c] sm:$0xf] %vm1451_vm4, %v1824_v35  ;;  %v780_v39 = vadd.f32 %v2553_v49, %v779_v37  ;;  %v1982_v40 = vpop.f32.mrb[49].mxu0  ;;  %1519 = vst.msk [vmem:[%s2564_s24 + $0x10c] sm:$0xf] %vm1451_vm4, %v1868_v36  ;;  %v956_v41 = vadd.f32 %v2553_v49, %v955_v38  ;;  %v2070_v42 = vpop.f32.mrb[49].mxu1 }
 0x182   : > { %v782_v43 = vpop.f32.mrb[50].mxu0  ;;  %v958_v44 = vpop.f32.mrb[50].mxu1 }
 0x183   : > { %v1049_v45 = vmax.f32 %v780_v39, 0.0  ;;  %v783_v46 = vadd.f32 %v2553_v49, %v782_v43  ;;  %v1983_v47 = vpop.f32.mrb[51].mxu0  ;;  %v1093_v48 = vmax.f32 %v956_v41, 0.0  ;;  %v959_v50 = vadd.f32 %v2553_v49, %v958_v44  ;;  %v2071_v51 = vpop.f32.mrb[51].mxu1 }
 0x185   : > { %v1825_v52 = vpack.c.bf16 %v1049_v45, %v1049_v45  ;;  %v1050_v53 = vmax.f32 %v783_v46, 0.0  ;;  %v1869_v54 = vpack.c.bf16 %v1093_v48, %v1093_v48  ;;  %v1094_v55 = vmax.f32 %v959_v50, 0.0 }
 0x187   : > { %1476 = vst.msk [vmem:[%s2564_s24 + $0x60] sm:$0xf] %vm1451_vm4, %v1825_v52  ;;  %v1826_v56 = vpack.c.bf16 %v1050_v53, %v1050_v53  ;;  %1520 = vst.msk [vmem:[%s2564_s24 + $0x110] sm:$0xf] %vm1451_vm4, %v1869_v54  ;;  %v1870_v57 = vpack.c.bf16 %v1094_v55, %v1094_v55 }
 0x188   : > { %v787_v58 = vpop.f32.mrb[52].mxu0  ;;  %v963_v59 = vpop.f32.mrb[52].mxu1 }
 0x189   : > { %1477 = vst.msk [vmem:[%s2564_s24 + $0x64] sm:$0xf] %vm1451_vm4, %v1826_v56  ;;  %v788_v60 = vadd.f32 %v2553_v49, %v787_v58  ;;  %v1986_v61 = vpop.f32.mrb[53].mxu0  ;;  %1521 = vst.msk [vmem:[%s2564_s24 + $0x114] sm:$0xf] %vm1451_vm4, %v1870_v57  ;;  %v964_v62 = vadd.f32 %v2553_v49, %v963_v59  ;;  %v2074_v63 = vpop.f32.mrb[53].mxu1 }
 0x18a   : > { %v790_v0 = vpop.f32.mrb[54].mxu0  ;;  %v966_v1 = vpop.f32.mrb[54].mxu1 }
 0x18b   : > { %v1051_v2 = vmax.f32 %v788_v60, 0.0  ;;  %v791_v3 = vadd.f32 %v2553_v49, %v790_v0  ;;  %v1987_v4 = vpop.f32.mrb[55].mxu0  ;;  %v1095_v5 = vmax.f32 %v964_v62, 0.0  ;;  %v967_v6 = vadd.f32 %v2553_v49, %v966_v1  ;;  %v2075_v7 = vpop.f32.mrb[55].mxu1 }
 0x18d   : > { %v1827_v8 = vpack.c.bf16 %v1051_v2, %v1051_v2  ;;  %v1052_v9 = vmax.f32 %v791_v3, 0.0  ;;  %v1871_v10 = vpack.c.bf16 %v1095_v5, %v1095_v5  ;;  %v1096_v11 = vmax.f32 %v967_v6, 0.0 }
 0x18f   : > { %1478 = vst.msk [vmem:[%s2564_s24 + $0x68] sm:$0xf] %vm1451_vm4, %v1827_v8  ;;  %v1828_v12 = vpack.c.bf16 %v1052_v9, %v1052_v9  ;;  %1522 = vst.msk [vmem:[%s2564_s24 + $0x118] sm:$0xf] %vm1451_vm4, %v1871_v10  ;;  %v1872_v13 = vpack.c.bf16 %v1096_v11, %v1096_v11 }
 0x190   : > { %v795_v14 = vpop.f32.mrb[56].mxu0  ;;  %v971_v15 = vpop.f32.mrb[56].mxu1 }
 0x191   : > { %1479 = vst.msk [vmem:[%s2564_s24 + $0x6c] sm:$0xf] %vm1451_vm4, %v1828_v12  ;;  %v796_v16 = vadd.f32 %v2553_v49, %v795_v14  ;;  %v1990_v17 = vpop.f32.mrb[57].mxu0  ;;  %1523 = vst.msk [vmem:[%s2564_s24 + $0x11c] sm:$0xf] %vm1451_vm4, %v1872_v13  ;;  %v972_v18 = vadd.f32 %v2553_v49, %v971_v15  ;;  %v2078_v19 = vpop.f32.mrb[57].mxu1 }
 0x192   : > { %v798_v20 = vpop.f32.mrb[58].mxu0  ;;  %v974_v21 = vpop.f32.mrb[58].mxu1 }
 0x193   : > { %v1053_v22 = vmax.f32 %v796_v16, 0.0  ;;  %v799_v23 = vadd.f32 %v2553_v49, %v798_v20  ;;  %v1991_v24 = vpop.f32.mrb[59].mxu0  ;;  %v1097_v25 = vmax.f32 %v972_v18, 0.0  ;;  %v975_v26 = vadd.f32 %v2553_v49, %v974_v21  ;;  %v2079_v27 = vpop.f32.mrb[59].mxu1 }
 0x195   : > { %v1829_v28 = vpack.c.bf16 %v1053_v22, %v1053_v22  ;;  %v1054_v29 = vmax.f32 %v799_v23, 0.0  ;;  %v1873_v30 = vpack.c.bf16 %v1097_v25, %v1097_v25  ;;  %v1098_v31 = vmax.f32 %v975_v26, 0.0 }
 0x197   : > { %1480 = vst.msk [vmem:[%s2564_s24 + $0x70] sm:$0xf] %vm1451_vm4, %v1829_v28  ;;  %v1830_v32 = vpack.c.bf16 %v1054_v29, %v1054_v29  ;;  %1524 = vst.msk [vmem:[%s2564_s24 + $0x120] sm:$0xf] %vm1451_vm4, %v1873_v30  ;;  %v1874_v33 = vpack.c.bf16 %v1098_v31, %v1098_v31 }
 0x198   : > { %v803_v34 = vpop.f32.mrb[60].mxu0  ;;  %v979_v35 = vpop.f32.mrb[60].mxu1 }
 0x199   : > { %1481 = vst.msk [vmem:[%s2564_s24 + $0x74] sm:$0xf] %vm1451_vm4, %v1830_v32  ;;  %v804_v36 = vadd.f32 %v2553_v49, %v803_v34  ;;  %v1994_v37 = vpop.f32.mrb[61].mxu0  ;;  %1525 = vst.msk [vmem:[%s2564_s24 + $0x124] sm:$0xf] %vm1451_vm4, %v1874_v33  ;;  %v980_v38 = vadd.f32 %v2553_v49, %v979_v35  ;;  %v2082_v39 = vpop.f32.mrb[61].mxu1 }
 0x19a   : > { %v806_v40 = vpop.f32.mrb[62].mxu0  ;;  %v982_v41 = vpop.f32.mrb[62].mxu1 }
 0x19b   : > { %v1055_v42 = vmax.f32 %v804_v36, 0.0  ;;  %v807_v43 = vadd.f32 %v2553_v49, %v806_v40  ;;  %v1995_v44 = vpop.f32.mrb[63].mxu0  ;;  %v1099_v45 = vmax.f32 %v980_v38, 0.0  ;;  %v983_v46 = vadd.f32 %v2553_v49, %v982_v41  ;;  %v2083_v47 = vpop.f32.mrb[63].mxu1 }
 0x19d   : > { %v1831_v48 = vpack.c.bf16 %v1055_v42, %v1055_v42  ;;  %v1056_v50 = vmax.f32 %v807_v43, 0.0  ;;  %v1875_v51 = vpack.c.bf16 %v1099_v45, %v1099_v45  ;;  %v1100_v52 = vmax.f32 %v983_v46, 0.0 }
 0x19f   : > { %1482 = vst.msk [vmem:[%s2564_s24 + $0x78] sm:$0xf] %vm1451_vm4, %v1831_v48  ;;  %v1832_v53 = vpack.c.bf16 %v1056_v50, %v1056_v50  ;;  %1526 = vst.msk [vmem:[%s2564_s24 + $0x128] sm:$0xf] %vm1451_vm4, %v1875_v51  ;;  %v1876_v54 = vpack.c.bf16 %v1100_v52, %v1100_v52 }
 0x1a0   : > { %v811_v55 = vpop.f32.mrb[64].mxu0  ;;  %v987_v56 = vpop.f32.mrb[64].mxu1 }
 0x1a1   : > { %1483 = vst.msk [vmem:[%s2564_s24 + $0x7c] sm:$0xf] %vm1451_vm4, %v1832_v53  ;;  %v812_v57 = vadd.f32 %v2553_v49, %v811_v55  ;;  %v1998_v58 = vpop.f32.mrb[65].mxu0  ;;  %1527 = vst.msk [vmem:[%s2564_s24 + $0x12c] sm:$0xf] %vm1451_vm4, %v1876_v54  ;;  %v988_v59 = vadd.f32 %v2553_v49, %v987_v56  ;;  %v2086_v60 = vpop.f32.mrb[65].mxu1 }
 0x1a2   : > { %v814_v61 = vpop.f32.mrb[66].mxu0  ;;  %v990_v62 = vpop.f32.mrb[66].mxu1 }
 0x1a3   : > { %v1057_v63 = vmax.f32 %v812_v57, 0.0  ;;  %v815_v0 = vadd.f32 %v2553_v49, %v814_v61  ;;  %v1999_v1 = vpop.f32.mrb[67].mxu0  ;;  %v1101_v2 = vmax.f32 %v988_v59, 0.0  ;;  %v991_v3 = vadd.f32 %v2553_v49, %v990_v62  ;;  %v2087_v4 = vpop.f32.mrb[67].mxu1 }
 0x1a5   : > { %v1833_v5 = vpack.c.bf16 %v1057_v63, %v1057_v63  ;;  %v1058_v6 = vmax.f32 %v815_v0, 0.0  ;;  %v1877_v7 = vpack.c.bf16 %v1101_v2, %v1101_v2  ;;  %v1102_v8 = vmax.f32 %v991_v3, 0.0 }
 0x1a7   : > { %1484 = vst.msk [vmem:[%s2564_s24 + $0x80] sm:$0xf] %vm1451_vm4, %v1833_v5  ;;  %v1834_v9 = vpack.c.bf16 %v1058_v6, %v1058_v6  ;;  %1528 = vst.msk [vmem:[%s2564_s24 + $0x130] sm:$0xf] %vm1451_vm4, %v1877_v7  ;;  %v1878_v10 = vpack.c.bf16 %v1102_v8, %v1102_v8 }
 0x1a8   : > { %v819_v11 = vpop.f32.mrb[68].mxu0  ;;  %v995_v12 = vpop.f32.mrb[68].mxu1 }
 0x1a9   : > { %1485 = vst.msk [vmem:[%s2564_s24 + $0x84] sm:$0xf] %vm1451_vm4, %v1834_v9  ;;  %v820_v13 = vadd.f32 %v2553_v49, %v819_v11  ;;  %v2002_v14 = vpop.f32.mrb[69].mxu0  ;;  %1529 = vst.msk [vmem:[%s2564_s24 + $0x134] sm:$0xf] %vm1451_vm4, %v1878_v10  ;;  %v996_v15 = vadd.f32 %v2553_v49, %v995_v12  ;;  %v2090_v16 = vpop.f32.mrb[69].mxu1 }
 0x1aa   : > { %v822_v17 = vpop.f32.mrb[70].mxu0  ;;  %v998_v18 = vpop.f32.mrb[70].mxu1 }
 0x1ab   : > { %v1059_v19 = vmax.f32 %v820_v13, 0.0  ;;  %v823_v20 = vadd.f32 %v2553_v49, %v822_v17  ;;  %v2003_v21 = vpop.f32.mrb[71].mxu0  ;;  %v1103_v22 = vmax.f32 %v996_v15, 0.0  ;;  %v999_v23 = vadd.f32 %v2553_v49, %v998_v18  ;;  %v2091_v24 = vpop.f32.mrb[71].mxu1 }
 0x1ad   : > { %v1835_v25 = vpack.c.bf16 %v1059_v19, %v1059_v19  ;;  %v1060_v26 = vmax.f32 %v823_v20, 0.0  ;;  %v1879_v27 = vpack.c.bf16 %v1103_v22, %v1103_v22  ;;  %v1104_v28 = vmax.f32 %v999_v23, 0.0 }
 0x1af   : > { %1486 = vst.msk [vmem:[%s2564_s24 + $0x88] sm:$0xf] %vm1451_vm4, %v1835_v25  ;;  %v1836_v29 = vpack.c.bf16 %v1060_v26, %v1060_v26  ;;  %1530 = vst.msk [vmem:[%s2564_s24 + $0x138] sm:$0xf] %vm1451_vm4, %v1879_v27  ;;  %v1880_v30 = vpack.c.bf16 %v1104_v28, %v1104_v28 }
 0x1b0   : > { %v827_v31 = vpop.f32.mrb[72].mxu0  ;;  %v1003_v32 = vpop.f32.mrb[72].mxu1 }
 0x1b1   : > { %1487 = vst.msk [vmem:[%s2564_s24 + $0x8c] sm:$0xf] %vm1451_vm4, %v1836_v29  ;;  %v828_v33 = vadd.f32 %v2553_v49, %v827_v31  ;;  %v2006_v34 = vpop.f32.mrb[73].mxu0  ;;  %1531 = vst.msk [vmem:[%s2564_s24 + $0x13c] sm:$0xf] %vm1451_vm4, %v1880_v30  ;;  %v1004_v35 = vadd.f32 %v2553_v49, %v1003_v32  ;;  %v2094_v36 = vpop.f32.mrb[73].mxu1 }
 0x1b2   : > { %v830_v37 = vpop.f32.mrb[74].mxu0  ;;  %v1006_v38 = vpop.f32.mrb[74].mxu1 }
 0x1b3   : > { %v1061_v39 = vmax.f32 %v828_v33, 0.0  ;;  %v831_v40 = vadd.f32 %v2553_v49, %v830_v37  ;;  %v2007_v41 = vpop.f32.mrb[75].mxu0  ;;  %v1105_v42 = vmax.f32 %v1004_v35, 0.0  ;;  %v1007_v43 = vadd.f32 %v2553_v49, %v1006_v38  ;;  %v2095_v44 = vpop.f32.mrb[75].mxu1 }
 0x1b5   : > { %v1837_v45 = vpack.c.bf16 %v1061_v39, %v1061_v39  ;;  %v1062_v46 = vmax.f32 %v831_v40, 0.0  ;;  %v1881_v47 = vpack.c.bf16 %v1105_v42, %v1105_v42  ;;  %v1106_v48 = vmax.f32 %v1007_v43, 0.0 }
 0x1b7   : > { %1488 = vst.msk [vmem:[%s2564_s24 + $0x90] sm:$0xf] %vm1451_vm4, %v1837_v45  ;;  %v1838_v50 = vpack.c.bf16 %v1062_v46, %v1062_v46  ;;  %1532 = vst.msk [vmem:[%s2564_s24 + $0x140] sm:$0xf] %vm1451_vm4, %v1881_v47  ;;  %v1882_v51 = vpack.c.bf16 %v1106_v48, %v1106_v48 }
 0x1b8   : > { %v835_v52 = vpop.f32.mrb[76].mxu0  ;;  %v1011_v53 = vpop.f32.mrb[76].mxu1 }
 0x1b9   : > { %1489 = vst.msk [vmem:[%s2564_s24 + $0x94] sm:$0xf] %vm1451_vm4, %v1838_v50  ;;  %v836_v54 = vadd.f32 %v2553_v49, %v835_v52  ;;  %v2010_v55 = vpop.f32.mrb[77].mxu0  ;;  %1533 = vst.msk [vmem:[%s2564_s24 + $0x144] sm:$0xf] %vm1451_vm4, %v1882_v51  ;;  %v1012_v56 = vadd.f32 %v2553_v49, %v1011_v53  ;;  %v2098_v57 = vpop.f32.mrb[77].mxu1 }
 0x1ba   : > { %v838_v58 = vpop.f32.mrb[78].mxu0  ;;  %v1014_v59 = vpop.f32.mrb[78].mxu1 }
 0x1bb   : > { %v1063_v60 = vmax.f32 %v836_v54, 0.0  ;;  %v839_v61 = vadd.f32 %v2553_v49, %v838_v58  ;;  %v2011_v62 = vpop.f32.mrb[79].mxu0  ;;  %v1107_v63 = vmax.f32 %v1012_v56, 0.0  ;;  %v1015_v0 = vadd.f32 %v2553_v49, %v1014_v59  ;;  %v2099_v1 = vpop.f32.mrb[79].mxu1 }
 0x1bd   : > { %v1839_v2 = vpack.c.bf16 %v1063_v60, %v1063_v60  ;;  %v1064_v3 = vmax.f32 %v839_v61, 0.0  ;;  %v1883_v4 = vpack.c.bf16 %v1107_v63, %v1107_v63  ;;  %v1108_v5 = vmax.f32 %v1015_v0, 0.0 }
 0x1bf   : > { %1490 = vst.msk [vmem:[%s2564_s24 + $0x98] sm:$0xf] %vm1451_vm4, %v1839_v2  ;;  %v1840_v6 = vpack.c.bf16 %v1064_v3, %v1064_v3  ;;  %1534 = vst.msk [vmem:[%s2564_s24 + $0x148] sm:$0xf] %vm1451_vm4, %v1883_v4  ;;  %v1884_v7 = vpack.c.bf16 %v1108_v5, %v1108_v5 }
 0x1c0   : > { %v843_v8 = vpop.f32.mrb[80].mxu0  ;;  %v1019_v9 = vpop.f32.mrb[80].mxu1 }
 0x1c1   : > { %1491 = vst.msk [vmem:[%s2564_s24 + $0x9c] sm:$0xf] %vm1451_vm4, %v1840_v6  ;;  %v844_v10 = vadd.f32 %v2553_v49, %v843_v8  ;;  %v2014_v11 = vpop.f32.mrb[81].mxu0  ;;  %1535 = vst.msk [vmem:[%s2564_s24 + $0x14c] sm:$0xf] %vm1451_vm4, %v1884_v7  ;;  %v1020_v12 = vadd.f32 %v2553_v49, %v1019_v9  ;;  %v2102_v13 = vpop.f32.mrb[81].mxu1 }
 0x1c2   : > { %v846_v14 = vpop.f32.mrb[82].mxu0  ;;  %v1022_v15 = vpop.f32.mrb[82].mxu1 }
 0x1c3   : > { %v1065_v16 = vmax.f32 %v844_v10, 0.0  ;;  %v847_v17 = vadd.f32 %v2553_v49, %v846_v14  ;;  %v2015_v18 = vpop.f32.mrb[83].mxu0  ;;  %v1109_v19 = vmax.f32 %v1020_v12, 0.0  ;;  %v2103_v20 = vpop.f32.mrb[83].mxu1 }
 0x1c5   : > { %v1841_v21 = vpack.c.bf16 %v1065_v16, %v1065_v16  ;;  %v1066_v22 = vmax.f32 %v847_v17, 0.0  ;;  %v1885_v23 = vpack.c.bf16 %v1109_v19, %v1109_v19 }
 0x1c7   : > { %1492 = vst.msk [vmem:[%s2564_s24 + $0xa0] sm:$0xf] %vm1451_vm4, %v1841_v21  ;;  %v1842_v24 = vpack.c.bf16 %v1066_v22, %v1066_v22 }
 0x1c8   : > { %1537 = vst.msk [vmem:[%s2564_s24 + $0x150] sm:$0x3] %vm1536_vm5, %v1885_v23  ;;  %v851_v25 = vpop.f32.mrb[84].mxu0 }
 0x1c9   : > { %1493 = vst.msk [vmem:[%s2564_s24 + $0xa4] sm:$0xf] %vm1451_vm4, %v1842_v24  ;;  %v852_v26 = vadd.f32 %v2553_v49, %v851_v25  ;;  %v2018_v27 = vpop.f32.mrb[85].mxu0 }
 0x1ca   : > { %v854_v28 = vpop.f32.mrb[86].mxu0 }
 0x1cb   : > { %v1067_v29 = vmax.f32 %v852_v26, 0.0  ;;  %v855_v30 = vadd.f32 %v2553_v49, %v854_v28  ;;  %v2019_v31 = vpop.f32.mrb[87].mxu0 }
 0x1cd   : > { %v1843_v32 = vpack.c.bf16 %v1067_v29, %v1067_v29  ;;  %v1068_v33 = vmax.f32 %v855_v30, 0.0 }
 0x1cf   : > { %1494 = vst.msk [vmem:[%s2564_s24 + $0xa8] sm:$0xf] %vm1451_vm4, %v1843_v32  ;;  %v1844_v34 = vpack.c.bf16 %v1068_v33, %v1068_v33 }
 0x1d1   : > { %1495 = vst.msk [vmem:[%s2564_s24 + $0xac] sm:$0xf] %vm1451_vm4, %v1844_v34 }
 0x1d2 PF: > { %s15_s12 = sadd.s32 1, %s2255_s12  }
 0x1d3   : > { %p12_p9 = scmp.ge.s32.totalorder %s15_s12, 4  }
 0x1d5   :  { %14 = sbr.rel (!%p12_p9) target bundleno = 2 (0x2), region = 71 }
 0x1dc   :  { %1559 = vsyncpa [#allocation3], 1 }
 0x1dd   :  { %1561 = vsyncpa [#allocation3 + $0x1], 1 }
 0x1de   :  { %1562 = vsyncpa [#allocation5], 1 }

// kernel: net_forward.4
= control target key start
LH: loop header
LB: loop body
LE: loop exit
PB: predicated region body
PF: predicated region fallthrough
CT: control target
= control target key end

     0   :  { %s2514_s12 = smov 0   ;;  %s3212_s0 = inlined_call_operand.vmem [shape: bf16[2,576,288], index: 0, kind: input, shape index: {}]   ;;  %s3213_s1 = inlined_call_operand.vmem [shape: bf16[288,64], index: 1, kind: input, shape index: {}]   ;;  %s3214_s2 = inlined_call_operand.vmem [shape: f32[1,64], index: 2, kind: input, shape index: {}]   ;;  %s3215_s3 = inlined_call_operand.vmem [shape: bf16[2,144,64], index: 3, kind: output, shape index: {}]  }
   0x1 LB: > { %s1958_s13 = sadd.s32 4294967295, %s2491_s12   ;;  %p1962_p0 = scmp.ge.s32.totalorder %s2491_s12, 1  ;;  %s2491_s12 = sphi %s2514_s12, %s13_s12  }
   0x2   : > { %p137_p1 = scmp.lt.s32.totalorder %s2491_s12, 3 }
   0x4   : > { %p138_p2 = pnand %p1962_p0, %p137_p1 }
   0x6   : > { %141 = sbr.rel (%p138_p2) target bundleno = 511 (0x1ff), region = 32 }
   0xd   : > { %v2323_v0 = vld [vmem:[%s3213_s1] sm:$0xff]   ;;  %v2493_v1 = vmov 0   ;;  %v2324_v2 = vld [vmem:[%s3213_s1 + $0x8] sm:$0xff]   ;;  %p161_p3 = scmp.lt.s32.totalorder %s1958_s13, 1  ;;  %v2325_v3 = vld [vmem:[%s3213_s1 + $0x10] sm:$0xff]   ;;  %vm1007_vm0 = vcmask 261120  }
   0xe   : > { %1116 = vmatprep.subr.bf16.mxu0 %v2493_v1  ;;  %2280 = vmatprep.subr.bf16.mxu1 %v2493_v1  ;;  %v2326_v4 = vld [vmem:[%s3213_s1 + $0x18] sm:$0xff]   ;;  %v2327_v5 = vld [vmem:[%s3213_s1 + $0x20] sm:$0xff]   ;;  %v2328_v7 = vld [vmem:[%s3213_s1 + $0x28] sm:$0xff]   ;;  %vm1884_vm1 = vcmask 519168  }
   0xf   : > { %1117 = vmatpush1.bf16.msra.mxu0 %v2323_v0  ;;  %2296 = vmatpush1.bf16.msra.mxu1 %v2323_v0  ;;  %s3295_s13 = smov (!%p161_p3, %s1958_s13), 1  ;;  %v2329_v9 = vld [vmem:[%s3213_s1 + $0x30] sm:$0xff]   ;;  %v2330_v10 = vld [vmem:[%s3213_s1 + $0x38] sm:$0xff]   ;;  %v2331_v11 = vld [vmem:[%s3213_s1 + $0x40] sm:$0xff]  }
  0x10   : > { %1118 = vmatprep.subr.bf16.mxu0 %v2493_v1  ;;  %2281 = vmatprep.subr.bf16.mxu1 %v2493_v1  ;;  %s2312_s22 = smul.u32 864, %s3295_s13  ;;  %v2332_v12 = vld [vmem:[%s3213_s1 + $0x48] sm:$0xff]   ;;  %v2333_v13 = vld [vmem:[%s3213_s1 + $0x50] sm:$0xff]   ;;  %v2334_v14 = vld [vmem:[%s3213_s1 + $0x58] sm:$0xff]  }
  0x11   : > { %v2335_v15 = vld [vmem:[%s3213_s1 + $0x60] sm:$0xff]   ;;  %v2336_v16 = vld [vmem:[%s3213_s1 + $0x68] sm:$0xff]   ;;  %v2337_v17 = vld [vmem:[%s3213_s1 + $0x70] sm:$0xff]   ;;  %s2313_s4 = smul.u32 72, %s3295_s13 }
  0x12   : > { %s2551_s27 = scalar_lea.vmem %s3212_s0, %s2312_s22  ;;  %v2338_v18 = vld [vmem:[%s3213_s1 + $0x78] sm:$0xff]   ;;  %v2345_v19 = vld [vmem:[%s3213_s1 + $0x80] sm:$0xff]   ;;  %v2370_v24 = vld [vmem:[%s3213_s1 + $0x88] sm:$0xff]  }
  0x13   : > { %1119 = vmatpush1.bf16.msra.mxu0 %v2324_v2  ;;  %2297 = vmatpush1.bf16.msra.mxu1 %v2324_v2  ;;  %v2341_v6 = vld [vmem:[%s2551_s27 + $0x4] ss:$12 sps:$4 sm:$0xff]   ;;  %v2344_v8 = vld [vmem:[%s2551_s27 + $0x28c] ss:$12 sps:$4 sm:$0xff]   ;;  %v2342_v21 = vld [vmem:[%s2551_s27 + $0x288] ss:$12 sps:$4 sm:$0xff]   ;;  %s3058_s6 = scalar_lea.vmem %s3215_s3, %s2313_s4 }
  0x14   : > { %1120 = vmatprep.subr.bf16.mxu0 %v2493_v1  ;;  %2282 = vmatprep.subr.bf16.mxu1 %v2493_v1  ;;  %v2339_v20 = vld [vmem:[%s2551_s27] ss:$12 sps:$4 sm:$0xff]   ;;  %v2346_v22 = vld [vmem:[%s2551_s27 + $0x1c] ss:$12 sps:$4 sm:$0xff]   ;;  %v2348_v23 = vld [vmem:[%s2551_s27 + $0x2a4] ss:$12 sps:$4 sm:$0xff]  }
  0x15   : > { %1148 = vmatprep.mubr.bf16.mxu0 %v2341_v6  ;;  %1364 = vmatprep.mubr.bf16.mxu1 %v2344_v8  ;;  %v2350_v25 = vld [vmem:[%s2551_s27 + $0x18] ss:$12 sps:$4 sm:$0xff]   ;;  %v2351_v26 = vld [vmem:[%s2551_s27 + $0x2a0] ss:$12 sps:$4 sm:$0xff]   ;;  %v2354_v28 = vld [vmem:[%s2551_s27 + $0x2bc] ss:$12 sps:$4 sm:$0xff]  }
  0x16   : > { %v2352_v27 = vld [vmem:[%s2551_s27 + $0x34] ss:$12 sps:$4 sm:$0xff]   ;;  %v2356_v29 = vld [vmem:[%s2551_s27 + $0x30] ss:$12 sps:$4 sm:$0xff]   ;;  %v2357_v30 = vld [vmem:[%s2551_s27 + $0x2b8] ss:$12 sps:$4 sm:$0xff]  }
  0x17   : > { %1121 = vmatpush1.bf16.msra.mxu0 %v2325_v3  ;;  %2298 = vmatpush1.bf16.msra.mxu1 %v2325_v3  ;;  %v2358_v31 = vld [vmem:[%s2551_s27 + $0x4c] ss:$12 sps:$4 sm:$0xff]   ;;  %v2360_v32 = vld [vmem:[%s2551_s27 + $0x2d4] ss:$12 sps:$4 sm:$0xff]   ;;  %v2363_v34 = vld [vmem:[%s2551_s27 + $0x2d0] ss:$12 sps:$4 sm:$0xff]  }
  0x18   : > { %1122 = vmatprep.subr.bf16.mxu0 %v2493_v1  ;;  %2283 = vmatprep.subr.bf16.mxu1 %v2493_v1  ;;  %v2362_v33 = vld [vmem:[%s2551_s27 + $0x48] ss:$12 sps:$4 sm:$0xff]   ;;  %v2364_v35 = vld [vmem:[%s2551_s27 + $0x64] ss:$12 sps:$4 sm:$0xff]   ;;  %v2366_v36 = vld [vmem:[%s2551_s27 + $0x2ec] ss:$12 sps:$4 sm:$0xff]  }
  0x19   : > { %v2368_v37 = vld [vmem:[%s2551_s27 + $0x60] ss:$12 sps:$4 sm:$0xff]   ;;  %v2369_v38 = vld [vmem:[%s2551_s27 + $0x2e8] ss:$12 sps:$4 sm:$0xff]   ;;  %v2373_v40 = vld [vmem:[%s2551_s27 + $0x304] ss:$12 sps:$4 sm:$0xff]  }
  0x1a   : > { %v2371_v39 = vld [vmem:[%s2551_s27 + $0x7c] ss:$12 sps:$4 sm:$0xff]   ;;  %v2375_v41 = vld [vmem:[%s2551_s27 + $0x78] ss:$12 sps:$4 sm:$0xff]   ;;  %v2376_v42 = vld [vmem:[%s2551_s27 + $0x300] ss:$12 sps:$4 sm:$0xff]  }
  0x1b   : > { %1123 = vmatpush1.bf16.msra.mxu0 %v2326_v4  ;;  %2299 = vmatpush1.bf16.msra.mxu1 %v2326_v4  ;;  %v2377_v43 = vld [vmem:[%s2551_s27 + $0x94] ss:$12 sps:$4 sm:$0xff]   ;;  %v2379_v44 = vld [vmem:[%s2551_s27 + $0x31c] ss:$12 sps:$4 sm:$0xff]   ;;  %v2382_v46 = vld [vmem:[%s2551_s27 + $0x318] ss:$12 sps:$4 sm:$0xff]  }
  0x1c   : > { %1124 = vmatprep.subr.bf16.mxu0 %v2493_v1  ;;  %2284 = vmatprep.subr.bf16.mxu1 %v2493_v1  ;;  %v2381_v45 = vld [vmem:[%s2551_s27 + $0x90] ss:$12 sps:$4 sm:$0xff]   ;;  %v2383_v47 = vld [vmem:[%s2551_s27 + $0xac] ss:$12 sps:$4 sm:$0xff]   ;;  %v2385_v48 = vld [vmem:[%s2551_s27 + $0x334] ss:$12 sps:$4 sm:$0xff]  }
  0x1d   : > { %v2387_v49 = vld [vmem:[%s2551_s27 + $0xa8] ss:$12 sps:$4 sm:$0xff]   ;;  %v2388_v50 = vld [vmem:[%s2551_s27 + $0x330] ss:$12 sps:$4 sm:$0xff]   ;;  %v2391_v52 = vld [vmem:[%s2551_s27 + $0x34c] ss:$12 sps:$4 sm:$0xff]  }
  0x1e   : > { %v2389_v51 = vld [vmem:[%s2551_s27 + $0xc4] ss:$12 sps:$4 sm:$0xff]   ;;  %v2393_v53 = vld [vmem:[%s2551_s27 + $0xc0] ss:$12 sps:$4 sm:$0xff]   ;;  %v2394_v54 = vld [vmem:[%s2551_s27 + $0x348] ss:$12 sps:$4 sm:$0xff]  }
  0x1f   : > { %1125 = vmatpush1.bf16.msra.mxu0 %v2327_v5  ;;  %2300 = vmatpush1.bf16.msra.mxu1 %v2327_v5  ;;  %v2395_v55 = vld [vmem:[%s2551_s27 + $0xdc] ss:$12 sps:$4 sm:$0xff]   ;;  %v2398_v57 = vld [vmem:[%s2551_s27 + $0xd8] ss:$12 sps:$4 sm:$0xff]   ;;  %v2399_v58 = vld [vmem:[%s2551_s27 + $0x20] ss:$12 sps:$4 sm:$0xff]  }
  0x20   : > { %1126 = vmatprep.subr.bf16.mxu0 %v2493_v1  ;;  %2285 = vmatprep.subr.bf16.mxu1 %v2493_v1  ;;  %v2397_v56 = vld [vmem:[%s2551_s27 + $0x8] ss:$12 sps:$4 sm:$0xff]   ;;  %v2402_v60 = vld [vmem:[%s2551_s27 + $0x38] ss:$12 sps:$4 sm:$0xff]   ;;  %v2403_v61 = vld [vmem:[%s2551_s27 + $0xf0] ss:$12 sps:$4 sm:$0xff]  }
  0x21   : > { %v2400_v59 = vld [vmem:[%s2551_s27 + $0xf4] ss:$12 sps:$4 sm:$0xff]   ;;  %v2404_v62 = vld [vmem:[%s2551_s27 + $0x50] ss:$12 sps:$4 sm:$0xff]   ;;  %v2405_v63 = vld [vmem:[%s2551_s27 + $0x10c] ss:$12 sps:$4 sm:$0xff]  }
  0x22   : > { %v2407_v0 = vld [vmem:[%s2551_s27 + $0x68] ss:$12 sps:$4 sm:$0xff]   ;;  %v2409_v2 = vld [vmem:[%s2551_s27 + $0x80] ss:$12 sps:$4 sm:$0xff]   ;;  %v2410_v3 = vld [vmem:[%s2551_s27 + $0x124] ss:$12 sps:$4 sm:$0xff]  }
  0x23   : > { %1127 = vmatpush1.bf16.msra.mxu0 %v2328_v7  ;;  %2301 = vmatpush1.bf16.msra.mxu1 %v2328_v7  ;;  %v2412_v4 = vld [vmem:[%s2551_s27 + $0x98] ss:$12 sps:$4 sm:$0xff]   ;;  %v2413_v5 = vld [vmem:[%s2551_s27 + $0x120] ss:$12 sps:$4 sm:$0xff]   ;;  %v2414_v6 = vld [vmem:[%s2551_s27 + $0xb0] ss:$12 sps:$4 sm:$0xff]  }
  0x24   : > { %1128 = vmatprep.subr.bf16.mxu0 %v2493_v1  ;;  %2286 = vmatprep.subr.bf16.mxu1 %v2493_v1  ;;  %v2415_v7 = vld [vmem:[%s2551_s27 + $0x13c] ss:$12 sps:$4 sm:$0xff]  }
  0x25   : > { %v2417_v8 = vld [vmem:[%s2551_s27 + $0xc8] ss:$12 sps:$4 sm:$0xff]  }
  0x27   : > { %1129 = vmatpush1.bf16.msra.mxu0 %v2329_v9  ;;  %2302 = vmatpush1.bf16.msra.mxu1 %v2329_v9  ;;  %v2418_v9 = vld [vmem:[%s2551_s27 + $0x138] ss:$12 sps:$4 sm:$0xff]  }
  0x28   : > { %1130 = vmatprep.subr.bf16.mxu0 %v2493_v1  ;;  %2287 = vmatprep.subr.bf16.mxu1 %v2493_v1 }
  0x2b   : > { %1131 = vmatpush1.bf16.msra.mxu0 %v2330_v10  ;;  %2303 = vmatpush1.bf16.msra.mxu1 %v2330_v10  ;;  %v2419_v10 = vld [vmem:[%s2551_s27 + $0xe0] ss:$12 sps:$4 sm:$0xff]  }
  0x2c   : > { %1132 = vmatprep.subr.bf16.mxu0 %v2493_v1  ;;  %2288 = vmatprep.subr.bf16.mxu1 %v2493_v1 }
  0x2f   : > { %1133 = vmatpush1.bf16.msra.mxu0 %v2331_v11  ;;  %2304 = vmatpush1.bf16.msra.mxu1 %v2331_v11  ;;  %v2420_v11 = vld [vmem:[%s2551_s27 + $0x154] ss:$12 sps:$4 sm:$0xff]  }
  0x30   : > { %1134 = vmatprep.subr.bf16.mxu0 %v2493_v1  ;;  %2289 = vmatprep.subr.bf16.mxu1 %v2493_v1 }
  0x33   : > { %1135 = vmatpush1.bf16.msra.mxu0 %v2332_v12  ;;  %2305 = vmatpush1.bf16.msra.mxu1 %v2332_v12  ;;  %v2422_v12 = vld [vmem:[%s2551_s27 + $0xf8] ss:$12 sps:$4 sm:$0xff]  }
  0x34   : > { %1136 = vmatprep.subr.bf16.mxu0 %v2493_v1  ;;  %2290 = vmatprep.subr.bf16.mxu1 %v2493_v1 }
  0x37   : > { %1137 = vmatpush1.bf16.msra.mxu0 %v2333_v13  ;;  %2306 = vmatpush1.bf16.msra.mxu1 %v2333_v13  ;;  %v2423_v13 = vld [vmem:[%s2551_s27 + $0x150] ss:$12 sps:$4 sm:$0xff]  }
  0x38   : > { %1138 = vmatprep.subr.bf16.mxu0 %v2493_v1  ;;  %2291 = vmatprep.subr.bf16.mxu1 %v2493_v1 }
  0x3b   : > { %1139 = vmatpush1.bf16.msra.mxu0 %v2334_v14  ;;  %2307 = vmatpush1.bf16.msra.mxu1 %v2334_v14  ;;  %v2424_v14 = vld [vmem:[%s2551_s27 + $0x110] ss:$12 sps:$4 sm:$0xff]  }
  0x3c   : > { %1140 = vmatprep.subr.bf16.mxu0 %v2493_v1  ;;  %2292 = vmatprep.subr.bf16.mxu1 %v2493_v1 }
  0x3f   : > { %1141 = vmatpush1.bf16.msra.mxu0 %v2335_v15  ;;  %2308 = vmatpush1.bf16.msra.mxu1 %v2335_v15  ;;  %v2425_v15 = vld [vmem:[%s2551_s27 + $0x16c] ss:$12 sps:$4 sm:$0xff]  }
  0x40   : > { %1142 = vmatprep.subr.bf16.mxu0 %v2493_v1  ;;  %2293 = vmatprep.subr.bf16.mxu1 %v2493_v1 }
  0x43   : > { %1143 = vmatpush1.bf16.msra.mxu0 %v2336_v16  ;;  %2309 = vmatpush1.bf16.msra.mxu1 %v2336_v16  ;;  %v2427_v16 = vld [vmem:[%s2551_s27 + $0x128] ss:$12 sps:$4 sm:$0xff]  }
  0x44   : > { %1144 = vmatprep.subr.bf16.mxu0 %v2493_v1  ;;  %2294 = vmatprep.subr.bf16.mxu1 %v2493_v1 }
  0x47   : > { %1145 = vmatpush1.bf16.msra.mxu0 %v2337_v17  ;;  %2310 = vmatpush1.bf16.msra.mxu1 %v2337_v17  ;;  %v2428_v17 = vld [vmem:[%s2551_s27 + $0x168] ss:$12 sps:$4 sm:$0xff]  }
  0x48   : > { %1146 = vmatprep.subr.bf16.mxu0 %v2493_v1  ;;  %2295 = vmatprep.subr.bf16.mxu1 %v2493_v1  ;;  %v2408_v1 = vld [vmem:[%s2551_s27 + $0x108] ss:$12 sps:$4 sm:$0xff]  }
  0x4b   : > { %1147 = vmatpush1.bf16.msra.mxu0 %v2338_v18  ;;  %2311 = vmatpush1.bf16.msra.mxu1 %v2338_v18  ;;  %v2429_v18 = vld [vmem:[%s2551_s27 + $0x140] ss:$12 sps:$4 sm:$0xff]  }
  0x4c   : > { %2204 = vmatprep.subr.bf16.mxu1 %v2345_v19 }
  0x4e   : > { %1149 = vmatmul.mubr.bf16.vlgmr.msra.gmra.mrb[0].mxu0 %v2339_v20  ;;  %1365 = vmatmul.mubr.bf16.vlgmr.msra.gmra.mrb[0].mxu1 %v2342_v21  ;;  %v2432_v20 = vld [vmem:[%s2551_s27 + $0x158] ss:$12 sps:$4 sm:$0xff]   ;;  %v2433_v21 = vld [vmem:[%s2551_s27 + $0x180] ss:$12 sps:$4 sm:$0xff]  }
  0x4f   : > { %2205 = vmatpush3.bf16.msra.mxu1 %v2345_v19  ;;  %1156 = vmatprep.mubr.bf16.mxu0 %v2346_v22  ;;  %v2430_v19 = vld [vmem:[%s2551_s27 + $0x184] ss:$12 sps:$4 sm:$0xff]  }
  0x50   : > { %1372 = vmatprep.mubr.bf16.mxu1 %v2348_v23  ;;  %2206 = vmatprep.subr.bf16.mxu1 %v2370_v24  ;;  %v2434_v22 = vld [vmem:[%s2551_s27 + $0x170] ss:$12 sps:$4 sm:$0xff]  }
  0x51   : > { %v2435_v23 = vld [vmem:[%s2551_s27 + $0x19c] ss:$12 sps:$4 sm:$0xff]  }
  0x53   : > { %2207 = vmatpush3.bf16.msra.mxu1 %v2370_v24  ;;  %v2437_v24 = vld [vmem:[%s2551_s27 + $0x188] ss:$12 sps:$4 sm:$0xff]  }
  0x56   : > { %1157 = vmatmul.mubr.bf16.gmra.mrb[4].mxu0 %v2350_v25  ;;  %1373 = vmatmul.mubr.bf16.gmra.mrb[4].mxu1 %v2351_v26  ;;  %v2438_v25 = vld [vmem:[%s2551_s27 + $0x198] ss:$12 sps:$4 sm:$0xff]   ;;  %v2439_v26 = vld [vmem:[%s2551_s27 + $0x1a0] ss:$12 sps:$4 sm:$0xff]  }
  0x57   : > { %1164 = vmatprep.mubr.bf16.mxu0 %v2352_v27  ;;  %1380 = vmatprep.mubr.bf16.mxu1 %v2354_v28  ;;  %v2440_v27 = vld [vmem:[%s2551_s27 + $0x1b4] ss:$12 sps:$4 sm:$0xff]   ;;  %v2442_v28 = vld [vmem:[%s2551_s27 + $0x1b8] ss:$12 sps:$4 sm:$0xff]  }
  0x5e   : > { %1165 = vmatmul.mubr.bf16.gmra.mrb[8].mxu0 %v2356_v29  ;;  %1381 = vmatmul.mubr.bf16.gmra.mrb[8].mxu1 %v2357_v30  ;;  %v2443_v29 = vld [vmem:[%s2551_s27 + $0x1b0] ss:$12 sps:$4 sm:$0xff]  }
  0x5f   : > { %1172 = vmatprep.mubr.bf16.mxu0 %v2358_v31  ;;  %1388 = vmatprep.mubr.bf16.mxu1 %v2360_v32  ;;  %v2444_v30 = vld [vmem:[%s2551_s27 + $0x1d0] ss:$12 sps:$4 sm:$0xff]   ;;  %v2445_v31 = vld [vmem:[%s2551_s27 + $0x1cc] ss:$12 sps:$4 sm:$0xff]   ;;  %v2447_v32 = vld [vmem:[%s2551_s27 + $0x1e8] ss:$12 sps:$4 sm:$0xff]  }
  0x66   : > { %1173 = vmatmul.mubr.bf16.gmra.mrb[12].mxu0 %v2362_v33  ;;  %1389 = vmatmul.mubr.bf16.gmra.mrb[12].mxu1 %v2363_v34  ;;  %v2448_v33 = vld [vmem:[%s2551_s27 + $0x1c8] ss:$12 sps:$4 sm:$0xff]   ;;  %v2449_v34 = vld [vmem:[%s2551_s27 + $0x200] ss:$12 sps:$4 sm:$0xff]  }
  0x67   : > { %1180 = vmatprep.mubr.bf16.mxu0 %v2364_v35  ;;  %1396 = vmatprep.mubr.bf16.mxu1 %v2366_v36  ;;  %v2450_v35 = vld [vmem:[%s2551_s27 + $0x1e4] ss:$12 sps:$4 sm:$0xff]  }
  0x68   : > { %v2452_v36 = vld [vmem:[%s2551_s27 + $0x218] ss:$12 sps:$4 sm:$0xff]  }
  0x6e   : > { %1181 = vmatmul.mubr.bf16.gmra.mrb[16].mxu0 %v2368_v37  ;;  %1397 = vmatmul.mubr.bf16.gmra.mrb[16].mxu1 %v2369_v38  ;;  %v2453_v37 = vld [vmem:[%s2551_s27 + $0x1e0] ss:$12 sps:$4 sm:$0xff]   ;;  %v2454_v38 = vld [vmem:[%s2551_s27 + $0x230] ss:$12 sps:$4 sm:$0xff]  }
  0x6f   : > { %1188 = vmatprep.mubr.bf16.mxu0 %v2371_v39  ;;  %1404 = vmatprep.mubr.bf16.mxu1 %v2373_v40  ;;  %v2455_v39 = vld [vmem:[%s2551_s27 + $0x1fc] ss:$12 sps:$4 sm:$0xff]  }
  0x70   : > { %v2457_v40 = vld [vmem:[%s2551_s27 + $0x248] ss:$12 sps:$4 sm:$0xff]  }
  0x76   : > { %1189 = vmatmul.mubr.bf16.gmra.mrb[20].mxu0 %v2375_v41  ;;  %1405 = vmatmul.mubr.bf16.gmra.mrb[20].mxu1 %v2376_v42  ;;  %v2458_v41 = vld [vmem:[%s2551_s27 + $0x1f8] ss:$12 sps:$4 sm:$0xff]   ;;  %v2459_v42 = vld [vmem:[%s2551_s27 + $0x260] ss:$12 sps:$4 sm:$0xff]  }
  0x77   : > { %1196 = vmatprep.mubr.bf16.mxu0 %v2377_v43  ;;  %1412 = vmatprep.mubr.bf16.mxu1 %v2379_v44  ;;  %v2460_v43 = vld [vmem:[%s2551_s27 + $0x214] ss:$12 sps:$4 sm:$0xff]   ;;  %v2462_v44 = vld [vmem:[%s2551_s27 + $0x278] ss:$12 sps:$4 sm:$0xff]  }
  0x7e   : > { %1197 = vmatmul.mubr.bf16.gmra.mrb[24].mxu0 %v2381_v45  ;;  %1413 = vmatmul.mubr.bf16.gmra.mrb[24].mxu1 %v2382_v46  ;;  %v2463_v45 = vld [vmem:[%s2551_s27 + $0x210] ss:$12 sps:$4 sm:$0xff]  }
  0x7f   : > { %1204 = vmatprep.mubr.bf16.mxu0 %v2383_v47  ;;  %1420 = vmatprep.mubr.bf16.mxu1 %v2385_v48  ;;  %v2464_v46 = vld [vmem:[%s2551_s27 + $0x290] ss:$12 sps:$4 sm:$0xff]   ;;  %v2465_v47 = vld [vmem:[%s2551_s27 + $0x22c] ss:$12 sps:$4 sm:$0xff]   ;;  %v2467_v48 = vld [vmem:[%s2551_s27 + $0x2a8] ss:$12 sps:$4 sm:$0xff]  }
  0x86   : > { %1205 = vmatmul.mubr.bf16.gmra.mrb[28].mxu0 %v2387_v49  ;;  %1421 = vmatmul.mubr.bf16.gmra.mrb[28].mxu1 %v2388_v50  ;;  %v2468_v49 = vld [vmem:[%s2551_s27 + $0x228] ss:$12 sps:$4 sm:$0xff]   ;;  %v2469_v50 = vld [vmem:[%s2551_s27 + $0x2c0] ss:$12 sps:$4 sm:$0xff]  }
  0x87   : > { %1212 = vmatprep.mubr.bf16.mxu0 %v2389_v51  ;;  %1428 = vmatprep.mubr.bf16.mxu1 %v2391_v52  ;;  %v2470_v51 = vld [vmem:[%s2551_s27 + $0x244] ss:$12 sps:$4 sm:$0xff]  }
  0x88   : > { %v2472_v52 = vld [vmem:[%s2551_s27 + $0x2d8] ss:$12 sps:$4 sm:$0xff]  }
  0x8e   : > { %1213 = vmatmul.mubr.bf16.gmra.mrb[32].mxu0 %v2393_v53  ;;  %1429 = vmatmul.mubr.bf16.gmra.mrb[32].mxu1 %v2394_v54  ;;  %v2473_v53 = vld [vmem:[%s2551_s27 + $0x240] ss:$12 sps:$4 sm:$0xff]   ;;  %v2474_v54 = vld [vmem:[%s2551_s27 + $0x2f0] ss:$12 sps:$4 sm:$0xff]  }
  0x8f   : > { %1220 = vmatprep.mubr.bf16.mxu0 %v2395_v55  ;;  %2208 = vmatprep.mubr.msk.bf16.mxu1 %vm1007_vm0, %v2397_v56  ;;  %v2475_v55 = vld [vmem:[%s2551_s27 + $0x25c] ss:$12 sps:$4 sm:$0xff]  }
  0x90   : > { %v2477_v56 = vld [vmem:[%s2551_s27 + $0x308] ss:$12 sps:$4 sm:$0xff]  }
  0x96   : > { %1221 = vmatmul.mubr.bf16.gmra.mrb[36].mxu0 %v2398_v57  ;;  %2209 = vmatmul.mubr.msk.bf16.vlgmr.msra.gmra.mrb[36].mxu1 %vm1007_vm0, %v2399_v58  ;;  %v2478_v57 = vld [vmem:[%s2551_s27 + $0x258] ss:$12 sps:$4 sm:$0xff]   ;;  %v2479_v58 = vld [vmem:[%s2551_s27 + $0x320] ss:$12 sps:$4 sm:$0xff]  }
  0x97   : > { %1228 = vmatprep.mubr.bf16.mxu0 %v2400_v59  ;;  %2212 = vmatprep.mubr.msk.bf16.mxu1 %vm1007_vm0, %v2402_v60  ;;  %v2480_v59 = vld [vmem:[%s2551_s27 + $0x274] ss:$12 sps:$4 sm:$0xff]   ;;  %v2482_v60 = vld [vmem:[%s2551_s27 + $0x338] ss:$12 sps:$4 sm:$0xff]  }
  0x9e   : > { %1229 = vmatmul.mubr.bf16.gmra.mrb[40].mxu0 %v2403_v61  ;;  %2213 = vmatmul.mubr.msk.bf16.gmra.mrb[40].mxu1 %vm1007_vm0, %v2404_v62  ;;  %v2483_v61 = vld [vmem:[%s2551_s27 + $0x270] ss:$12 sps:$4 sm:$0xff]  }
  0x9f   : > { %1236 = vmatprep.mubr.bf16.mxu0 %v2405_v63  ;;  %2216 = vmatprep.mubr.msk.bf16.mxu1 %vm1007_vm0, %v2407_v0  ;;  %v2484_v62 = vld [vmem:[%s2551_s27 + $0x350] ss:$12 sps:$4 sm:$0xff]  }
  0xa6   : > { %1237 = vmatmul.mubr.bf16.gmra.mrb[44].mxu0 %v2408_v1  ;;  %2217 = vmatmul.mubr.msk.bf16.gmra.mrb[44].mxu1 %vm1007_vm0, %v2409_v2 }
  0xa7   : > { %1244 = vmatprep.mubr.bf16.mxu0 %v2410_v3  ;;  %2220 = vmatprep.mubr.msk.bf16.mxu1 %vm1007_vm0, %v2412_v4 }
  0xae   : > { %1245 = vmatmul.mubr.bf16.gmra.mrb[48].mxu0 %v2413_v5  ;;  %2221 = vmatmul.mubr.msk.bf16.gmra.mrb[48].mxu1 %vm1007_vm0, %v2414_v6 }
  0xaf   : > { %1252 = vmatprep.mubr.bf16.mxu0 %v2415_v7  ;;  %2224 = vmatprep.mubr.msk.bf16.mxu1 %vm1007_vm0, %v2417_v8 }
  0xb6   : > { %1253 = vmatmul.mubr.bf16.gmra.mrb[52].mxu0 %v2418_v9  ;;  %2225 = vmatmul.mubr.msk.bf16.gmra.mrb[52].mxu1 %vm1007_vm0, %v2419_v10 }
  0xb7   : > { %1260 = vmatprep.mubr.bf16.mxu0 %v2420_v11  ;;  %2228 = vmatprep.mubr.msk.bf16.mxu1 %vm1007_vm0, %v2422_v12 }
  0xbe   : > { %1261 = vmatmul.mubr.bf16.gmra.mrb[56].mxu0 %v2423_v13  ;;  %2229 = vmatmul.mubr.msk.bf16.gmra.mrb[56].mxu1 %vm1007_vm0, %v2424_v14 }
  0xbf   : > { %1268 = vmatprep.mubr.bf16.mxu0 %v2425_v15  ;;  %2232 = vmatprep.mubr.msk.bf16.mxu1 %vm1007_vm0, %v2427_v16 }
  0xc6   : > { %1269 = vmatmul.mubr.bf16.gmra.mrb[60].mxu0 %v2428_v17  ;;  %2233 = vmatmul.mubr.msk.bf16.gmra.mrb[60].mxu1 %vm1007_vm0, %v2429_v18 }
  0xc7   : > { %1276 = vmatprep.mubr.bf16.mxu0 %v2430_v19  ;;  %2236 = vmatprep.mubr.msk.bf16.mxu1 %vm1007_vm0, %v2432_v20 }
  0xce   : > { %1277 = vmatmul.mubr.bf16.gmra.mrb[64].mxu0 %v2433_v21  ;;  %2237 = vmatmul.mubr.msk.bf16.gmra.mrb[64].mxu1 %vm1007_vm0, %v2434_v22 }
  0xcf   : > { %1284 = vmatprep.mubr.bf16.mxu0 %v2435_v23  ;;  %2240 = vmatprep.mubr.msk.bf16.mxu1 %vm1007_vm0, %v2437_v24 }
  0xd6   : > { %1285 = vmatmul.mubr.bf16.gmra.mrb[68].mxu0 %v2438_v25  ;;  %2241 = vmatmul.mubr.msk.bf16.gmra.mrb[68].mxu1 %vm1007_vm0, %v2439_v26 }
  0xd7   : > { %1292 = vmatprep.mubr.bf16.mxu0 %v2440_v27  ;;  %2244 = vmatprep.mubr.msk.bf16.mxu1 %vm1007_vm0, %v2442_v28 }
  0xde   : > { %1293 = vmatmul.mubr.bf16.gmra.mrb[72].mxu0 %v2443_v29  ;;  %2245 = vmatmul.mubr.msk.bf16.gmra.mrb[72].mxu1 %vm1007_vm0, %v2444_v30 }
  0xdf   : > { %1300 = vmatprep.mubr.bf16.mxu0 %v2445_v31  ;;  %2248 = vmatprep.mubr.msk.bf16.mxu1 %vm1007_vm0, %v2447_v32 }
  0xe6   : > { %1301 = vmatmul.mubr.bf16.gmra.mrb[76].mxu0 %v2448_v33  ;;  %2249 = vmatmul.mubr.msk.bf16.gmra.mrb[76].mxu1 %vm1007_vm0, %v2449_v34 }
  0xe7   : > { %1308 = vmatprep.mubr.bf16.mxu0 %v2450_v35  ;;  %2252 = vmatprep.mubr.msk.bf16.mxu1 %vm1007_vm0, %v2452_v36 }
  0xee   : > { %1309 = vmatmul.mubr.bf16.gmra.mrb[80].mxu0 %v2453_v37  ;;  %2253 = vmatmul.mubr.msk.bf16.gmra.mrb[80].mxu1 %vm1007_vm0, %v2454_v38 }
  0xef   : > { %1316 = vmatprep.mubr.bf16.mxu0 %v2455_v39  ;;  %2256 = vmatprep.mubr.msk.bf16.mxu1 %vm1007_vm0, %v2457_v40 }
  0xf6   : > { %1317 = vmatmul.mubr.bf16.gmra.mrb[84].mxu0 %v2458_v41  ;;  %2257 = vmatmul.mubr.msk.bf16.gmra.mrb[84].mxu1 %vm1007_vm0, %v2459_v42 }
  0xf7   : > { %1324 = vmatprep.mubr.bf16.mxu0 %v2460_v43  ;;  %2260 = vmatprep.mubr.msk.bf16.mxu1 %vm1007_vm0, %v2462_v44 }
  0xfe   : > { %1325 = vmatmul.mubr.bf16.gmra.mrb[88].mxu0 %v2463_v45  ;;  %2261 = vmatmul.mubr.msk.bf16.gmra.mrb[88].mxu1 %vm1007_vm0, %v2464_v46 }
  0xff   : > { %1332 = vmatprep.mubr.bf16.mxu0 %v2465_v47  ;;  %2264 = vmatprep.mubr.msk.bf16.mxu1 %vm1007_vm0, %v2467_v48 }
 0x106   : > { %1333 = vmatmul.mubr.bf16.gmra.mrb[92].mxu0 %v2468_v49  ;;  %2265 = vmatmul.mubr.msk.bf16.gmra.mrb[92].mxu1 %vm1007_vm0, %v2469_v50 }
 0x107   : > { %1340 = vmatprep.mubr.bf16.mxu0 %v2470_v51  ;;  %2268 = vmatprep.mubr.msk.bf16.mxu1 %vm1007_vm0, %v2472_v52 }
 0x10e   : > { %1341 = vmatmul.mubr.bf16.gmra.mrb[96].mxu0 %v2473_v53  ;;  %2269 = vmatmul.mubr.msk.bf16.gmra.mrb[96].mxu1 %vm1007_vm0, %v2474_v54 }
 0x10f   : > { %1348 = vmatprep.mubr.bf16.mxu0 %v2475_v55  ;;  %2272 = vmatprep.mubr.msk.bf16.mxu1 %vm1007_vm0, %v2477_v56 }
 0x116   : > { %1349 = vmatmul.mubr.bf16.gmra.mrb[100].mxu0 %v2478_v57  ;;  %2273 = vmatmul.mubr.msk.bf16.gmra.mrb[100].mxu1 %vm1007_vm0, %v2479_v58 }
 0x117   : > { %1356 = vmatprep.mubr.bf16.mxu0 %v2480_v59  ;;  %2276 = vmatprep.mubr.msk.bf16.mxu1 %vm1007_vm0, %v2482_v60 }
 0x11e   : > { %1357 = vmatmul.mubr.bf16.gmra.mrb[104].mxu0 %v2483_v61  ;;  %2277 = vmatmul.mubr.msk.bf16.gmra.mrb[104].mxu1 %vm1007_vm0, %v2484_v62 }
 0x121   : > { %v2760_v63 = vpop.f32.mrb[0].mxu0  ;;  %v2762_v0 = vpop.f32.mrb[0].mxu1 }
 0x122   : > { %v1152_v1 = vpop.f32.mrb[1].mxu0  ;;  %v1368_v2 = vpop.f32.mrb[1].mxu1 }
 0x123   : > { %v2764_v3 = vpop.f32.mrb[2].mxu0  ;;  %v2766_v4 = vpop.f32.mrb[2].mxu1 }
 0x124   : > { %v1155_v5 = vpop.f32.mrb[3].mxu0  ;;  %v1371_v6 = vpop.f32.mrb[3].mxu1 }
 0x129   : > { %v2768_v7 = vpop.f32.mrb[4].mxu0  ;;  %v2770_v8 = vpop.f32.mrb[4].mxu1 }
 0x12a   : > { %v1160_v9 = vpop.f32.mrb[5].mxu0  ;;  %v1376_v10 = vpop.f32.mrb[5].mxu1 }
 0x12b   : > { %v2772_v11 = vpop.f32.mrb[6].mxu0  ;;  %v2774_v12 = vpop.f32.mrb[6].mxu1 }
 0x12c   : > { %v1163_v13 = vpop.f32.mrb[7].mxu0  ;;  %v1379_v14 = vpop.f32.mrb[7].mxu1 }
 0x131   : > { %v2776_v15 = vpop.f32.mrb[8].mxu0  ;;  %v2778_v16 = vpop.f32.mrb[8].mxu1 }
 0x132   : > { %v1168_v17 = vpop.f32.mrb[9].mxu0  ;;  %v1384_v18 = vpop.f32.mrb[9].mxu1 }
 0x133   : > { %v2780_v19 = vpop.f32.mrb[10].mxu0  ;;  %v2782_v20 = vpop.f32.mrb[10].mxu1  ;;  %v2835_v17 = vld [vmem:[%s3214_s2] ss:$0 sm:$0xff] }
 0x134   : > { %v1171_v21 = vpop.f32.mrb[11].mxu0  ;;  %v1387_v22 = vpop.f32.mrb[11].mxu1  ;;  %v1159_v18 = vadd.f32 %v2835_v17, %v2768_v7 }
 0x135   : > { %v1151_v21 = vadd.f32 %v2835_v17, %v2760_v63 }
 0x139   : > { %v2784_v23 = vpop.f32.mrb[12].mxu0  ;;  %v2786_v24 = vpop.f32.mrb[12].mxu1 }
 0x13a   : > { %v1176_v25 = vpop.f32.mrb[13].mxu0  ;;  %v1392_v26 = vpop.f32.mrb[13].mxu1 }
 0x13b   : > { %v2788_v27 = vpop.f32.mrb[14].mxu0  ;;  %v2790_v28 = vpop.f32.mrb[14].mxu1  ;;  %v1162_v26 = vadd.f32 %v2835_v17, %v2772_v11  ;;  %v1175_v11 = vadd.f32 %v2835_v17, %v2784_v23 }
 0x13c   : > { %v1179_v29 = vpop.f32.mrb[15].mxu0  ;;  %v1395_v30 = vpop.f32.mrb[15].mxu1 }
 0x141   : > { %v2792_v31 = vpop.f32.mrb[16].mxu0  ;;  %v2794_v32 = vpop.f32.mrb[16].mxu1 }
 0x142   : > { %v1184_v33 = vpop.f32.mrb[17].mxu0  ;;  %v1400_v34 = vpop.f32.mrb[17].mxu1 }
 0x143   : > { %v2796_v35 = vpop.f32.mrb[18].mxu0  ;;  %v2798_v36 = vpop.f32.mrb[18].mxu1  ;;  %v1154_v34 = vadd.f32 %v2835_v17, %v2764_v3  ;;  %v1178_v3 = vadd.f32 %v2835_v17, %v2788_v27 }
 0x144   : > { %v1187_v37 = vpop.f32.mrb[19].mxu0  ;;  %v1403_v38 = vpop.f32.mrb[19].mxu1 }
 0x149   : > { %v2800_v39 = vpop.f32.mrb[20].mxu0  ;;  %v2802_v40 = vpop.f32.mrb[20].mxu1 }
 0x14a   : > { %v1192_v41 = vpop.f32.mrb[21].mxu0  ;;  %v1408_v42 = vpop.f32.mrb[21].mxu1  ;;  %v1191_v27 = vadd.f32 %v2835_v17, %v2800_v39 }
 0x14b   : > { %v2804_v43 = vpop.f32.mrb[22].mxu0  ;;  %v2806_v44 = vpop.f32.mrb[22].mxu1 }
 0x14c   : > { %v1195_v45 = vpop.f32.mrb[23].mxu0  ;;  %v1411_v46 = vpop.f32.mrb[23].mxu1 }
 0x14d   : > { %v1167_v46 = vadd.f32 %v2835_v17, %v2776_v15 }
 0x151   : > { %v2808_v47 = vpop.f32.mrb[24].mxu0  ;;  %v2810_v48 = vpop.f32.mrb[24].mxu1 }
 0x152   : > { %v1200_v49 = vpop.f32.mrb[25].mxu0  ;;  %v1416_v50 = vpop.f32.mrb[25].mxu1 }
 0x153   : > { %v2812_v51 = vpop.f32.mrb[26].mxu0  ;;  %v2814_v52 = vpop.f32.mrb[26].mxu1 }
 0x154   : > { %v1203_v53 = vpop.f32.mrb[27].mxu0  ;;  %v1419_v54 = vpop.f32.mrb[27].mxu1 }
 0x159   : > { %v2816_v55 = vpop.f32.mrb[28].mxu0  ;;  %v2818_v56 = vpop.f32.mrb[28].mxu1 }
 0x15a   : > { %3232 = vst [vmem:[#allocation2_spill] sm:$0xff] %v2818_v56  ;;  %v1208_v57 = vpop.f32.mrb[29].mxu0  ;;  %v1424_v58 = vpop.f32.mrb[29].mxu1 }
 0x15b   : > { %v2820_v59 = vpop.f32.mrb[30].mxu0  ;;  %v2822_v60 = vpop.f32.mrb[30].mxu1  ;;  %v1170_v58 = vadd.f32 %v2835_v17, %v2780_v19  ;;  %v1194_v19 = vadd.f32 %v2835_v17, %v2804_v43  ;;  %v1207_v43 = vadd.f32 %v2835_v17, %v2816_v55 }
 0x15c   : > { %3233 = vst [vmem:[#allocation3_spill] sm:$0xff] %v2822_v60  ;;  %v1211_v61 = vpop.f32.mrb[31].mxu0  ;;  %v1427_v62 = vpop.f32.mrb[31].mxu1 }
 0x161   : > { %v2824_v1 = vpop.f32.mrb[32].mxu0  ;;  %v2826_v2 = vpop.f32.mrb[32].mxu1 }
 0x162   : > { %3234 = vst [vmem:[#allocation4_spill] sm:$0xff] %v2826_v2  ;;  %v1216_v5 = vpop.f32.mrb[33].mxu0  ;;  %v1432_v6 = vpop.f32.mrb[33].mxu1 }
 0x163   : > { %v2828_v9 = vpop.f32.mrb[34].mxu0  ;;  %v2830_v10 = vpop.f32.mrb[34].mxu1 }
 0x164   : > { %3235 = vst [vmem:[#allocation5_spill] sm:$0xff] %v2830_v10  ;;  %v1219_v13 = vpop.f32.mrb[35].mxu0  ;;  %v1435_v14 = vpop.f32.mrb[35].mxu1 }
 0x165   : > { %v1183_v14 = vadd.f32 %v2835_v17, %v2792_v31 }
 0x169   : > { %v1222_v22 = vpop.f32.mrb[36].mxu0  ;;  %v2210_v25 = vpop.f32.mrb[36].mxu1 }
 0x16a   : > { %v2843_v29 = vadd.f32 %v2210_v25, %v1159_v18  ;;  %v1224_v30 = vpop.f32.mrb[37].mxu0  ;;  %v1471_v33 = vpop.f32.mrb[37].mxu1 }
 0x16b   : > { %v2847_v37 = vadd.f32 %v1471_v33, %v1151_v21  ;;  %v1225_v38 = vpop.f32.mrb[38].mxu0  ;;  %v2211_v41 = vpop.f32.mrb[38].mxu1  ;;  %v1186_v33 = vadd.f32 %v2835_v17, %v2796_v35  ;;  %v1210_v35 = vadd.f32 %v2835_v17, %v2820_v59  ;;  %v1215_v59 = vadd.f32 %v2835_v17, %v2824_v1 }
 0x16c   : > { %v2849_v7 = vadd.f32 %v2211_v41, %v1162_v26  ;;  %v1227_v42 = vpop.f32.mrb[39].mxu0  ;;  %v1474_v63 = vpop.f32.mrb[39].mxu1 }
 0x16d   : > { %v2851_v45 = vadd.f32 %v1474_v63, %v1154_v34 }
 0x171   : > { %v2857_v49 = vpop.f32.mrb[40].mxu0  ;;  %v2214_v50 = vpop.f32.mrb[40].mxu1 }
 0x172   : > { %v2861_v53 = vadd.f32 %v2214_v50, %v1175_v11  ;;  %v1232_v54 = vpop.f32.mrb[41].mxu0  ;;  %v1487_v57 = vpop.f32.mrb[41].mxu1 }
 0x173   : > { %v2865_v61 = vadd.f32 %v1487_v57, %v1167_v46  ;;  %v2867_v62 = vpop.f32.mrb[42].mxu0  ;;  %v2215_v23 = vpop.f32.mrb[42].mxu1  ;;  %v1199_v46 = vadd.f32 %v2835_v17, %v2808_v47 }
 0x174   : > { %v2869_v5 = vadd.f32 %v2215_v23, %v1178_v3  ;;  %v1235_v15 = vpop.f32.mrb[43].mxu0  ;;  %v1490_v6 = vpop.f32.mrb[43].mxu1  ;;  %v1202_v23 = vadd.f32 %v2835_v17, %v2812_v51 }
 0x175   : > { %v2871_v13 = vadd.f32 %v1490_v6, %v1170_v58 }
 0x179   : > { %v1238_v18 = vpop.f32.mrb[44].mxu0  ;;  %v2218_v21 = vpop.f32.mrb[44].mxu1 }
 0x17a   : > { %v2879_v25 = vadd.f32 %v2218_v21, %v1191_v27  ;;  %v1240_v26 = vpop.f32.mrb[45].mxu0  ;;  %v1503_v30 = vpop.f32.mrb[45].mxu1 }
 0x17b   : > { %v2883_v34 = vadd.f32 %v1503_v30, %v1183_v14  ;;  %v1241_v41 = vpop.f32.mrb[46].mxu0  ;;  %v2219_v42 = vpop.f32.mrb[46].mxu1 }
 0x17c   : > { %3236 = vst [vmem:[#allocation6_spill] sm:$0xff] %v2879_v25  ;;  %v2885_v39 = vadd.f32 %v2219_v42, %v1194_v19  ;;  %v1243_v63 = vpop.f32.mrb[47].mxu0  ;;  %v1506_v31 = vpop.f32.mrb[47].mxu1  ;;  %v1223_v19 = vadd.f32 %v2835_v17, %v1222_v22 }
 0x17d   : > { %v2887_v11 = vadd.f32 %v1506_v31, %v1186_v33  ;;  %v1226_v33 = vadd.f32 %v2835_v17, %v1225_v38  ;;  %v1218_v31 = vadd.f32 %v2835_v17, %v2828_v9  ;;  %v1231_v9 = vadd.f32 %v2835_v17, %v2857_v49 }
 0x17e   : > { %3237 = vst [vmem:[#allocation7_spill] sm:$0xff] %v2885_v39 }
 0x181   : > { %v1246_v50 = vpop.f32.mrb[48].mxu0  ;;  %v2222_v3 = vpop.f32.mrb[48].mxu1 }
 0x182   : > { %v2895_v54 = vadd.f32 %v2222_v3, %v1207_v43  ;;  %v1248_v57 = vpop.f32.mrb[49].mxu0  ;;  %v1519_v58 = vpop.f32.mrb[49].mxu1 }
 0x183   : > { %v2899_v15 = vadd.f32 %v1519_v58, %v1199_v46  ;;  %v1249_v6 = vpop.f32.mrb[50].mxu0  ;;  %v2223_v27 = vpop.f32.mrb[50].mxu1 }
 0x184   : > { %3238 = vst [vmem:[#allocation8_spill] sm:$0xff] %v2895_v54  ;;  %v2901_v55 = vadd.f32 %v2223_v27, %v1210_v35  ;;  %v1251_v14 = vpop.f32.mrb[51].mxu0  ;;  %v1522_v47 = vpop.f32.mrb[51].mxu1 }
 0x185   : > { %3239 = vst [vmem:[#allocation9_spill] sm:$0xff] %v2899_v15  ;;  %v2903_v21 = vadd.f32 %v1522_v47, %v1202_v23  ;;  %v1239_v23 = vadd.f32 %v2835_v17, %v1238_v18  ;;  %v1242_v47 = vadd.f32 %v2835_v17, %v1241_v41 }
 0x186   : > { %3240 = vst [vmem:[#allocation10_spill] sm:$0xff] %v2901_v55 }
 0x187   : > { %3241 = vst [vmem:[#allocation11_spill] sm:$0xff] %v2903_v21 }
 0x189   : > { %v1254_v26 = vpop.f32.mrb[52].mxu0  ;;  %v2226_v30 = vpop.f32.mrb[52].mxu1 }
 0x18a   : > { %v2909_v51 = vadd.f32 %v2226_v30, %v1223_v19  ;;  %v1256_v42 = vpop.f32.mrb[53].mxu0  ;;  %v1535_v63 = vpop.f32.mrb[53].mxu1 }
 0x18b   : > { %v2913_v43 = vadd.f32 %v1535_v63, %v1215_v59  ;;  %v1257_v46 = vpop.f32.mrb[54].mxu0  ;;  %v2227_v3 = vpop.f32.mrb[54].mxu1 }
 0x18c   : > { %v2917_v35 = vadd.f32 %v2227_v3, %v1226_v33  ;;  %v1259_v1 = vpop.f32.mrb[55].mxu0  ;;  %v1538_v57 = vpop.f32.mrb[55].mxu1  ;;  %v1234_v33 = vadd.f32 %v2835_v17, %v2867_v62 }
 0x18d   : > { %3242 = vst [vmem:[#allocation12_spill] sm:$0xff] %v2913_v43  ;;  %v2919_v58 = vadd.f32 %v1538_v57, %v1218_v31 }
 0x18f   : > { %3243 = vst [vmem:[#allocation13_spill] sm:$0xff] %v2919_v58 }
 0x191   : > { %v1262_v27 = vpop.f32.mrb[56].mxu0  ;;  %v2230_v14 = vpop.f32.mrb[56].mxu1 }
 0x192   : > { %v2927_v19 = vadd.f32 %v2230_v14, %v1239_v23  ;;  %v1264_v59 = vpop.f32.mrb[57].mxu0  ;;  %v1551_v30 = vpop.f32.mrb[57].mxu1  ;;  %v1247_v14 = vadd.f32 %v2835_v17, %v1246_v50 }
 0x193   : > { %v2931_v42 = vadd.f32 %v1551_v30, %v1231_v9  ;;  %v1265_v63 = vpop.f32.mrb[58].mxu0  ;;  %v2231_v31 = vpop.f32.mrb[58].mxu1  ;;  %v1255_v9 = vadd.f32 %v2835_v17, %v1254_v26  ;;  %v1258_v30 = vadd.f32 %v2835_v17, %v1257_v46 }
 0x194   : > { %v2935_v3 = vadd.f32 %v2231_v31, %v1242_v47  ;;  %v1267_v49 = vpop.f32.mrb[59].mxu0  ;;  %v1554_v1 = vpop.f32.mrb[59].mxu1 }
 0x195   : > { %v2939_v57 = vadd.f32 %v1554_v1, %v1234_v33  ;;  %v1250_v33 = vadd.f32 %v2835_v17, %v1249_v6 }
 0x199   : > { %v1270_v59 = vpop.f32.mrb[60].mxu0  ;;  %v2234_v47 = vpop.f32.mrb[60].mxu1 }
 0x19a   : > { %v2948_v31 = vadd.f32 %v2234_v47, %v1255_v9  ;;  %v1272_v49 = vpop.f32.mrb[61].mxu0  ;;  %v1567_v41 = vpop.f32.mrb[61].mxu1 }
 0x19b   : > { %v2951_v1 = vadd.f32 %v1567_v41, %v1247_v14  ;;  %v1273_v23 = vpop.f32.mrb[62].mxu0  ;;  %v2235_v18 = vpop.f32.mrb[62].mxu1  ;;  %v1271_v41 = vadd.f32 %v2835_v17, %v1270_v59  ;;  %v1263_v14 = vadd.f32 %v2835_v17, %v1262_v27 }
 0x19c   : > { %v2955_v26 = vadd.f32 %v2235_v18, %v1258_v30  ;;  %v1275_v50 = vpop.f32.mrb[63].mxu0  ;;  %v1570_v38 = vpop.f32.mrb[63].mxu1  ;;  %v1274_v30 = vadd.f32 %v2835_v17, %v1273_v23 }
 0x19d   : > { %v2959_v9 = vadd.f32 %v1570_v38, %v1250_v33  ;;  %v1266_v38 = vadd.f32 %v2835_v17, %v1265_v63 }
 0x1a1   : > { %v1278_v49 = vpop.f32.mrb[64].mxu0  ;;  %v2238_v18 = vpop.f32.mrb[64].mxu1 }
 0x1a2   : > { %v2968_v50 = vadd.f32 %v2238_v18, %v1271_v41  ;;  %v1280_v62 = vpop.f32.mrb[65].mxu0  ;;  %v1583_v46 = vpop.f32.mrb[65].mxu1 }
 0x1a3   : > { %v2971_v33 = vadd.f32 %v1583_v46, %v1263_v14  ;;  %v1281_v47 = vpop.f32.mrb[66].mxu0  ;;  %v2239_v22 = vpop.f32.mrb[66].mxu1  ;;  %v1279_v46 = vadd.f32 %v2835_v17, %v1278_v49 }
 0x1a4   : > { %3244 = vst [vmem:[#allocation14_spill] sm:$0xff] %v2968_v50  ;;  %v2975_v59 = vadd.f32 %v2239_v22, %v1274_v30  ;;  %v1283_v27 = vpop.f32.mrb[67].mxu0  ;;  %v1586_v60 = vpop.f32.mrb[67].mxu1  ;;  %v1282_v6 = vadd.f32 %v2835_v17, %v1281_v47 }
 0x1a5   : > { %3245 = vst [vmem:[#allocation15_spill] sm:$0xff] %v2971_v33  ;;  %v2979_v41 = vadd.f32 %v1586_v60, %v1266_v38  ;;  %v1370_v33 = vadd.f32 %v2835_v17, %v2766_v4  ;;  %v3254_v4 = vmax.f32 %v2847_v37, %v2909_v51  ;;  %v1375_v51 = vadd.f32 %v2835_v17, %v2770_v8 }
 0x1a6   : > { %3246 = vst [vmem:[#allocation16_spill] sm:$0xff] %v2975_v59 }
 0x1a7   : > { %3247 = vst [vmem:[#allocation17_spill] sm:$0xff] %v2979_v41 }
 0x1a9   : > { %v1286_v14 = vpop.f32.mrb[68].mxu0  ;;  %v2242_v18 = vpop.f32.mrb[68].mxu1 }
 0x1aa   : > { %v1287_v22 = vadd.f32 %v2835_v17, %v1286_v14  ;;  %v1288_v30 = vpop.f32.mrb[69].mxu0  ;;  %v1599_v27 = vpop.f32.mrb[69].mxu1 }
 0x1ab   : > { %v2988_v10 = vadd.f32 %v1599_v27, %v1279_v46  ;;  %v1289_v60 = vpop.f32.mrb[70].mxu0  ;;  %v2243_v38 = vpop.f32.mrb[70].mxu1 }
 0x1ac   : > { %v2990_v23 = vadd.f32 %v2242_v18, %v1287_v22  ;;  %v1290_v62 = vadd.f32 %v2835_v17, %v1289_v60  ;;  %v1291_v56 = vpop.f32.mrb[71].mxu0  ;;  %v1602_v63 = vpop.f32.mrb[71].mxu1 }
 0x1ad   : > { %3248 = vst [vmem:[#allocation18_spill] sm:$0xff] %v2988_v10  ;;  %v2995_v41 = vadd.f32 %v1602_v63, %v1282_v6 }
 0x1ae   : > { %3249 = vst [vmem:[#allocation19_spill] sm:$0xff] %v2990_v23  ;;  %v2999_v30 = vadd.f32 %v2243_v38, %v1290_v62 }
 0x1af   : > { %3250 = vst [vmem:[#allocation20_spill] sm:$0xff] %v2995_v41 }
 0x1b0   : > { %3251 = vst [vmem:[#allocation21_spill] sm:$0xff] %v2999_v30 }
 0x1b1   : > { %v1294_v18 = vpop.f32.mrb[72].mxu0  ;;  %v2246_v22 = vpop.f32.mrb[72].mxu1 }
 0x1b2   : > { %v1295_v56 = vadd.f32 %v2835_v17, %v1294_v18  ;;  %v1296_v27 = vpop.f32.mrb[73].mxu0  ;;  %v1615_v60 = vpop.f32.mrb[73].mxu1 }
 0x1b3   : > { %v1297_v49 = vpop.f32.mrb[74].mxu0  ;;  %v2247_v6 = vpop.f32.mrb[74].mxu1 }
 0x1b4   : > { %v1616_v63 = vadd.f32 %v1615_v60, %v1295_v56  ;;  %v1298_v10 = vadd.f32 %v2835_v17, %v1297_v49  ;;  %v1299_v14 = vpop.f32.mrb[75].mxu0  ;;  %v1618_v62 = vpop.f32.mrb[75].mxu1 }
 0x1b6   : > { %v1619_v38 = vadd.f32 %v1618_v62, %v1298_v10 }
 0x1b9   : > { %v1302_v23 = vpop.f32.mrb[76].mxu0  ;;  %v2250_v43 = vpop.f32.mrb[76].mxu1 }
 0x1ba   : > { %v1303_v47 = vadd.f32 %v2835_v17, %v1302_v23  ;;  %v1304_v41 = vpop.f32.mrb[77].mxu0  ;;  %v1631_v46 = vpop.f32.mrb[77].mxu1 }
 0x1bb   : > { %v1305_v30 = vpop.f32.mrb[78].mxu0  ;;  %v2251_v58 = vpop.f32.mrb[78].mxu1 }
 0x1bc   : > { %v3008_v55 = vadd.f32 %v2246_v22, %v1303_v47  ;;  %v1306_v18 = vadd.f32 %v2835_v17, %v1305_v30  ;;  %v1307_v27 = vpop.f32.mrb[79].mxu0  ;;  %v1634_v54 = vpop.f32.mrb[79].mxu1 }
 0x1be   : > { %v3011_v56 = vadd.f32 %v2247_v6, %v1306_v18 }
 0x1c1   : > { %v1310_v49 = vpop.f32.mrb[80].mxu0  ;;  %v3013_v14 = vpop.f32.mrb[80].mxu1 }
 0x1c2   : > { %v1311_v10 = vadd.f32 %v2835_v17, %v1310_v49  ;;  %v1312_v60 = vpop.f32.mrb[81].mxu0  ;;  %v1647_v62 = vpop.f32.mrb[81].mxu1 }
 0x1c3   : > { %v1313_v23 = vpop.f32.mrb[82].mxu0  ;;  %v3016_v41 = vpop.f32.mrb[82].mxu1 }
 0x1c4   : > { %v3018_v39 = vadd.f32 %v1631_v46, %v1311_v10  ;;  %v1314_v47 = vadd.f32 %v2835_v17, %v1313_v23  ;;  %v1315_v22 = vpop.f32.mrb[83].mxu0  ;;  %v1650_v30 = vpop.f32.mrb[83].mxu1 }
 0x1c6   : > { %v3021_v27 = vadd.f32 %v1634_v54, %v1314_v47  ;;  %v1367_v47 = vadd.f32 %v2835_v17, %v2762_v0 }
 0x1c9   : > { %v1318_v6 = vpop.f32.mrb[84].mxu0  ;;  %v3023_v18 = vpop.f32.mrb[84].mxu1 }
 0x1ca   : > { %3252 = vst [vmem:[#allocation22_spill] sm:$0xff] %v3023_v18  ;;  %v1319_v59 = vadd.f32 %v2835_v17, %v1318_v6  ;;  %v1320_v21 = vpop.f32.mrb[85].mxu0  ;;  %v3026_v49 = vpop.f32.mrb[85].mxu1 }
 0x1cb   : > { %v1321_v60 = vpop.f32.mrb[86].mxu0  ;;  %v3028_v2 = vpop.f32.mrb[86].mxu1 }
 0x1cc   : > { %3253 = vst [vmem:[#allocation23_spill] sm:$0xff] %v3028_v2  ;;  %v3030_v46 = vadd.f32 %v2250_v43, %v1319_v59  ;;  %v1322_v10 = vadd.f32 %v2835_v17, %v1321_v60  ;;  %v1323_v23 = vpop.f32.mrb[87].mxu0  ;;  %v3033_v22 = vpop.f32.mrb[87].mxu1 }
 0x1ce   : > { %v3035_v54 = vadd.f32 %v2251_v58, %v1322_v10 }
 0x1d1   : > { %v1326_v6 = vpop.f32.mrb[88].mxu0  ;;  %v2262_v21 = vpop.f32.mrb[88].mxu1 }
 0x1d2   : > { %v1327_v25 = vadd.f32 %v2835_v17, %v1326_v6  ;;  %v1688_v2 = vadd.f32 %v2262_v21, %v1367_v47  ;;  %v1328_v43 = vpop.f32.mrb[89].mxu0  ;;  %v3042_v59 = vpop.f32.mrb[89].mxu1 }
 0x1d3   : > { %v1329_v60 = vpop.f32.mrb[90].mxu0  ;;  %v2263_v23 = vpop.f32.mrb[90].mxu1 }
 0x1d4   : > { %v3045_v50 = vadd.f32 %v1647_v62, %v1327_v25  ;;  %v1776_v58 = vmax.f32 %v1616_v63, %v1688_v2  ;;  %v1330_v10 = vadd.f32 %v2835_v17, %v1329_v60  ;;  %v1691_v0 = vadd.f32 %v2263_v23, %v1370_v33  ;;  %v1331_v15 = vpop.f32.mrb[91].mxu0  ;;  %v3048_v18 = vpop.f32.mrb[91].mxu1 }
 0x1d5   : > { %v1383_v2 = vadd.f32 %v2835_v17, %v2778_v16  ;;  %v3255_v15 = vmax.f32 %v2851_v45, %v2917_v35  ;;  %v1378_v45 = vadd.f32 %v2835_v17, %v2774_v12  ;;  %v3256_v12 = vmax.f32 %v2865_v61, %v2927_v19 }
 0x1d6   : > { %v1794_v6 = vmax.f32 %v3254_v4, %v1776_v58  ;;  %v3053_v47 = vadd.f32 %v1650_v30, %v1330_v10  ;;  %v1777_v21 = vmax.f32 %v1619_v38, %v1691_v0  ;;  %v1386_v38 = vadd.f32 %v2835_v17, %v2782_v20 }
 0x1d7   : > { %v3258_v61 = vmax.f32 %v2871_v13, %v2935_v3 }
 0x1d8   : > { %v2148_v25 = vpack.c.bf16 %v1794_v6, %v1794_v6  ;;  %v1795_v37 = vmax.f32 %v3255_v15, %v1777_v21 }
 0x1d9   : > { %v1334_v33 = vpop.f32.mrb[92].mxu0  ;;  %v2266_v63 = vpop.f32.mrb[92].mxu1 }
 0x1da   : > { %1885 = vst.msk [vmem:[%s3058_s6] sm:$0xf] %vm1884_vm1, %v2148_v25  ;;  %v2149_v62 = vpack.c.bf16 %v1795_v37, %v1795_v37  ;;  %v1335_v30 = vadd.f32 %v2835_v17, %v1334_v33  ;;  %v1704_v16 = vadd.f32 %v2266_v63, %v1383_v2  ;;  %v1336_v43 = vpop.f32.mrb[93].mxu0  ;;  %v1695_v60 = vpop.f32.mrb[93].mxu1 }
 0x1db   : > { %v1696_v35 = vadd.f32 %v1695_v60, %v1375_v51  ;;  %v1337_v23 = vpop.f32.mrb[94].mxu0  ;;  %v2267_v58 = vpop.f32.mrb[94].mxu1 }
 0x1dc   : > { %1886 = vst.msk [vmem:[%s3058_s6 + $0x4] sm:$0xf] %vm1884_vm1, %v2149_v62  ;;  %v3077_v8 = vadd.f32 %v3013_v14, %v1335_v30  ;;  %v1780_v20 = vmax.f32 %v3018_v39, %v1704_v16  ;;  %v1338_v10 = vadd.f32 %v2835_v17, %v1337_v23  ;;  %v1707_v0 = vadd.f32 %v2267_v58, %v1386_v38  ;;  %v1339_v4 = vpop.f32.mrb[95].mxu0  ;;  %v1698_v6 = vpop.f32.mrb[95].mxu1 }
 0x1dd   : > { %v1778_v21 = vmax.f32 %v3008_v55, %v1696_v35  ;;  %v1699_v2 = vadd.f32 %v1698_v6, %v1378_v45  ;;  %v3257_v39 = vmax.f32 %v2843_v29, %v2931_v42  ;;  %v1399_v55 = vadd.f32 %v2835_v17, %v2794_v32 }
 0x1de   : > { %v1798_v25 = vmax.f32 %v3256_v12, %v1780_v20  ;;  %v3086_v15 = vadd.f32 %v3016_v41, %v1338_v10  ;;  %v1781_v14 = vmax.f32 %v3021_v27, %v1707_v0  ;;  %v1391_v41 = vadd.f32 %v2835_v17, %v2786_v24 }
 0x1df   : > { %v1796_v37 = vmax.f32 %v3257_v39, %v1778_v21  ;;  %v1779_v51 = vmax.f32 %v3011_v56, %v1699_v2  ;;  %v3259_v27 = vmax.f32 %v2849_v7, %v2939_v57  ;;  %v1402_v32 = vadd.f32 %v2835_v17, %v2798_v36 }
 0x1e0   : > { %v2152_v33 = vpack.c.bf16 %v1798_v25, %v1798_v25  ;;  %v1799_v19 = vmax.f32 %v3258_v61, %v1781_v14  ;;  %v1394_v30 = vadd.f32 %v2835_v17, %v2790_v28  ;;  %v3260_v10 = vmax.f32 %v2883_v34, %v2948_v31 }
 0x1e1   : > { %v2150_v63 = vpack.c.bf16 %v1796_v37, %v1796_v37  ;;  %v1797_v29 = vmax.f32 %v3259_v27, %v1779_v51  ;;  %v1342_v42 = vpop.f32.mrb[96].mxu0  ;;  %v2270_v56 = vpop.f32.mrb[96].mxu1  ;;  %v1415_v2 = vadd.f32 %v2835_v17, %v2810_v48  ;;  %v3262_v12 = vmax.f32 %v2887_v11, %v2955_v26 }
 0x1e2   : > { %1889 = vst.msk [vmem:[%s3058_s6 + $0x10] sm:$0xf] %vm1884_vm1, %v2152_v33  ;;  %v2153_v38 = vpack.c.bf16 %v1799_v19, %v1799_v19  ;;  %v1343_v13 = vadd.f32 %v2835_v17, %v1342_v42  ;;  %v1720_v3 = vadd.f32 %v2270_v56, %v1399_v55  ;;  %v1344_v62 = vpop.f32.mrb[97].mxu0  ;;  %v1711_v24 = vpop.f32.mrb[97].mxu1  ;;  %v1407_v31 = vadd.f32 %v2835_v17, %v2802_v40  ;;  %v3266_v42 = vld [vmem:[#allocation14_spill] sm:$0xff] }
 0x1e3   : > { %1887 = vst.msk [vmem:[%s3058_s6 + $0x8] sm:$0xf] %vm1884_vm1, %v2150_v63  ;;  %v2151_v7 = vpack.c.bf16 %v1797_v29, %v1797_v29  ;;  %v1712_v57 = vadd.f32 %v1711_v24, %v1391_v41  ;;  %v1345_v16 = vpop.f32.mrb[98].mxu0  ;;  %v2271_v43 = vpop.f32.mrb[98].mxu1  ;;  %v1418_v48 = vadd.f32 %v2835_v17, %v2814_v52  ;;  %v1410_v39 = vadd.f32 %v2835_v17, %v2806_v44  ;;  %v3264_v52 = vld [vmem:[#allocation22_spill] sm:$0xff]  ;;  %v3265_v29 = vld [vmem:[#allocation9_spill] sm:$0xff] }
 0x1e4   : > { %1890 = vst.msk [vmem:[%s3058_s6 + $0x14] sm:$0xf] %vm1884_vm1, %v2153_v38  ;;  %v1664_v36 = vadd.f32 %v3026_v49, %v1343_v13  ;;  %v1784_v60 = vmax.f32 %v3045_v50, %v1720_v3  ;;  %v1346_v45 = vadd.f32 %v2835_v17, %v1345_v16  ;;  %v1723_v35 = vadd.f32 %v2271_v43, %v1402_v32  ;;  %v1347_v23 = vpop.f32.mrb[99].mxu0  ;;  %v1714_v58 = vpop.f32.mrb[99].mxu1  ;;  %v3268_v38 = vld [vmem:[#allocation23_spill] sm:$0xff]  ;;  %v3269_v62 = vld [vmem:[#allocation6_spill] sm:$0xff] }
 0x1e5   : > { %1888 = vst.msk [vmem:[%s3058_s6 + $0xc] sm:$0xf] %vm1884_vm1, %v2151_v7  ;;  %v1782_v28 = vmax.f32 %v3030_v46, %v1712_v57  ;;  %v1715_v20 = vadd.f32 %v1714_v58, %v1394_v30  ;;  %v3261_v50 = vmax.f32 %v2861_v53, %v2951_v1  ;;  %v3267_v56 = vmax.f32 %v3265_v29, %v3266_v42  ;;  %v3270_v24 = vld [vmem:[#allocation15_spill] sm:$0xff]  ;;  %v3272_v16 = vld [vmem:[#allocation4_spill] sm:$0xff]  ;;  %v3276_v23 = vld [vmem:[#allocation2_spill] sm:$0xff] }
 0x1e6   : > { %v1802_v0 = vmax.f32 %v3260_v10, %v1784_v60  ;;  %v1667_v4 = vadd.f32 %v3033_v22, %v1346_v45  ;;  %v1785_v49 = vmax.f32 %v3053_v47, %v1723_v35  ;;  %v3263_v47 = vmax.f32 %v2869_v5, %v2959_v9  ;;  %v3274_v60 = vld [vmem:[#allocation16_spill] sm:$0xff]  ;;  %v3278_v10 = vld [vmem:[#allocation17_spill] sm:$0xff] }
 0x1e7   : > { %v1800_v6 = vmax.f32 %v3261_v50, %v1782_v28  ;;  %v1783_v21 = vmax.f32 %v3035_v54, %v1715_v20  ;;  %v3271_v30 = vmax.f32 %v3269_v62, %v3270_v24  ;;  %v1431_v43 = vadd.f32 %v2835_v17, %v3272_v16  ;;  %v3277_v20 = vld [vmem:[#allocation7_spill] sm:$0xff]  ;;  %v3280_v50 = vld [vmem:[#allocation5_spill] sm:$0xff]  ;;  %v3289_v29 = vld [vmem:[#allocation20_spill] sm:$0xff] }
 0x1e8   : > { %v2156_v46 = vpack.c.bf16 %v1802_v0, %v1802_v0  ;;  %v1803_v34 = vmax.f32 %v3262_v12, %v1785_v49  ;;  %v1423_v58 = vadd.f32 %v2835_v17, %v3276_v23  ;;  %v3279_v0 = vmax.f32 %v3277_v20, %v3278_v10 }
 0x1e9   : > { %v2154_v22 = vpack.c.bf16 %v1800_v6, %v1800_v6  ;;  %v1801_v53 = vmax.f32 %v3263_v47, %v1783_v21  ;;  %v1350_v1 = vpop.f32.mrb[100].mxu0  ;;  %v2274_v54 = vpop.f32.mrb[100].mxu1  ;;  %v1434_v6 = vadd.f32 %v2835_v17, %v3280_v50 }
 0x1ea   : > { %1893 = vst.msk [vmem:[%s3058_s6 + $0x20] sm:$0xf] %vm1884_vm1, %v2156_v46  ;;  %v2157_v25 = vpack.c.bf16 %v1803_v34, %v1803_v34  ;;  %v1351_v11 = vadd.f32 %v2835_v17, %v1350_v1  ;;  %v1736_v26 = vadd.f32 %v2274_v54, %v1415_v2  ;;  %v1352_v14 = vpop.f32.mrb[101].mxu0  ;;  %v1727_v40 = vpop.f32.mrb[101].mxu1 }
 0x1eb   : > { %1891 = vst.msk [vmem:[%s3058_s6 + $0x18] sm:$0xf] %vm1884_vm1, %v2154_v22  ;;  %v2155_v5 = vpack.c.bf16 %v1801_v53, %v1801_v53  ;;  %v1728_v9 = vadd.f32 %v1727_v40, %v1407_v31  ;;  %v1353_v37 = vpop.f32.mrb[102].mxu0  ;;  %v2275_v51 = vpop.f32.mrb[102].mxu1  ;;  %v3281_v31 = vld [vmem:[#allocation3_spill] sm:$0xff] }
 0x1ec   : > { %1894 = vst.msk [vmem:[%s3058_s6 + $0x24] sm:$0xf] %vm1884_vm1, %v2157_v25  ;;  %v1672_v55 = vadd.f32 %v3264_v52, %v1351_v11  ;;  %v1788_v33 = vmax.f32 %v1664_v36, %v1736_v26  ;;  %v1354_v61 = vadd.f32 %v2835_v17, %v1353_v37  ;;  %v1739_v19 = vadd.f32 %v2275_v51, %v1418_v48  ;;  %v1355_v41 = vpop.f32.mrb[103].mxu0  ;;  %v1730_v63 = vpop.f32.mrb[103].mxu1  ;;  %v3273_v36 = vld [vmem:[#allocation11_spill] sm:$0xff]  ;;  %v3282_v37 = vld [vmem:[#allocation8_spill] sm:$0xff] }
 0x1ed   : > { %1892 = vst.msk [vmem:[%s3058_s6 + $0x1c] sm:$0xf] %vm1884_vm1, %v2155_v5  ;;  %v1786_v44 = vmax.f32 %v3077_v8, %v1728_v9  ;;  %v1731_v27 = vadd.f32 %v1730_v63, %v1410_v39  ;;  %v3275_v45 = vmax.f32 %v3273_v36, %v3274_v60  ;;  %v1426_v22 = vadd.f32 %v2835_v17, %v3281_v31  ;;  %v3283_v51 = vld [vmem:[#allocation18_spill] sm:$0xff] }
 0x1ee   : > { %v1806_v32 = vmax.f32 %v3267_v56, %v1788_v33  ;;  %v1675_v13 = vadd.f32 %v3268_v38, %v1354_v61  ;;  %v1789_v3 = vmax.f32 %v1667_v4, %v1739_v19  ;;  %v3284_v52 = vmax.f32 %v3282_v37, %v3283_v51  ;;  %v3286_v61 = vld [vmem:[#allocation19_spill] sm:$0xff]  ;;  %v3292_v38 = vld [vmem:[#allocation21_spill] sm:$0xff] }
 0x1ef   : > { %v1804_v7 = vmax.f32 %v3271_v30, %v1786_v44  ;;  %v1787_v57 = vmax.f32 %v3086_v15, %v1731_v27  ;;  %v3288_v27 = vld [vmem:[#allocation10_spill] sm:$0xff] }
 0x1f0   : > { %v2160_v8 = vpack.c.bf16 %v1806_v32, %v1806_v32  ;;  %v1807_v35 = vmax.f32 %v3275_v45, %v1789_v3  ;;  %v3291_v32 = vld [vmem:[#allocation13_spill] sm:$0xff] }
 0x1f1   : > { %v2158_v28 = vpack.c.bf16 %v1804_v7, %v1804_v7  ;;  %v1805_v4 = vmax.f32 %v3279_v0, %v1787_v57  ;;  %v1358_v49 = vpop.f32.mrb[104].mxu0  ;;  %v2278_v15 = vpop.f32.mrb[104].mxu1  ;;  %v3293_v3 = vmax.f32 %v3291_v32, %v3292_v38 }
 0x1f2   : > { %1897 = vst.msk [vmem:[%s3058_s6 + $0x30] sm:$0xf] %vm1884_vm1, %v2160_v8  ;;  %v2161_v21 = vpack.c.bf16 %v1807_v35, %v1807_v35  ;;  %v1359_v2 = vadd.f32 %v2835_v17, %v1358_v49  ;;  %v1752_v46 = vadd.f32 %v2278_v15, %v1431_v43  ;;  %v1360_v12 = vpop.f32.mrb[105].mxu0  ;;  %v1743_v34 = vpop.f32.mrb[105].mxu1 }
 0x1f3   : > { %1895 = vst.msk [vmem:[%s3058_s6 + $0x28] sm:$0xf] %vm1884_vm1, %v2158_v28  ;;  %v2159_v47 = vpack.c.bf16 %v1805_v4, %v1805_v4  ;;  %v1744_v53 = vadd.f32 %v1743_v34, %v1423_v58  ;;  %v1361_v1 = vpop.f32.mrb[106].mxu0  ;;  %v2279_v54 = vpop.f32.mrb[106].mxu1 }
 0x1f4   : > { %1898 = vst.msk [vmem:[%s3058_s6 + $0x34] sm:$0xf] %vm1884_vm1, %v2161_v21  ;;  %v1680_v48 = vadd.f32 %v3042_v59, %v1359_v2  ;;  %v1362_v25 = vadd.f32 %v2835_v17, %v1361_v1  ;;  %v1755_v11 = vadd.f32 %v2279_v54, %v1434_v6  ;;  %v1363_v26 = vpop.f32.mrb[107].mxu0  ;;  %v1746_v14 = vpop.f32.mrb[107].mxu1  ;;  %v3285_v17 = vld [vmem:[#allocation12_spill] sm:$0xff] }
 0x1f5   : > { %1896 = vst.msk [vmem:[%s3058_s6 + $0x2c] sm:$0xf] %vm1884_vm1, %v2159_v47  ;;  %v1790_v40 = vmax.f32 %v1672_v55, %v1744_v53  ;;  %v1747_v39 = vadd.f32 %v1746_v14, %v1426_v22  ;;  %v3287_v19 = vmax.f32 %v3285_v17, %v3286_v61  ;;  %v3290_v55 = vmax.f32 %v3288_v27, %v3289_v29 }
 0x1f6   : > { %v1792_v5 = vmax.f32 %v1680_v48, %v1752_v46  ;;  %v1683_v9 = vadd.f32 %v3048_v18, %v1362_v25 }
 0x1f7   : > { %v1808_v59 = vmax.f32 %v3284_v52, %v1790_v40  ;;  %v1791_v33 = vmax.f32 %v1675_v13, %v1747_v39 }
 0x1f8   : > { %v1810_v41 = vmax.f32 %v3287_v19, %v1792_v5  ;;  %v1793_v63 = vmax.f32 %v1683_v9, %v1755_v11 }
 0x1f9   : > { %v2162_v44 = vpack.c.bf16 %v1808_v59, %v1808_v59  ;;  %v1809_v42 = vmax.f32 %v3290_v55, %v1791_v33 }
 0x1fa   : > { %v2164_v56 = vpack.c.bf16 %v1810_v41, %v1810_v41  ;;  %v1811_v18 = vmax.f32 %v3293_v3, %v1793_v63 }
 0x1fb   : > { %1899 = vst.msk [vmem:[%s3058_s6 + $0x38] sm:$0xf] %vm1884_vm1, %v2162_v44  ;;  %v2163_v62 = vpack.c.bf16 %v1809_v42, %v1809_v42 }
 0x1fc   : > { %1901 = vst.msk [vmem:[%s3058_s6 + $0x40] sm:$0xf] %vm1884_vm1, %v2164_v56  ;;  %v2165_v13 = vpack.c.bf16 %v1811_v18, %v1811_v18 }
 0x1fd   : > { %1900 = vst.msk [vmem:[%s3058_s6 + $0x3c] sm:$0xf] %vm1884_vm1, %v2163_v62 }
 0x1fe   : > { %1902 = vst.msk [vmem:[%s3058_s6 + $0x44] sm:$0xf] %vm1884_vm1, %v2165_v13 }
 0x1ff PF: > { %s13_s12 = sadd.s32 1, %s2491_s12  }
 0x200   : > { %p10_p4 = scmp.ge.s32.totalorder %s13_s12, 4  }
 0x202   :  { %12 = sbr.rel (!%p10_p4) target bundleno = 1 (0x1), region = 62 }

// kernel: net_forward.5
= control target key start
LH: loop header
LB: loop body
LE: loop exit
PB: predicated region body
PF: predicated region fallthrough
CT: control target
= control target key end

     0   :  { %vm8620_vm0 = vmmov 0   ;;  %s10550_s1 = inlined_call_operand.vmem [shape: bf16[9216,128], index: 1, kind: input, shape index: {}]   ;;  %s10551_s0 = inlined_call_operand.vmem [shape: bf16[8,9216], index: 0, kind: input, shape index: {}]   ;;  %s10552_s2 = inlined_call_operand.vmem [shape: f32[1,128], index: 2, kind: input, shape index: {}]   ;;  %s10553_s3 = inlined_call_operand.vmem [shape: bf16[128,128], index: 3, kind: input, shape index: {}]   ;;  %s10554_s4 = inlined_call_operand.vmem [shape: f32[1,128], index: 4, kind: input, shape index: {}]   ;;  %s10555_s5 = inlined_call_operand.vmem [shape: f32[8,128], index: 5, kind: output, shape index: {}]  }
   0x1   :  { %v7963_v0 = vld [vmem:[%s10550_s1 + $0x40] sm:$0xff]   ;;  %v7967_v4 = vld [vmem:[%s10550_s1 + $0x48] sm:$0xff]   ;;  %v7971_v8 = vld [vmem:[%s10550_s1 + $0x50] sm:$0xff]  }
   0x2   :  { %v7964_v1 = vld [vmem:[%s10550_s1 + $0xc0] sm:$0xff]   ;;  %7140 = vmatprep.subr.bf16.mxu0 %v7963_v0  ;;  %v7968_v5 = vld [vmem:[%s10550_s1 + $0xc8] sm:$0xff]   ;;  %v7972_v9 = vld [vmem:[%s10550_s1 + $0xd0] sm:$0xff]  }
   0x3   :  { %v7965_v2 = vld [vmem:[%s10550_s1] sm:$0xff]   ;;  %7162 = vmatprep.subr.bf16.mxu1 %v7964_v1  ;;  %v7969_v6 = vld [vmem:[%s10550_s1 + $0x8] sm:$0xff]   ;;  %v7973_v10 = vld [vmem:[%s10550_s1 + $0x10] sm:$0xff]  }
   0x4   :  { %v7966_v3 = vld [vmem:[%s10550_s1 + $0x80] sm:$0xff]   ;;  %7141 = vmatpush3.bf16.msra.mxu0 %v7965_v2  ;;  %v7970_v7 = vld [vmem:[%s10550_s1 + $0x88] sm:$0xff]   ;;  %v7974_v11 = vld [vmem:[%s10550_s1 + $0x90] sm:$0xff]  }
   0x5   :  { %7163 = vmatpush3.bf16.msra.mxu1 %v7966_v3  ;;  %7142 = vmatprep.subr.bf16.mxu0 %v7967_v4  ;;  %v7975_v12 = vld [vmem:[%s10550_s1 + $0x58] sm:$0xff]   ;;  %v7979_v16 = vld [vmem:[%s10550_s1 + $0x60] sm:$0xff]   ;;  %v7983_v20 = vld [vmem:[%s10550_s1 + $0x68] sm:$0xff]  }
   0x6   :  { %7164 = vmatprep.subr.bf16.mxu1 %v7968_v5  ;;  %v7976_v13 = vld [vmem:[%s10550_s1 + $0xd8] sm:$0xff]   ;;  %v7980_v17 = vld [vmem:[%s10550_s1 + $0xe0] sm:$0xff]   ;;  %v7984_v21 = vld [vmem:[%s10550_s1 + $0xe8] sm:$0xff]  }
   0x7   :  { %v7977_v14 = vld [vmem:[%s10550_s1 + $0x18] sm:$0xff]   ;;  %v7981_v18 = vld [vmem:[%s10550_s1 + $0x20] sm:$0xff]   ;;  %v7985_v22 = vld [vmem:[%s10550_s1 + $0x28] sm:$0xff]  }
   0x8   :  { %7143 = vmatpush3.bf16.msra.mxu0 %v7969_v6  ;;  %v7978_v15 = vld [vmem:[%s10550_s1 + $0x98] sm:$0xff]   ;;  %v7982_v19 = vld [vmem:[%s10550_s1 + $0xa0] sm:$0xff]   ;;  %v7986_v23 = vld [vmem:[%s10550_s1 + $0xa8] sm:$0xff]  }
   0x9   :  { %7165 = vmatpush3.bf16.msra.mxu1 %v7970_v7  ;;  %7144 = vmatprep.subr.bf16.mxu0 %v7971_v8  ;;  %v7987_v24 = vld [vmem:[%s10550_s1 + $0x70] sm:$0xff]   ;;  %v7991_v28 = vld [vmem:[%s10550_s1 + $0x78] sm:$0xff]   ;;  %v21_v32 = vld [vmem:[%s10551_s0] sm:$0xff] }
   0xa   :  { %7166 = vmatprep.subr.bf16.mxu1 %v7972_v9  ;;  %v7988_v25 = vld [vmem:[%s10550_s1 + $0xf0] sm:$0xff]   ;;  %v7992_v29 = vld [vmem:[%s10550_s1 + $0xf8] sm:$0xff]   ;;  %v22_v33 = vld [vmem:[%s10551_s0 + $0x8] sm:$0xff]  ;;  %v6483_v34 = vcombine.low %v21_v32, %v21_v32  ;;  %v6484_v35 = vcombine.high %v21_v32, %v21_v32 }
   0xb   :  { %v7989_v26 = vld [vmem:[%s10550_s1 + $0x30] sm:$0xff]   ;;  %v7993_v30 = vld [vmem:[%s10550_s1 + $0x38] sm:$0xff]   ;;  %v6485_v36 = vcombine.low %v22_v33, %v22_v33  ;;  %v6486_v37 = vcombine.high %v22_v33, %v22_v33  ;;  %v7999_v38 = vld [vmem:[%s10550_s1 + $0x140] sm:$0xff]  }
   0xc   :  { %7145 = vmatpush3.bf16.msra.mxu0 %v7973_v10  ;;  %v7990_v27 = vld [vmem:[%s10550_s1 + $0xb0] sm:$0xff]   ;;  %v7994_v31 = vld [vmem:[%s10550_s1 + $0xb8] sm:$0xff]   ;;  %v8000_v39 = vld [vmem:[%s10550_s1 + $0x1c0] sm:$0xff]   ;;  %4956 = vmatprep.mubr.bf16.mxu0 %v6484_v35 }
   0xd   :  { %7167 = vmatpush3.bf16.msra.mxu1 %v7974_v11  ;;  %7146 = vmatprep.subr.bf16.mxu0 %v7975_v12  ;;  %v8001_v40 = vld [vmem:[%s10550_s1 + $0x100] sm:$0xff]   ;;  %v8003_v42 = vld [vmem:[%s10550_s1 + $0x148] sm:$0xff]   ;;  %v8007_v46 = vld [vmem:[%s10550_s1 + $0x150] sm:$0xff]  }
   0xe   :  { %7168 = vmatprep.subr.bf16.mxu1 %v7976_v13  ;;  %4996 = vmatprep.mubr.bf16.mxu1 %v6486_v37  ;;  %v8002_v41 = vld [vmem:[%s10550_s1 + $0x180] sm:$0xff]   ;;  %v8004_v43 = vld [vmem:[%s10550_s1 + $0x1c8] sm:$0xff]   ;;  %v8008_v47 = vld [vmem:[%s10550_s1 + $0x1d0] sm:$0xff]  }
   0xf   :  { %v8005_v44 = vld [vmem:[%s10550_s1 + $0x108] sm:$0xff]   ;;  %v8009_v48 = vld [vmem:[%s10550_s1 + $0x110] sm:$0xff]   ;;  %v8011_v50 = vld [vmem:[%s10550_s1 + $0x158] sm:$0xff]  }
  0x10   :  { %7147 = vmatpush3.bf16.msra.mxu0 %v7977_v14  ;;  %v8006_v45 = vld [vmem:[%s10550_s1 + $0x188] sm:$0xff]   ;;  %v8010_v49 = vld [vmem:[%s10550_s1 + $0x190] sm:$0xff]   ;;  %v8012_v51 = vld [vmem:[%s10550_s1 + $0x1d8] sm:$0xff]  }
  0x11   :  { %7169 = vmatpush3.bf16.msra.mxu1 %v7978_v15  ;;  %7148 = vmatprep.subr.bf16.mxu0 %v7979_v16  ;;  %v8013_v52 = vld [vmem:[%s10550_s1 + $0x118] sm:$0xff]   ;;  %v8015_v54 = vld [vmem:[%s10550_s1 + $0x160] sm:$0xff]   ;;  %v8019_v58 = vld [vmem:[%s10550_s1 + $0x168] sm:$0xff]  }
  0x12   :  { %7170 = vmatprep.subr.bf16.mxu1 %v7980_v17  ;;  %v8014_v53 = vld [vmem:[%s10550_s1 + $0x198] sm:$0xff]   ;;  %v8016_v55 = vld [vmem:[%s10550_s1 + $0x1e0] sm:$0xff]   ;;  %v8020_v59 = vld [vmem:[%s10550_s1 + $0x1e8] sm:$0xff]  }
  0x13   :  { %v8017_v56 = vld [vmem:[%s10550_s1 + $0x120] sm:$0xff]   ;;  %v8021_v60 = vld [vmem:[%s10550_s1 + $0x128] sm:$0xff]   ;;  %v8023_v62 = vld [vmem:[%s10550_s1 + $0x170] sm:$0xff]  }
  0x14   :  { %7149 = vmatpush3.bf16.msra.mxu0 %v7981_v18  ;;  %v8018_v57 = vld [vmem:[%s10550_s1 + $0x1a0] sm:$0xff]   ;;  %v8022_v61 = vld [vmem:[%s10550_s1 + $0x1a8] sm:$0xff]   ;;  %v8024_v63 = vld [vmem:[%s10550_s1 + $0x1f0] sm:$0xff]  }
  0x15   :  { %7171 = vmatpush3.bf16.msra.mxu1 %v7982_v19  ;;  %7150 = vmatprep.subr.bf16.mxu0 %v7983_v20  ;;  %v8025_v0 = vld [vmem:[%s10550_s1 + $0x130] sm:$0xff]   ;;  %v8027_v2 = vld [vmem:[%s10550_s1 + $0x178] sm:$0xff]   ;;  %v8035_v12 = vld [vmem:[%s10550_s1 + $0x240] sm:$0xff]  }
  0x16   :  { %7172 = vmatprep.subr.bf16.mxu1 %v7984_v21  ;;  %v8026_v1 = vld [vmem:[%s10550_s1 + $0x1b0] sm:$0xff]   ;;  %v8028_v3 = vld [vmem:[%s10550_s1 + $0x1f8] sm:$0xff]   ;;  %v8036_v13 = vld [vmem:[%s10550_s1 + $0x2c0] sm:$0xff]  }
  0x17   :  { %v8029_v4 = vld [vmem:[%s10550_s1 + $0x138] sm:$0xff]   ;;  %v23_v6 = vld [vmem:[%s10551_s0 + $0x10] sm:$0xff]  ;;  %v8037_v14 = vld [vmem:[%s10550_s1 + $0x200] sm:$0xff]  }
  0x18   :  { %7151 = vmatpush3.bf16.msra.mxu0 %v7985_v22  ;;  %v8030_v5 = vld [vmem:[%s10550_s1 + $0x1b8] sm:$0xff]   ;;  %v6487_v7 = vcombine.low %v23_v6, %v23_v6  ;;  %v6488_v8 = vcombine.high %v23_v6, %v23_v6  ;;  %v8038_v15 = vld [vmem:[%s10550_s1 + $0x280] sm:$0xff]   ;;  %v8039_v16 = vld [vmem:[%s10550_s1 + $0x248] sm:$0xff]  }
  0x19   :  { %7173 = vmatpush3.bf16.msra.mxu1 %v7986_v23  ;;  %7152 = vmatprep.subr.bf16.mxu0 %v7987_v24  ;;  %v24_v9 = vld [vmem:[%s10551_s0 + $0x18] sm:$0xff]  ;;  %v8040_v17 = vld [vmem:[%s10550_s1 + $0x2c8] sm:$0xff]   ;;  %v8043_v20 = vld [vmem:[%s10550_s1 + $0x250] sm:$0xff]  }
  0x1a   :  { %7174 = vmatprep.subr.bf16.mxu1 %v7988_v25  ;;  %v6489_v10 = vcombine.low %v24_v9, %v24_v9  ;;  %v6490_v11 = vcombine.high %v24_v9, %v24_v9  ;;  %v8041_v18 = vld [vmem:[%s10550_s1 + $0x208] sm:$0xff]   ;;  %v8044_v21 = vld [vmem:[%s10550_s1 + $0x2d0] sm:$0xff]   ;;  %v8047_v24 = vld [vmem:[%s10550_s1 + $0x258] sm:$0xff]  }
  0x1b   :  { %v8042_v19 = vld [vmem:[%s10550_s1 + $0x288] sm:$0xff]   ;;  %v8045_v22 = vld [vmem:[%s10550_s1 + $0x210] sm:$0xff]   ;;  %v8048_v25 = vld [vmem:[%s10550_s1 + $0x2d8] sm:$0xff]  }
  0x1c   :  { %7153 = vmatpush3.bf16.msra.mxu0 %v7989_v26  ;;  %v8046_v23 = vld [vmem:[%s10550_s1 + $0x290] sm:$0xff]   ;;  %v8049_v26 = vld [vmem:[%s10550_s1 + $0x218] sm:$0xff]   ;;  %v8055_v32 = vld [vmem:[%s10550_s1 + $0x268] sm:$0xff]  }
  0x1d   :  { %7175 = vmatpush3.bf16.msra.mxu1 %v7990_v27  ;;  %7154 = vmatprep.subr.bf16.mxu0 %v7991_v28  ;;  %v8050_v27 = vld [vmem:[%s10550_s1 + $0x298] sm:$0xff]   ;;  %v8051_v28 = vld [vmem:[%s10550_s1 + $0x260] sm:$0xff]   ;;  %v8056_v33 = vld [vmem:[%s10550_s1 + $0x2e8] sm:$0xff]  }
  0x1e   :  { %7176 = vmatprep.subr.bf16.mxu1 %v7992_v29  ;;  %v8052_v29 = vld [vmem:[%s10550_s1 + $0x2e0] sm:$0xff]   ;;  %v8058_v35 = vld [vmem:[%s10550_s1 + $0x2a8] sm:$0xff]   ;;  %v8060_v37 = vld [vmem:[%s10550_s1 + $0x2f0] sm:$0xff]  }
  0x1f   :  { %v8091_v6 = vld [vmem:[%s10550_s1 + $0x368] sm:$0xff]  }
  0x20   :  { %7155 = vmatpush3.bf16.msra.mxu0 %v7993_v30  ;;  %v8053_v30 = vld [vmem:[%s10550_s1 + $0x220] sm:$0xff]   ;;  %v8094_v9 = vld [vmem:[%s10550_s1 + $0x3a8] sm:$0xff]  }
  0x21   :  { %7177 = vmatpush3.bf16.msra.mxu1 %v7994_v31  ;;  %7184 = vmatprep.subr.bf16.mxu0 %v7999_v38  ;;  %v8054_v31 = vld [vmem:[%s10550_s1 + $0x2a0] sm:$0xff]   ;;  %v8061_v38 = vld [vmem:[%s10550_s1 + $0x230] sm:$0xff]  }
  0x22   :  { %7206 = vmatprep.subr.bf16.mxu1 %v8000_v39  ;;  %v8062_v39 = vld [vmem:[%s10550_s1 + $0x2b0] sm:$0xff]  }
  0x23   :  { %4957 = vmatmul.mubr.bf16.vlgmr.msra.gmra.mrb[0].mxu0 %v6483_v34  ;;  %v8057_v34 = vld [vmem:[%s10550_s1 + $0x228] sm:$0xff]  }
  0x24   :  { %4997 = vmatmul.mubr.bf16.vlgmr.msra.gmra.mrb[0].mxu1 %v6485_v36  ;;  %7185 = vmatpush3.bf16.msra.mxu0 %v8001_v40  ;;  %v8059_v36 = vld [vmem:[%s10550_s1 + $0x270] sm:$0xff]   ;;  %v8063_v40 = vld [vmem:[%s10550_s1 + $0x278] sm:$0xff]  }
  0x25   :  { %7207 = vmatpush3.bf16.msra.mxu1 %v8002_v41  ;;  %7186 = vmatprep.subr.bf16.mxu0 %v8003_v42  ;;  %v8064_v41 = vld [vmem:[%s10550_s1 + $0x2f8] sm:$0xff]  }
  0x26   :  { %7208 = vmatprep.subr.bf16.mxu1 %v8004_v43  ;;  %5036 = vmatprep.mubr.bf16.mxu0 %v6488_v8  ;;  %v8065_v42 = vld [vmem:[%s10550_s1 + $0x238] sm:$0xff]   ;;  %v8093_v8 = vld [vmem:[%s10550_s1 + $0x328] sm:$0xff]  }
  0x27   :  { %5076 = vmatprep.mubr.bf16.mxu1 %v6490_v11  ;;  %v8066_v43 = vld [vmem:[%s10550_s1 + $0x2b8] sm:$0xff]   ;;  %v8096_v11 = vld [vmem:[%s10550_s1 + $0x3f0] sm:$0xff]  }
  0x28   :  { %7187 = vmatpush3.bf16.msra.mxu0 %v8005_v44  ;;  %v25_v44 = vld [vmem:[%s10551_s0 + $0x20] sm:$0xff] }
  0x29   :  { %7209 = vmatpush3.bf16.msra.mxu1 %v8006_v45  ;;  %7188 = vmatprep.subr.bf16.mxu0 %v8007_v46  ;;  %v26_v45 = vld [vmem:[%s10551_s0 + $0x28] sm:$0xff]  ;;  %v6491_v46 = vcombine.low %v25_v44, %v25_v44 }
  0x2a   :  { %7210 = vmatprep.subr.bf16.mxu1 %v8008_v47  ;;  %v6492_v47 = vcombine.high %v25_v44, %v25_v44  ;;  %v8127_v44 = vld [vmem:[%s10550_s1 + $0x468] sm:$0xff]  }
  0x2c   :  { %7189 = vmatpush3.bf16.msra.mxu0 %v8009_v48  ;;  %v6493_v48 = vcombine.low %v26_v45, %v26_v45 }
  0x2d   :  { %7211 = vmatpush3.bf16.msra.mxu1 %v8010_v49  ;;  %7190 = vmatprep.subr.bf16.mxu0 %v8011_v50  ;;  %v6494_v49 = vcombine.high %v26_v45, %v26_v45  ;;  %v8071_v50 = vld [vmem:[%s10550_s1 + $0x340] sm:$0xff]   ;;  %v8128_v45 = vld [vmem:[%s10550_s1 + $0x4e8] sm:$0xff]  }
  0x2e   :  { %7212 = vmatprep.subr.bf16.mxu1 %v8012_v51  ;;  %v8072_v51 = vld [vmem:[%s10550_s1 + $0x3c0] sm:$0xff]  }
  0x30   :  { %7191 = vmatpush3.bf16.msra.mxu0 %v8013_v52  ;;  %v8073_v52 = vld [vmem:[%s10550_s1 + $0x300] sm:$0xff]  }
  0x31   :  { %7213 = vmatpush3.bf16.msra.mxu1 %v8014_v53  ;;  %7192 = vmatprep.subr.bf16.mxu0 %v8015_v54  ;;  %v8074_v53 = vld [vmem:[%s10550_s1 + $0x380] sm:$0xff]   ;;  %v8075_v54 = vld [vmem:[%s10550_s1 + $0x348] sm:$0xff]  }
  0x32   :  { %7214 = vmatprep.subr.bf16.mxu1 %v8016_v55  ;;  %v8076_v55 = vld [vmem:[%s10550_s1 + $0x3c8] sm:$0xff]  }
  0x34   :  { %7193 = vmatpush3.bf16.msra.mxu0 %v8017_v56  ;;  %v8077_v56 = vld [vmem:[%s10550_s1 + $0x308] sm:$0xff]  }
  0x35   :  { %7215 = vmatpush3.bf16.msra.mxu1 %v8018_v57  ;;  %7194 = vmatprep.subr.bf16.mxu0 %v8019_v58  ;;  %v8078_v57 = vld [vmem:[%s10550_s1 + $0x388] sm:$0xff]   ;;  %v8079_v58 = vld [vmem:[%s10550_s1 + $0x350] sm:$0xff]  }
  0x36   :  { %7216 = vmatprep.subr.bf16.mxu1 %v8020_v59  ;;  %v8080_v59 = vld [vmem:[%s10550_s1 + $0x3d0] sm:$0xff]  }
  0x38   :  { %7195 = vmatpush3.bf16.msra.mxu0 %v8021_v60  ;;  %v8081_v60 = vld [vmem:[%s10550_s1 + $0x310] sm:$0xff]  }
  0x39   :  { %7217 = vmatpush3.bf16.msra.mxu1 %v8022_v61  ;;  %7196 = vmatprep.subr.bf16.mxu0 %v8023_v62  ;;  %v8082_v61 = vld [vmem:[%s10550_s1 + $0x390] sm:$0xff]   ;;  %v8083_v62 = vld [vmem:[%s10550_s1 + $0x358] sm:$0xff]  }
  0x3a   :  { %7218 = vmatprep.subr.bf16.mxu1 %v8024_v63  ;;  %v8084_v63 = vld [vmem:[%s10550_s1 + $0x3d8] sm:$0xff]  }
  0x3c   :  { %7197 = vmatpush3.bf16.msra.mxu0 %v8025_v0  ;;  %v8085_v0 = vld [vmem:[%s10550_s1 + $0x318] sm:$0xff]  }
  0x3d   :  { %7219 = vmatpush3.bf16.msra.mxu1 %v8026_v1  ;;  %7198 = vmatprep.subr.bf16.mxu0 %v8027_v2  ;;  %v8086_v1 = vld [vmem:[%s10550_s1 + $0x398] sm:$0xff]   ;;  %v8087_v2 = vld [vmem:[%s10550_s1 + $0x360] sm:$0xff]  }
  0x3e   :  { %7220 = vmatprep.subr.bf16.mxu1 %v8028_v3  ;;  %v8088_v3 = vld [vmem:[%s10550_s1 + $0x3e0] sm:$0xff]  }
  0x40   :  { %7199 = vmatpush3.bf16.msra.mxu0 %v8029_v4  ;;  %v8089_v4 = vld [vmem:[%s10550_s1 + $0x320] sm:$0xff]  }
  0x41   :  { %7221 = vmatpush3.bf16.msra.mxu1 %v8030_v5  ;;  %7228 = vmatprep.subr.bf16.mxu0 %v8035_v12  ;;  %v8090_v5 = vld [vmem:[%s10550_s1 + $0x3a0] sm:$0xff]   ;;  %v8097_v12 = vld [vmem:[%s10550_s1 + $0x330] sm:$0xff]  }
  0x42   :  { %7250 = vmatprep.subr.bf16.mxu1 %v8036_v13  ;;  %v8098_v13 = vld [vmem:[%s10550_s1 + $0x3b0] sm:$0xff]  }
  0x43   :  { %5037 = vmatmul.mubr.bf16.vlgmr.msra.gmra.mrb[4].mxu0 %v6487_v7  ;;  %v8092_v7 = vld [vmem:[%s10550_s1 + $0x3e8] sm:$0xff]  }
  0x44   :  { %5077 = vmatmul.mubr.bf16.vlgmr.msra.gmra.mrb[4].mxu1 %v6489_v10  ;;  %7229 = vmatpush3.bf16.msra.mxu0 %v8037_v14  ;;  %v8095_v10 = vld [vmem:[%s10550_s1 + $0x370] sm:$0xff]   ;;  %v8099_v14 = vld [vmem:[%s10550_s1 + $0x378] sm:$0xff]  }
  0x45   :  { %7251 = vmatpush3.bf16.msra.mxu1 %v8038_v15  ;;  %7230 = vmatprep.subr.bf16.mxu0 %v8039_v16  ;;  %v8100_v15 = vld [vmem:[%s10550_s1 + $0x3f8] sm:$0xff]  }
  0x46   :  { %7252 = vmatprep.subr.bf16.mxu1 %v8040_v17  ;;  %5116 = vmatprep.mubr.bf16.mxu0 %v6492_v47  ;;  %v8101_v16 = vld [vmem:[%s10550_s1 + $0x338] sm:$0xff]   ;;  %v8130_v47 = vld [vmem:[%s10550_s1 + $0x4a8] sm:$0xff]  }
  0x47   :  { %5156 = vmatprep.mubr.bf16.mxu1 %v6494_v49  ;;  %v8102_v17 = vld [vmem:[%s10550_s1 + $0x3b8] sm:$0xff]   ;;  %v8132_v49 = vld [vmem:[%s10550_s1 + $0x4f0] sm:$0xff]  }
  0x48   :  { %7231 = vmatpush3.bf16.msra.mxu0 %v8041_v18  ;;  %v27_v18 = vld [vmem:[%s10551_s0 + $0x30] sm:$0xff] }
  0x49   :  { %7253 = vmatpush3.bf16.msra.mxu1 %v8042_v19  ;;  %7232 = vmatprep.subr.bf16.mxu0 %v8043_v20  ;;  %v28_v19 = vld [vmem:[%s10551_s0 + $0x38] sm:$0xff]  ;;  %v6495_v20 = vcombine.low %v27_v18, %v27_v18 }
  0x4a   :  { %7254 = vmatprep.subr.bf16.mxu1 %v8044_v21  ;;  %v6496_v21 = vcombine.high %v27_v18, %v27_v18  ;;  %v8163_v18 = vld [vmem:[%s10550_s1 + $0x568] sm:$0xff]  }
  0x4c   :  { %7233 = vmatpush3.bf16.msra.mxu0 %v8045_v22  ;;  %v6497_v22 = vcombine.low %v28_v19, %v28_v19 }
  0x4d   :  { %7255 = vmatpush3.bf16.msra.mxu1 %v8046_v23  ;;  %7234 = vmatprep.subr.bf16.mxu0 %v8047_v24  ;;  %v8107_v23 = vld [vmem:[%s10550_s1 + $0x440] sm:$0xff]   ;;  %v6498_v24 = vcombine.high %v28_v19, %v28_v19  ;;  %v8164_v19 = vld [vmem:[%s10550_s1 + $0x5e8] sm:$0xff]  }
  0x4e   :  { %7256 = vmatprep.subr.bf16.mxu1 %v8048_v25  ;;  %v8108_v25 = vld [vmem:[%s10550_s1 + $0x4c0] sm:$0xff]  }
  0x50   :  { %7235 = vmatpush3.bf16.msra.mxu0 %v8049_v26  ;;  %v8109_v26 = vld [vmem:[%s10550_s1 + $0x400] sm:$0xff]  }
  0x51   :  { %7257 = vmatpush3.bf16.msra.mxu1 %v8050_v27  ;;  %7236 = vmatprep.subr.bf16.mxu0 %v8051_v28  ;;  %v8110_v27 = vld [vmem:[%s10550_s1 + $0x480] sm:$0xff]   ;;  %v8111_v28 = vld [vmem:[%s10550_s1 + $0x448] sm:$0xff]  }
  0x52   :  { %7258 = vmatprep.subr.bf16.mxu1 %v8052_v29  ;;  %v8112_v29 = vld [vmem:[%s10550_s1 + $0x4c8] sm:$0xff]  }
  0x54   :  { %7237 = vmatpush3.bf16.msra.mxu0 %v8053_v30  ;;  %v8113_v30 = vld [vmem:[%s10550_s1 + $0x408] sm:$0xff]  }
  0x55   :  { %7259 = vmatpush3.bf16.msra.mxu1 %v8054_v31  ;;  %7238 = vmatprep.subr.bf16.mxu0 %v8055_v32  ;;  %v8114_v31 = vld [vmem:[%s10550_s1 + $0x488] sm:$0xff]   ;;  %v8115_v32 = vld [vmem:[%s10550_s1 + $0x450] sm:$0xff]  }
  0x56   :  { %7260 = vmatprep.subr.bf16.mxu1 %v8056_v33  ;;  %v8116_v33 = vld [vmem:[%s10550_s1 + $0x4d0] sm:$0xff]  }
  0x58   :  { %7239 = vmatpush3.bf16.msra.mxu0 %v8057_v34  ;;  %v8117_v34 = vld [vmem:[%s10550_s1 + $0x410] sm:$0xff]  }
  0x59   :  { %7261 = vmatpush3.bf16.msra.mxu1 %v8058_v35  ;;  %7240 = vmatprep.subr.bf16.mxu0 %v8059_v36  ;;  %v8118_v35 = vld [vmem:[%s10550_s1 + $0x490] sm:$0xff]   ;;  %v8119_v36 = vld [vmem:[%s10550_s1 + $0x458] sm:$0xff]  }
  0x5a   :  { %7262 = vmatprep.subr.bf16.mxu1 %v8060_v37  ;;  %v8120_v37 = vld [vmem:[%s10550_s1 + $0x4d8] sm:$0xff]  }
  0x5c   :  { %7241 = vmatpush3.bf16.msra.mxu0 %v8061_v38  ;;  %v8121_v38 = vld [vmem:[%s10550_s1 + $0x418] sm:$0xff]  }
  0x5d   :  { %7263 = vmatpush3.bf16.msra.mxu1 %v8062_v39  ;;  %7242 = vmatprep.subr.bf16.mxu0 %v8063_v40  ;;  %v8122_v39 = vld [vmem:[%s10550_s1 + $0x498] sm:$0xff]   ;;  %v8123_v40 = vld [vmem:[%s10550_s1 + $0x460] sm:$0xff]  }
  0x5e   :  { %7264 = vmatprep.subr.bf16.mxu1 %v8064_v41  ;;  %v8124_v41 = vld [vmem:[%s10550_s1 + $0x4e0] sm:$0xff]  }
  0x60   :  { %7243 = vmatpush3.bf16.msra.mxu0 %v8065_v42  ;;  %v8125_v42 = vld [vmem:[%s10550_s1 + $0x420] sm:$0xff]  }
  0x61   :  { %7265 = vmatpush3.bf16.msra.mxu1 %v8066_v43  ;;  %7272 = vmatprep.subr.bf16.mxu0 %v8071_v50  ;;  %v8126_v43 = vld [vmem:[%s10550_s1 + $0x4a0] sm:$0xff]   ;;  %v8133_v50 = vld [vmem:[%s10550_s1 + $0x430] sm:$0xff]  }
  0x62   :  { %7294 = vmatprep.subr.bf16.mxu1 %v8072_v51  ;;  %v8134_v51 = vld [vmem:[%s10550_s1 + $0x4b0] sm:$0xff]  }
  0x63   :  { %5117 = vmatmul.mubr.bf16.vlgmr.msra.gmra.mrb[8].mxu0 %v6491_v46  ;;  %v8129_v46 = vld [vmem:[%s10550_s1 + $0x428] sm:$0xff]  }
  0x64   :  { %5157 = vmatmul.mubr.bf16.vlgmr.msra.gmra.mrb[8].mxu1 %v6493_v48  ;;  %7273 = vmatpush3.bf16.msra.mxu0 %v8073_v52  ;;  %v8131_v48 = vld [vmem:[%s10550_s1 + $0x470] sm:$0xff]   ;;  %v8135_v52 = vld [vmem:[%s10550_s1 + $0x478] sm:$0xff]  }
  0x65   :  { %7295 = vmatpush3.bf16.msra.mxu1 %v8074_v53  ;;  %7274 = vmatprep.subr.bf16.mxu0 %v8075_v54  ;;  %v8136_v53 = vld [vmem:[%s10550_s1 + $0x4f8] sm:$0xff]  }
  0x66   :  { %7296 = vmatprep.subr.bf16.mxu1 %v8076_v55  ;;  %5196 = vmatprep.mubr.bf16.mxu0 %v6496_v21  ;;  %v8137_v54 = vld [vmem:[%s10550_s1 + $0x438] sm:$0xff]   ;;  %v8166_v21 = vld [vmem:[%s10550_s1 + $0x5a8] sm:$0xff]  }
  0x67   :  { %5236 = vmatprep.mubr.bf16.mxu1 %v6498_v24  ;;  %v8138_v55 = vld [vmem:[%s10550_s1 + $0x4b8] sm:$0xff]   ;;  %v8169_v24 = vld [vmem:[%s10550_s1 + $0x530] sm:$0xff]  }
  0x68   :  { %7275 = vmatpush3.bf16.msra.mxu0 %v8077_v56  ;;  %v29_v56 = vld [vmem:[%s10551_s0 + $0x40] sm:$0xff] }
  0x69   :  { %7297 = vmatpush3.bf16.msra.mxu1 %v8078_v57  ;;  %7276 = vmatprep.subr.bf16.mxu0 %v8079_v58  ;;  %v6499_v57 = vcombine.low %v29_v56, %v29_v56  ;;  %v6500_v58 = vcombine.high %v29_v56, %v29_v56  ;;  %v8199_v56 = vld [vmem:[%s10550_s1 + $0x668] sm:$0xff]  }
  0x6a   :  { %7298 = vmatprep.subr.bf16.mxu1 %v8080_v59  ;;  %v30_v59 = vld [vmem:[%s10551_s0 + $0x48] sm:$0xff] }
  0x6c   :  { %7277 = vmatpush3.bf16.msra.mxu0 %v8081_v60  ;;  %v6501_v60 = vcombine.low %v30_v59, %v30_v59 }
  0x6d   :  { %7299 = vmatpush3.bf16.msra.mxu1 %v8082_v61  ;;  %7278 = vmatprep.subr.bf16.mxu0 %v8083_v62  ;;  %v6502_v61 = vcombine.high %v30_v59, %v30_v59  ;;  %v8143_v62 = vld [vmem:[%s10550_s1 + $0x540] sm:$0xff]   ;;  %v8202_v59 = vld [vmem:[%s10550_s1 + $0x6a8] sm:$0xff]  }
  0x6e   :  { %7300 = vmatprep.subr.bf16.mxu1 %v8084_v63  ;;  %v8144_v63 = vld [vmem:[%s10550_s1 + $0x5c0] sm:$0xff]  }
  0x70   :  { %7279 = vmatpush3.bf16.msra.mxu0 %v8085_v0  ;;  %v8145_v0 = vld [vmem:[%s10550_s1 + $0x500] sm:$0xff]  }
  0x71   :  { %7301 = vmatpush3.bf16.msra.mxu1 %v8086_v1  ;;  %7280 = vmatprep.subr.bf16.mxu0 %v8087_v2  ;;  %v8146_v1 = vld [vmem:[%s10550_s1 + $0x580] sm:$0xff]   ;;  %v8147_v2 = vld [vmem:[%s10550_s1 + $0x548] sm:$0xff]  }
  0x72   :  { %7302 = vmatprep.subr.bf16.mxu1 %v8088_v3  ;;  %v8148_v3 = vld [vmem:[%s10550_s1 + $0x5c8] sm:$0xff]  }
  0x74   :  { %7281 = vmatpush3.bf16.msra.mxu0 %v8089_v4  ;;  %v8149_v4 = vld [vmem:[%s10550_s1 + $0x508] sm:$0xff]  }
  0x75   :  { %7303 = vmatpush3.bf16.msra.mxu1 %v8090_v5  ;;  %7282 = vmatprep.subr.bf16.mxu0 %v8091_v6  ;;  %v8150_v5 = vld [vmem:[%s10550_s1 + $0x588] sm:$0xff]   ;;  %v8151_v6 = vld [vmem:[%s10550_s1 + $0x550] sm:$0xff]  }
  0x76   :  { %7304 = vmatprep.subr.bf16.mxu1 %v8092_v7  ;;  %v8152_v7 = vld [vmem:[%s10550_s1 + $0x5d0] sm:$0xff]  }
  0x78   :  { %7283 = vmatpush3.bf16.msra.mxu0 %v8093_v8  ;;  %v8153_v8 = vld [vmem:[%s10550_s1 + $0x510] sm:$0xff]  }
  0x79   :  { %7305 = vmatpush3.bf16.msra.mxu1 %v8094_v9  ;;  %7284 = vmatprep.subr.bf16.mxu0 %v8095_v10  ;;  %v8154_v9 = vld [vmem:[%s10550_s1 + $0x590] sm:$0xff]   ;;  %v8155_v10 = vld [vmem:[%s10550_s1 + $0x558] sm:$0xff]  }
  0x7a   :  { %7306 = vmatprep.subr.bf16.mxu1 %v8096_v11  ;;  %v8156_v11 = vld [vmem:[%s10550_s1 + $0x5d8] sm:$0xff]  }
  0x7c   :  { %7285 = vmatpush3.bf16.msra.mxu0 %v8097_v12  ;;  %v8157_v12 = vld [vmem:[%s10550_s1 + $0x518] sm:$0xff]  }
  0x7d   :  { %7307 = vmatpush3.bf16.msra.mxu1 %v8098_v13  ;;  %7286 = vmatprep.subr.bf16.mxu0 %v8099_v14  ;;  %v8158_v13 = vld [vmem:[%s10550_s1 + $0x598] sm:$0xff]   ;;  %v8159_v14 = vld [vmem:[%s10550_s1 + $0x560] sm:$0xff]  }
  0x7e   :  { %7308 = vmatprep.subr.bf16.mxu1 %v8100_v15  ;;  %v8160_v15 = vld [vmem:[%s10550_s1 + $0x5e0] sm:$0xff]  }
  0x80   :  { %7287 = vmatpush3.bf16.msra.mxu0 %v8101_v16  ;;  %v8161_v16 = vld [vmem:[%s10550_s1 + $0x520] sm:$0xff]  }
  0x81   :  { %7309 = vmatpush3.bf16.msra.mxu1 %v8102_v17  ;;  %7316 = vmatprep.subr.bf16.mxu0 %v8107_v23  ;;  %v8162_v17 = vld [vmem:[%s10550_s1 + $0x5a0] sm:$0xff]   ;;  %v8168_v23 = vld [vmem:[%s10550_s1 + $0x5f0] sm:$0xff]  }
  0x82   :  { %7338 = vmatprep.subr.bf16.mxu1 %v8108_v25  ;;  %v8170_v25 = vld [vmem:[%s10550_s1 + $0x5b0] sm:$0xff]  }
  0x83   :  { %5197 = vmatmul.mubr.bf16.vlgmr.msra.gmra.mrb[12].mxu0 %v6495_v20  ;;  %v8165_v20 = vld [vmem:[%s10550_s1 + $0x528] sm:$0xff]  }
  0x84   :  { %5237 = vmatmul.mubr.bf16.vlgmr.msra.gmra.mrb[12].mxu1 %v6497_v22  ;;  %7317 = vmatpush3.bf16.msra.mxu0 %v8109_v26  ;;  %v8167_v22 = vld [vmem:[%s10550_s1 + $0x570] sm:$0xff]   ;;  %v8171_v26 = vld [vmem:[%s10550_s1 + $0x578] sm:$0xff]  }
  0x85   :  { %7339 = vmatpush3.bf16.msra.mxu1 %v8110_v27  ;;  %7318 = vmatprep.subr.bf16.mxu0 %v8111_v28  ;;  %v8172_v27 = vld [vmem:[%s10550_s1 + $0x5f8] sm:$0xff]  }
  0x86   :  { %7340 = vmatprep.subr.bf16.mxu1 %v8112_v29  ;;  %5276 = vmatprep.mubr.bf16.mxu0 %v6500_v58  ;;  %v8173_v28 = vld [vmem:[%s10550_s1 + $0x538] sm:$0xff]   ;;  %v8201_v58 = vld [vmem:[%s10550_s1 + $0x628] sm:$0xff]  }
  0x87   :  { %5316 = vmatprep.mubr.bf16.mxu1 %v6502_v61  ;;  %v8174_v29 = vld [vmem:[%s10550_s1 + $0x5b8] sm:$0xff]   ;;  %v8204_v61 = vld [vmem:[%s10550_s1 + $0x6f0] sm:$0xff]  }
  0x88   :  { %7319 = vmatpush3.bf16.msra.mxu0 %v8113_v30  ;;  %v31_v30 = vld [vmem:[%s10551_s0 + $0x50] sm:$0xff] }
  0x89   :  { %7341 = vmatpush3.bf16.msra.mxu1 %v8114_v31  ;;  %7320 = vmatprep.subr.bf16.mxu0 %v8115_v32  ;;  %v32_v31 = vld [vmem:[%s10551_s0 + $0x58] sm:$0xff]  ;;  %v6503_v32 = vcombine.low %v31_v30, %v31_v30 }
  0x8a   :  { %7342 = vmatprep.subr.bf16.mxu1 %v8116_v33  ;;  %v6504_v33 = vcombine.high %v31_v30, %v31_v30  ;;  %v8234_v30 = vld [vmem:[%s10550_s1 + $0x7a0] sm:$0xff]  }
  0x8c   :  { %7321 = vmatpush3.bf16.msra.mxu0 %v8117_v34  ;;  %v6505_v34 = vcombine.low %v32_v31, %v32_v31 }
  0x8d   :  { %7343 = vmatpush3.bf16.msra.mxu1 %v8118_v35  ;;  %7322 = vmatprep.subr.bf16.mxu0 %v8119_v36  ;;  %v6506_v35 = vcombine.high %v32_v31, %v32_v31  ;;  %v8179_v36 = vld [vmem:[%s10550_s1 + $0x640] sm:$0xff]  }
  0x8e   :  { %7344 = vmatprep.subr.bf16.mxu1 %v8120_v37  ;;  %v8180_v37 = vld [vmem:[%s10550_s1 + $0x6c0] sm:$0xff]  }
  0x90   :  { %7323 = vmatpush3.bf16.msra.mxu0 %v8121_v38  ;;  %v8181_v38 = vld [vmem:[%s10550_s1 + $0x600] sm:$0xff]  }
  0x91   :  { %7345 = vmatpush3.bf16.msra.mxu1 %v8122_v39  ;;  %7324 = vmatprep.subr.bf16.mxu0 %v8123_v40  ;;  %v8182_v39 = vld [vmem:[%s10550_s1 + $0x680] sm:$0xff]   ;;  %v8183_v40 = vld [vmem:[%s10550_s1 + $0x648] sm:$0xff]  }
  0x92   :  { %7346 = vmatprep.subr.bf16.mxu1 %v8124_v41  ;;  %v8184_v41 = vld [vmem:[%s10550_s1 + $0x6c8] sm:$0xff]  }
  0x94   :  { %7325 = vmatpush3.bf16.msra.mxu0 %v8125_v42  ;;  %v8185_v42 = vld [vmem:[%s10550_s1 + $0x608] sm:$0xff]  }
  0x95   :  { %7347 = vmatpush3.bf16.msra.mxu1 %v8126_v43  ;;  %7326 = vmatprep.subr.bf16.mxu0 %v8127_v44  ;;  %v8186_v43 = vld [vmem:[%s10550_s1 + $0x688] sm:$0xff]   ;;  %v8187_v44 = vld [vmem:[%s10550_s1 + $0x650] sm:$0xff]  }
  0x96   :  { %7348 = vmatprep.subr.bf16.mxu1 %v8128_v45  ;;  %v8188_v45 = vld [vmem:[%s10550_s1 + $0x6d0] sm:$0xff]  }
  0x98   :  { %7327 = vmatpush3.bf16.msra.mxu0 %v8129_v46  ;;  %v8189_v46 = vld [vmem:[%s10550_s1 + $0x610] sm:$0xff]  }
  0x99   :  { %7349 = vmatpush3.bf16.msra.mxu1 %v8130_v47  ;;  %7328 = vmatprep.subr.bf16.mxu0 %v8131_v48  ;;  %v8190_v47 = vld [vmem:[%s10550_s1 + $0x690] sm:$0xff]   ;;  %v8191_v48 = vld [vmem:[%s10550_s1 + $0x658] sm:$0xff]  }
  0x9a   :  { %7350 = vmatprep.subr.bf16.mxu1 %v8132_v49  ;;  %v8192_v49 = vld [vmem:[%s10550_s1 + $0x6d8] sm:$0xff]  }
  0x9c   :  { %7329 = vmatpush3.bf16.msra.mxu0 %v8133_v50  ;;  %v8193_v50 = vld [vmem:[%s10550_s1 + $0x618] sm:$0xff]  }
  0x9d   :  { %7351 = vmatpush3.bf16.msra.mxu1 %v8134_v51  ;;  %7330 = vmatprep.subr.bf16.mxu0 %v8135_v52  ;;  %v8194_v51 = vld [vmem:[%s10550_s1 + $0x698] sm:$0xff]   ;;  %v8195_v52 = vld [vmem:[%s10550_s1 + $0x660] sm:$0xff]  }
  0x9e   :  { %7352 = vmatprep.subr.bf16.mxu1 %v8136_v53  ;;  %v8196_v53 = vld [vmem:[%s10550_s1 + $0x6e0] sm:$0xff]  }
  0xa0   :  { %7331 = vmatpush3.bf16.msra.mxu0 %v8137_v54  ;;  %v8197_v54 = vld [vmem:[%s10550_s1 + $0x620] sm:$0xff]  }
  0xa1   :  { %7353 = vmatpush3.bf16.msra.mxu1 %v8138_v55  ;;  %7360 = vmatprep.subr.bf16.mxu0 %v8143_v62  ;;  %v8198_v55 = vld [vmem:[%s10550_s1 + $0x6a0] sm:$0xff]   ;;  %v8205_v62 = vld [vmem:[%s10550_s1 + $0x630] sm:$0xff]  }
  0xa2   :  { %7382 = vmatprep.subr.bf16.mxu1 %v8144_v63  ;;  %v8206_v63 = vld [vmem:[%s10550_s1 + $0x6b0] sm:$0xff]  }
  0xa3   :  { %5277 = vmatmul.mubr.bf16.vlgmr.msra.gmra.mrb[16].mxu0 %v6499_v57  ;;  %v8200_v57 = vld [vmem:[%s10550_s1 + $0x6e8] sm:$0xff]  }
  0xa4   :  { %5317 = vmatmul.mubr.bf16.vlgmr.msra.gmra.mrb[16].mxu1 %v6501_v60  ;;  %7361 = vmatpush3.bf16.msra.mxu0 %v8145_v0  ;;  %v8203_v60 = vld [vmem:[%s10550_s1 + $0x670] sm:$0xff]   ;;  %v8207_v0 = vld [vmem:[%s10550_s1 + $0x678] sm:$0xff]  }
  0xa5   :  { %7383 = vmatpush3.bf16.msra.mxu1 %v8146_v1  ;;  %7362 = vmatprep.subr.bf16.mxu0 %v8147_v2  ;;  %v8208_v1 = vld [vmem:[%s10550_s1 + $0x6f8] sm:$0xff]  }
  0xa6   :  { %7384 = vmatprep.subr.bf16.mxu1 %v8148_v3  ;;  %5356 = vmatprep.mubr.bf16.mxu0 %v6504_v33  ;;  %v8209_v2 = vld [vmem:[%s10550_s1 + $0x638] sm:$0xff]  }
  0xa7   :  { %5396 = vmatprep.mubr.bf16.mxu1 %v6506_v35  ;;  %v8210_v3 = vld [vmem:[%s10550_s1 + $0x6b8] sm:$0xff]  }
  0xa8   :  { %7363 = vmatpush3.bf16.msra.mxu0 %v8149_v4  ;;  %v33_v4 = vld [vmem:[%s10551_s0 + $0x60] sm:$0xff] }
  0xa9   :  { %7385 = vmatpush3.bf16.msra.mxu1 %v8150_v5  ;;  %7364 = vmatprep.subr.bf16.mxu0 %v8151_v6  ;;  %v34_v5 = vld [vmem:[%s10551_s0 + $0x68] sm:$0xff]  ;;  %v6507_v6 = vcombine.low %v33_v4, %v33_v4 }
  0xaa   :  { %7386 = vmatprep.subr.bf16.mxu1 %v8152_v7  ;;  %v6508_v7 = vcombine.high %v33_v4, %v33_v4  ;;  %v8258_v4 = vld [vmem:[%s10550_s1 + $0x888] sm:$0xff]  }
  0xac   :  { %7365 = vmatpush3.bf16.msra.mxu0 %v8153_v8  ;;  %v6509_v8 = vcombine.low %v34_v5, %v34_v5 }
  0xad   :  { %7387 = vmatpush3.bf16.msra.mxu1 %v8154_v9  ;;  %7366 = vmatprep.subr.bf16.mxu0 %v8155_v10  ;;  %v8215_v9 = vld [vmem:[%s10550_s1 + $0x740] sm:$0xff]   ;;  %v6510_v10 = vcombine.high %v34_v5, %v34_v5  ;;  %v8259_v5 = vld [vmem:[%s10550_s1 + $0x850] sm:$0xff]  }
  0xae   :  { %7388 = vmatprep.subr.bf16.mxu1 %v8156_v11  ;;  %v8216_v11 = vld [vmem:[%s10550_s1 + $0x7c0] sm:$0xff]  }
  0xb0   :  { %7367 = vmatpush3.bf16.msra.mxu0 %v8157_v12  ;;  %v8217_v12 = vld [vmem:[%s10550_s1 + $0x700] sm:$0xff]  }
  0xb1   :  { %7389 = vmatpush3.bf16.msra.mxu1 %v8158_v13  ;;  %7368 = vmatprep.subr.bf16.mxu0 %v8159_v14  ;;  %v8218_v13 = vld [vmem:[%s10550_s1 + $0x780] sm:$0xff]   ;;  %v8219_v14 = vld [vmem:[%s10550_s1 + $0x748] sm:$0xff]  }
  0xb2   :  { %7390 = vmatprep.subr.bf16.mxu1 %v8160_v15  ;;  %v8220_v15 = vld [vmem:[%s10550_s1 + $0x7c8] sm:$0xff]  }
  0xb4   :  { %7369 = vmatpush3.bf16.msra.mxu0 %v8161_v16  ;;  %v8221_v16 = vld [vmem:[%s10550_s1 + $0x708] sm:$0xff]  }
  0xb5   :  { %7391 = vmatpush3.bf16.msra.mxu1 %v8162_v17  ;;  %7370 = vmatprep.subr.bf16.mxu0 %v8163_v18  ;;  %v8222_v17 = vld [vmem:[%s10550_s1 + $0x788] sm:$0xff]   ;;  %v8223_v18 = vld [vmem:[%s10550_s1 + $0x750] sm:$0xff]  }
  0xb6   :  { %7392 = vmatprep.subr.bf16.mxu1 %v8164_v19  ;;  %v8224_v19 = vld [vmem:[%s10550_s1 + $0x7d0] sm:$0xff]  }
  0xb8   :  { %7371 = vmatpush3.bf16.msra.mxu0 %v8165_v20  ;;  %v8225_v20 = vld [vmem:[%s10550_s1 + $0x710] sm:$0xff]  }
  0xb9   :  { %7393 = vmatpush3.bf16.msra.mxu1 %v8166_v21  ;;  %7372 = vmatprep.subr.bf16.mxu0 %v8167_v22  ;;  %v8226_v21 = vld [vmem:[%s10550_s1 + $0x790] sm:$0xff]   ;;  %v8227_v22 = vld [vmem:[%s10550_s1 + $0x758] sm:$0xff]  }
  0xba   :  { %7394 = vmatprep.subr.bf16.mxu1 %v8168_v23  ;;  %v8228_v23 = vld [vmem:[%s10550_s1 + $0x7d8] sm:$0xff]  }
  0xbc   :  { %7373 = vmatpush3.bf16.msra.mxu0 %v8169_v24  ;;  %v8229_v24 = vld [vmem:[%s10550_s1 + $0x718] sm:$0xff]  }
  0xbd   :  { %7395 = vmatpush3.bf16.msra.mxu1 %v8170_v25  ;;  %7374 = vmatprep.subr.bf16.mxu0 %v8171_v26  ;;  %v8230_v25 = vld [vmem:[%s10550_s1 + $0x798] sm:$0xff]   ;;  %v8231_v26 = vld [vmem:[%s10550_s1 + $0x760] sm:$0xff]  }
  0xbe   :  { %7396 = vmatprep.subr.bf16.mxu1 %v8172_v27  ;;  %v8232_v27 = vld [vmem:[%s10550_s1 + $0x7e0] sm:$0xff]  }
  0xc0   :  { %7375 = vmatpush3.bf16.msra.mxu0 %v8173_v28  ;;  %v8233_v28 = vld [vmem:[%s10550_s1 + $0x720] sm:$0xff]  }
  0xc1   :  { %7397 = vmatpush3.bf16.msra.mxu1 %v8174_v29  ;;  %7404 = vmatprep.subr.bf16.mxu0 %v8179_v36 }
  0xc2   :  { %7426 = vmatprep.subr.bf16.mxu1 %v8180_v37  ;;  %v8235_v37 = vld [vmem:[%s10550_s1 + $0x768] sm:$0xff]  }
  0xc3   :  { %5357 = vmatmul.mubr.bf16.vlgmr.msra.gmra.mrb[20].mxu0 %v6503_v32  ;;  %v6482_v32 = vld [vmem:[%s10552_s2] ss:$0 sm:$0xff] }
  0xc4   :  { %5397 = vmatmul.mubr.bf16.vlgmr.msra.gmra.mrb[20].mxu1 %v6505_v34  ;;  %7405 = vmatpush3.bf16.msra.mxu0 %v8181_v38 }
  0xc5   :  { %7427 = vmatpush3.bf16.msra.mxu1 %v8182_v39  ;;  %7406 = vmatprep.subr.bf16.mxu0 %v8183_v40  ;;  %v8236_v39 = vld [vmem:[%s10550_s1 + $0x7e8] sm:$0xff]  }
  0xc6   :  { %7428 = vmatprep.subr.bf16.mxu1 %v8184_v41  ;;  %5436 = vmatprep.mubr.bf16.mxu0 %v6508_v7  ;;  %v8261_v7 = vld [vmem:[%s10550_s1 + $0x810] sm:$0xff]  }
  0xc7   :  { %5476 = vmatprep.mubr.bf16.mxu1 %v6510_v10  ;;  %v8264_v10 = vld [vmem:[%s10550_s1 + $0x8d8] sm:$0xff]  }
  0xc8   :  { %7407 = vmatpush3.bf16.msra.mxu0 %v8185_v42  ;;  %v8237_v42 = vld [vmem:[%s10550_s1 + $0x728] sm:$0xff]  }
  0xc9   :  { %7429 = vmatpush3.bf16.msra.mxu1 %v8186_v43  ;;  %7408 = vmatprep.subr.bf16.mxu0 %v8187_v44  ;;  %v8238_v44 = vld [vmem:[%s10550_s1 + $0x7a8] sm:$0xff]  }
  0xca   :  { %7430 = vmatprep.subr.bf16.mxu1 %v8188_v45 }
  0xcc   :  { %7409 = vmatpush3.bf16.msra.mxu0 %v8189_v46 }
  0xcd   :  { %7431 = vmatpush3.bf16.msra.mxu1 %v8190_v47  ;;  %7410 = vmatprep.subr.bf16.mxu0 %v8191_v48  ;;  %v8239_v47 = vld [vmem:[%s10550_s1 + $0x770] sm:$0xff]  }
  0xce   :  { %7432 = vmatprep.subr.bf16.mxu1 %v8192_v49  ;;  %v8240_v48 = vld [vmem:[%s10550_s1 + $0x7f0] sm:$0xff]  }
  0xcf   :  { %v8241_v49 = vld [vmem:[%s10550_s1 + $0x730] sm:$0xff]  }
  0xd0   :  { %7411 = vmatpush3.bf16.msra.mxu0 %v8193_v50  ;;  %v8242_v50 = vld [vmem:[%s10550_s1 + $0x7b0] sm:$0xff]  }
  0xd1   :  { %7433 = vmatpush3.bf16.msra.mxu1 %v8194_v51  ;;  %7412 = vmatprep.subr.bf16.mxu0 %v8195_v52  ;;  %v8243_v51 = vld [vmem:[%s10550_s1 + $0x778] sm:$0xff]  }
  0xd2   :  { %7434 = vmatprep.subr.bf16.mxu1 %v8196_v53  ;;  %v8244_v52 = vld [vmem:[%s10550_s1 + $0x7f8] sm:$0xff]  }
  0xd3   :  { %v8245_v53 = vld [vmem:[%s10550_s1 + $0x738] sm:$0xff]  }
  0xd4   :  { %7413 = vmatpush3.bf16.msra.mxu0 %v8197_v54  ;;  %v8246_v54 = vld [vmem:[%s10550_s1 + $0x7b8] sm:$0xff]  }
  0xd5   :  { %7435 = vmatpush3.bf16.msra.mxu1 %v8198_v55  ;;  %7414 = vmatprep.subr.bf16.mxu0 %v8199_v56  ;;  %v35_v55 = vld [vmem:[%s10551_s0 + $0x70] sm:$0xff]  ;;  %v36_v56 = vld [vmem:[%s10551_s0 + $0x78] sm:$0xff] }
  0xd6   :  { %7436 = vmatprep.subr.bf16.mxu1 %v8200_v57  ;;  %v6511_v57 = vcombine.low %v35_v55, %v35_v55 }
  0xd8   :  { %7415 = vmatpush3.bf16.msra.mxu0 %v8201_v58  ;;  %v6512_v58 = vcombine.high %v35_v55, %v35_v55  ;;  %v8295_v55 = vld [vmem:[%s10550_s1 + $0x950] sm:$0xff]  }
  0xd9   :  { %7437 = vmatpush3.bf16.msra.mxu1 %v8202_v59  ;;  %7416 = vmatprep.subr.bf16.mxu0 %v8203_v60  ;;  %v6513_v59 = vcombine.low %v36_v56, %v36_v56  ;;  %v6514_v60 = vcombine.high %v36_v56, %v36_v56  ;;  %v8296_v56 = vld [vmem:[%s10550_s1 + $0x9d0] sm:$0xff]  }
  0xda   :  { %7438 = vmatprep.subr.bf16.mxu1 %v8204_v61  ;;  %v8251_v61 = vld [vmem:[%s10550_s1 + $0x840] sm:$0xff]  }
  0xdc   :  { %7417 = vmatpush3.bf16.msra.mxu0 %v8205_v62  ;;  %v8252_v62 = vld [vmem:[%s10550_s1 + $0x8c0] sm:$0xff]  }
  0xdd   :  { %7439 = vmatpush3.bf16.msra.mxu1 %v8206_v63  ;;  %7418 = vmatprep.subr.bf16.mxu0 %v8207_v0  ;;  %v8253_v63 = vld [vmem:[%s10550_s1 + $0x800] sm:$0xff]  }
  0xde   :  { %7440 = vmatprep.subr.bf16.mxu1 %v8208_v1  ;;  %v8254_v0 = vld [vmem:[%s10550_s1 + $0x880] sm:$0xff]   ;;  %v8255_v1 = vld [vmem:[%s10550_s1 + $0x848] sm:$0xff]  }
  0xe0   :  { %7419 = vmatpush3.bf16.msra.mxu0 %v8209_v2  ;;  %v8256_v2 = vld [vmem:[%s10550_s1 + $0x8c8] sm:$0xff]  }
  0xe1   :  { %7441 = vmatpush3.bf16.msra.mxu1 %v8210_v3  ;;  %7448 = vmatprep.subr.bf16.mxu0 %v8215_v9  ;;  %v8257_v3 = vld [vmem:[%s10550_s1 + $0x808] sm:$0xff]   ;;  %v8263_v9 = vld [vmem:[%s10550_s1 + $0x858] sm:$0xff]  }
  0xe2   :  { %7470 = vmatprep.subr.bf16.mxu1 %v8216_v11  ;;  %v8265_v11 = vld [vmem:[%s10550_s1 + $0x818] sm:$0xff]  }
  0xe3   :  { %5437 = vmatmul.mubr.bf16.vlgmr.msra.gmra.mrb[24].mxu0 %v6507_v6  ;;  %v8260_v6 = vld [vmem:[%s10550_s1 + $0x8d0] sm:$0xff]  }
  0xe4   :  { %5477 = vmatmul.mubr.bf16.vlgmr.msra.gmra.mrb[24].mxu1 %v6509_v8  ;;  %7449 = vmatpush3.bf16.msra.mxu0 %v8217_v12  ;;  %v8262_v8 = vld [vmem:[%s10550_s1 + $0x890] sm:$0xff]   ;;  %v8266_v12 = vld [vmem:[%s10550_s1 + $0x898] sm:$0xff]  }
  0xe5   :  { %7471 = vmatpush3.bf16.msra.mxu1 %v8218_v13  ;;  %7450 = vmatprep.subr.bf16.mxu0 %v8219_v14  ;;  %v8267_v13 = vld [vmem:[%s10550_s1 + $0x860] sm:$0xff]  }
  0xe6   :  { %7472 = vmatprep.subr.bf16.mxu1 %v8220_v15  ;;  %5516 = vmatprep.mubr.bf16.mxu0 %v6512_v58  ;;  %v8268_v14 = vld [vmem:[%s10550_s1 + $0x8e0] sm:$0xff]   ;;  %v8298_v58 = vld [vmem:[%s10550_s1 + $0x990] sm:$0xff]  }
  0xe7   :  { %5556 = vmatprep.mubr.bf16.mxu1 %v6514_v60  ;;  %v8269_v15 = vld [vmem:[%s10550_s1 + $0x820] sm:$0xff]   ;;  %v8300_v60 = vld [vmem:[%s10550_s1 + $0x9d8] sm:$0xff]  }
  0xe8   :  { %7451 = vmatpush3.bf16.msra.mxu0 %v8221_v16 }
  0xe9   :  { %7473 = vmatpush3.bf16.msra.mxu1 %v8222_v17  ;;  %7452 = vmatprep.subr.bf16.mxu0 %v8223_v18  ;;  %v8270_v17 = vld [vmem:[%s10550_s1 + $0x8a0] sm:$0xff]  }
  0xea   :  { %7474 = vmatprep.subr.bf16.mxu1 %v8224_v19 }
  0xec   :  { %7453 = vmatpush3.bf16.msra.mxu0 %v8225_v20 }
  0xed   :  { %7475 = vmatpush3.bf16.msra.mxu1 %v8226_v21  ;;  %7454 = vmatprep.subr.bf16.mxu0 %v8227_v22 }
  0xee   :  { %7476 = vmatprep.subr.bf16.mxu1 %v8228_v23  ;;  %v8271_v23 = vld [vmem:[%s10550_s1 + $0x868] sm:$0xff]  }
  0xf0   :  { %7455 = vmatpush3.bf16.msra.mxu0 %v8229_v24 }
  0xf1   :  { %7477 = vmatpush3.bf16.msra.mxu1 %v8230_v25  ;;  %7456 = vmatprep.subr.bf16.mxu0 %v8231_v26  ;;  %v8272_v25 = vld [vmem:[%s10550_s1 + $0x8e8] sm:$0xff]  }
  0xf2   :  { %7478 = vmatprep.subr.bf16.mxu1 %v8232_v27 }
  0xf4   :  { %7457 = vmatpush3.bf16.msra.mxu0 %v8233_v28  ;;  %v8273_v28 = vld [vmem:[%s10550_s1 + $0x828] sm:$0xff]  }
  0xf5   :  { %7479 = vmatpush3.bf16.msra.mxu1 %v8234_v30  ;;  %7458 = vmatprep.subr.bf16.mxu0 %v8235_v37  ;;  %v8274_v30 = vld [vmem:[%s10550_s1 + $0x8a8] sm:$0xff]   ;;  %v8279_v37 = vld [vmem:[%s10550_s1 + $0x878] sm:$0xff]  }
  0xf6   :  { %v7156_v29 = vpop.f32.mrb[0].mxu0  ;;  %7480 = vmatprep.subr.bf16.mxu1 %v8236_v39  ;;  %v8281_v39 = vld [vmem:[%s10550_s1 + $0x838] sm:$0xff]  }
  0xf7   :  { %v7178_v31 = vpop.f32.mrb[0].mxu1  ;;  %v7157_v33 = vpop.f32.mrb[1].mxu0 }
  0xf8   :  { %v7179_v34 = vpop.f32.mrb[1].mxu1  ;;  %v7158_v35 = vadd.f32 %v7157_v33, %v7156_v29  ;;  %v7159_v38 = vpop.f32.mrb[2].mxu0  ;;  %7459 = vmatpush3.bf16.msra.mxu0 %v8237_v42  ;;  %v8275_v33 = vld [vmem:[%s10550_s1 + $0x870] sm:$0xff]   ;;  %v38_v42 = vld [vmem:[%s10551_s0 + $0x88] sm:$0xff] }
  0xf9   :  { %v7180_v36 = vadd.f32 %v7179_v34, %v7178_v31  ;;  %v7181_v40 = vpop.f32.mrb[2].mxu1  ;;  %v7160_v43 = vpop.f32.mrb[3].mxu0  ;;  %7481 = vmatpush3.bf16.msra.mxu1 %v8238_v44  ;;  %7460 = vmatprep.subr.bf16.mxu0 %v8239_v47  ;;  %v8276_v34 = vld [vmem:[%s10550_s1 + $0x8f0] sm:$0xff]   ;;  %v8280_v38 = vld [vmem:[%s10550_s1 + $0x8f8] sm:$0xff]   ;;  %v8287_v47 = vld [vmem:[%s10550_s1 + $0x940] sm:$0xff]  }
  0xfa   :  { %v4959_v41 = vadd.f32 %v7158_v35, %v6482_v32  ;;  %v7182_v45 = vpop.f32.mrb[3].mxu1  ;;  %7482 = vmatprep.subr.bf16.mxu1 %v8240_v48  ;;  %v8277_v35 = vld [vmem:[%s10550_s1 + $0x830] sm:$0xff]   ;;  %v8282_v40 = vld [vmem:[%s10550_s1 + $0x8b8] sm:$0xff]   ;;  %v8288_v48 = vld [vmem:[%s10550_s1 + $0x9c0] sm:$0xff]  }
  0xfb   :  { %v6517_v45 = vcombine.low %v38_v42, %v38_v42 }
  0xfc   :  { %v9440_v46 = vadd.f32 %v7180_v36, %v4959_v41  ;;  %7461 = vmatpush3.bf16.msra.mxu0 %v8241_v49  ;;  %v8278_v36 = vld [vmem:[%s10550_s1 + $0x8b0] sm:$0xff]   ;;  %v37_v41 = vld [vmem:[%s10551_s0 + $0x80] sm:$0xff] }
  0xfd   :  { %7483 = vmatpush3.bf16.msra.mxu1 %v8242_v50  ;;  %7462 = vmatprep.subr.bf16.mxu0 %v8243_v51  ;;  %v6515_v43 = vcombine.low %v37_v41, %v37_v41  ;;  %v6516_v44 = vcombine.high %v37_v41, %v37_v41  ;;  %v8289_v49 = vld [vmem:[%s10550_s1 + $0x900] sm:$0xff]   ;;  %v8291_v51 = vld [vmem:[%s10550_s1 + $0x948] sm:$0xff]   ;;  %v8331_v41 = vld [vmem:[%s10550_s1 + $0xa50] sm:$0xff]  }
  0xfe   :  { %7484 = vmatprep.subr.bf16.mxu1 %v8244_v52  ;;  %v8290_v50 = vld [vmem:[%s10550_s1 + $0x980] sm:$0xff]   ;;  %v8292_v52 = vld [vmem:[%s10550_s1 + $0x9c8] sm:$0xff]  }
 0x100   :  { %7463 = vmatpush3.bf16.msra.mxu0 %v8245_v53  ;;  %v8293_v53 = vld [vmem:[%s10550_s1 + $0x908] sm:$0xff]  }
 0x101   :  { %7485 = vmatpush3.bf16.msra.mxu1 %v8246_v54  ;;  %7492 = vmatprep.subr.bf16.mxu0 %v8251_v61  ;;  %v8294_v54 = vld [vmem:[%s10550_s1 + $0x988] sm:$0xff]   ;;  %v8301_v61 = vld [vmem:[%s10550_s1 + $0x918] sm:$0xff]  }
 0x102   :  { %7514 = vmatprep.subr.bf16.mxu1 %v8252_v62  ;;  %v8302_v62 = vld [vmem:[%s10550_s1 + $0x998] sm:$0xff]  }
 0x103   :  { %5517 = vmatmul.mubr.bf16.vlgmr.msra.gmra.mrb[28].mxu0 %v6511_v57  ;;  %v8297_v57 = vld [vmem:[%s10550_s1 + $0x910] sm:$0xff]  }
 0x104   :  { %5557 = vmatmul.mubr.bf16.vlgmr.msra.gmra.mrb[28].mxu1 %v6513_v59  ;;  %7493 = vmatpush3.bf16.msra.mxu0 %v8253_v63  ;;  %v8299_v59 = vld [vmem:[%s10550_s1 + $0x958] sm:$0xff]   ;;  %v8303_v63 = vld [vmem:[%s10550_s1 + $0x960] sm:$0xff]  }
 0x105   :  { %7515 = vmatpush3.bf16.msra.mxu1 %v8254_v0  ;;  %7494 = vmatprep.subr.bf16.mxu0 %v8255_v1  ;;  %v8304_v0 = vld [vmem:[%s10550_s1 + $0x9e0] sm:$0xff]  }
 0x106   :  { %7516 = vmatprep.subr.bf16.mxu1 %v8256_v2  ;;  %5596 = vmatprep.mubr.bf16.mxu0 %v6516_v44  ;;  %v8305_v2 = vld [vmem:[%s10550_s1 + $0x920] sm:$0xff]   ;;  %v8334_v44 = vld [vmem:[%s10550_s1 + $0xa90] sm:$0xff]  }
 0x108   :  { %7495 = vmatpush3.bf16.msra.mxu0 %v8257_v3 }
 0x109   :  { %7517 = vmatpush3.bf16.msra.mxu1 %v8258_v4  ;;  %7496 = vmatprep.subr.bf16.mxu0 %v8259_v5  ;;  %v8306_v4 = vld [vmem:[%s10550_s1 + $0x9a0] sm:$0xff]  }
 0x10a   :  { %7518 = vmatprep.subr.bf16.mxu1 %v8260_v6 }
 0x10c   :  { %7497 = vmatpush3.bf16.msra.mxu0 %v8261_v7 }
 0x10d   :  { %7519 = vmatpush3.bf16.msra.mxu1 %v8262_v8  ;;  %7498 = vmatprep.subr.bf16.mxu0 %v8263_v9  ;;  %v8307_v8 = vld [vmem:[%s10550_s1 + $0x968] sm:$0xff]  }
 0x10e   :  { %7520 = vmatprep.subr.bf16.mxu1 %v8264_v10  ;;  %v8308_v10 = vld [vmem:[%s10550_s1 + $0x9e8] sm:$0xff]  }
 0x110   :  { %7499 = vmatpush3.bf16.msra.mxu0 %v8265_v11 }
 0x111   :  { %7521 = vmatpush3.bf16.msra.mxu1 %v8266_v12  ;;  %7500 = vmatprep.subr.bf16.mxu0 %v8267_v13 }
 0x112   :  { %7522 = vmatprep.subr.bf16.mxu1 %v8268_v14  ;;  %v8309_v14 = vld [vmem:[%s10550_s1 + $0x928] sm:$0xff]  }
 0x114   :  { %7501 = vmatpush3.bf16.msra.mxu0 %v8269_v15  ;;  %v8310_v15 = vld [vmem:[%s10550_s1 + $0x9a8] sm:$0xff]  }
 0x115   :  { %7523 = vmatpush3.bf16.msra.mxu1 %v8270_v17  ;;  %7502 = vmatprep.subr.bf16.mxu0 %v8271_v23  ;;  %v8315_v23 = vld [vmem:[%s10550_s1 + $0x978] sm:$0xff]  }
 0x116   :  { %v7200_v16 = vpop.f32.mrb[4].mxu0  ;;  %7524 = vmatprep.subr.bf16.mxu1 %v8272_v25  ;;  %v8317_v25 = vld [vmem:[%s10550_s1 + $0x938] sm:$0xff]  }
 0x117   :  { %v7222_v18 = vpop.f32.mrb[4].mxu1  ;;  %v7201_v19 = vpop.f32.mrb[5].mxu0 }
 0x118   :  { %v7223_v20 = vpop.f32.mrb[5].mxu1  ;;  %v7202_v21 = vadd.f32 %v7201_v19, %v7200_v16  ;;  %v7203_v24 = vpop.f32.mrb[6].mxu0  ;;  %7503 = vmatpush3.bf16.msra.mxu0 %v8273_v28  ;;  %v8311_v19 = vld [vmem:[%s10550_s1 + $0x970] sm:$0xff]   ;;  %v40_v28 = vld [vmem:[%s10551_s0 + $0x98] sm:$0xff] }
 0x119   :  { %v7224_v22 = vadd.f32 %v7223_v20, %v7222_v18  ;;  %v7225_v26 = vpop.f32.mrb[6].mxu1  ;;  %v7204_v29 = vpop.f32.mrb[7].mxu0  ;;  %7525 = vmatpush3.bf16.msra.mxu1 %v8274_v30  ;;  %7504 = vmatprep.subr.bf16.mxu0 %v8275_v33  ;;  %v8312_v20 = vld [vmem:[%s10550_s1 + $0x9f0] sm:$0xff]   ;;  %v8316_v24 = vld [vmem:[%s10550_s1 + $0x9f8] sm:$0xff]   ;;  %v6522_v33 = vcombine.high %v40_v28, %v40_v28 }
 0x11a   :  { %v5039_v27 = vadd.f32 %v7202_v21, %v9440_v46  ;;  %v7226_v31 = vpop.f32.mrb[7].mxu1  ;;  %7526 = vmatprep.subr.bf16.mxu1 %v8276_v34  ;;  %v6518_v46 = vcombine.high %v38_v42, %v38_v42  ;;  %v8313_v21 = vld [vmem:[%s10550_s1 + $0x930] sm:$0xff]   ;;  %v8318_v26 = vld [vmem:[%s10550_s1 + $0x9b8] sm:$0xff]   ;;  %v8324_v34 = vld [vmem:[%s10550_s1 + $0xac0] sm:$0xff]  }
 0x11b   :  { %v6521_v31 = vcombine.low %v40_v28, %v40_v28  ;;  %v8332_v42 = vld [vmem:[%s10550_s1 + $0xad0] sm:$0xff]  }
 0x11c   :  { %v9545_v32 = vadd.f32 %v7224_v22, %v5039_v27  ;;  %7505 = vmatpush3.bf16.msra.mxu0 %v8277_v35  ;;  %5636 = vmatprep.mubr.bf16.mxu1 %v6518_v46  ;;  %v8314_v22 = vld [vmem:[%s10550_s1 + $0x9b0] sm:$0xff]   ;;  %v8325_v35 = vld [vmem:[%s10550_s1 + $0xa00] sm:$0xff]   ;;  %v8336_v46 = vld [vmem:[%s10550_s1 + $0xad8] sm:$0xff]  }
 0x11d   :  { %7527 = vmatpush3.bf16.msra.mxu1 %v8278_v36  ;;  %7506 = vmatprep.subr.bf16.mxu0 %v8279_v37  ;;  %v39_v27 = vld [vmem:[%s10551_s0 + $0x90] sm:$0xff]  ;;  %v8326_v36 = vld [vmem:[%s10550_s1 + $0xa80] sm:$0xff]   ;;  %v8327_v37 = vld [vmem:[%s10550_s1 + $0xa48] sm:$0xff]  }
 0x11e   :  { %7528 = vmatprep.subr.bf16.mxu1 %v8280_v38  ;;  %v6519_v29 = vcombine.low %v39_v27, %v39_v27  ;;  %v6520_v30 = vcombine.high %v39_v27, %v39_v27  ;;  %v8328_v38 = vld [vmem:[%s10550_s1 + $0xac8] sm:$0xff]   ;;  %v8367_v27 = vld [vmem:[%s10550_s1 + $0xb50] sm:$0xff]  }
 0x11f   :  { %v8368_v28 = vld [vmem:[%s10550_s1 + $0xbd0] sm:$0xff]  }
 0x120   :  { %7507 = vmatpush3.bf16.msra.mxu0 %v8281_v39  ;;  %v8329_v39 = vld [vmem:[%s10550_s1 + $0xa08] sm:$0xff]  }
 0x121   :  { %7529 = vmatpush3.bf16.msra.mxu1 %v8282_v40  ;;  %7536 = vmatprep.subr.bf16.mxu0 %v8287_v47  ;;  %v8330_v40 = vld [vmem:[%s10550_s1 + $0xa88] sm:$0xff]   ;;  %v8337_v47 = vld [vmem:[%s10550_s1 + $0xa18] sm:$0xff]  }
 0x122   :  { %7558 = vmatprep.subr.bf16.mxu1 %v8288_v48  ;;  %v8338_v48 = vld [vmem:[%s10550_s1 + $0xa98] sm:$0xff]  }
 0x123   :  { %5597 = vmatmul.mubr.bf16.vlgmr.msra.gmra.mrb[32].mxu0 %v6515_v43  ;;  %v8333_v43 = vld [vmem:[%s10550_s1 + $0xa10] sm:$0xff]  }
 0x124   :  { %5637 = vmatmul.mubr.bf16.vlgmr.msra.gmra.mrb[32].mxu1 %v6517_v45  ;;  %7537 = vmatpush3.bf16.msra.mxu0 %v8289_v49  ;;  %v8335_v45 = vld [vmem:[%s10550_s1 + $0xa58] sm:$0xff]   ;;  %v8339_v49 = vld [vmem:[%s10550_s1 + $0xa60] sm:$0xff]  }
 0x125   :  { %7559 = vmatpush3.bf16.msra.mxu1 %v8290_v50  ;;  %7538 = vmatprep.subr.bf16.mxu0 %v8291_v51  ;;  %v8340_v50 = vld [vmem:[%s10550_s1 + $0xae0] sm:$0xff]  }
 0x126   :  { %7560 = vmatprep.subr.bf16.mxu1 %v8292_v52  ;;  %5676 = vmatprep.mubr.bf16.mxu0 %v6520_v30  ;;  %v8341_v52 = vld [vmem:[%s10550_s1 + $0xa20] sm:$0xff]   ;;  %v8370_v30 = vld [vmem:[%s10550_s1 + $0xb90] sm:$0xff]  }
 0x127   :  { %5716 = vmatprep.mubr.bf16.mxu1 %v6522_v33  ;;  %v8373_v33 = vld [vmem:[%s10550_s1 + $0xb18] sm:$0xff]  }
 0x128   :  { %7539 = vmatpush3.bf16.msra.mxu0 %v8293_v53 }
 0x129   :  { %7561 = vmatpush3.bf16.msra.mxu1 %v8294_v54  ;;  %7540 = vmatprep.subr.bf16.mxu0 %v8295_v55  ;;  %v8342_v54 = vld [vmem:[%s10550_s1 + $0xaa0] sm:$0xff]  }
 0x12a   :  { %7562 = vmatprep.subr.bf16.mxu1 %v8296_v56 }
 0x12c   :  { %7541 = vmatpush3.bf16.msra.mxu0 %v8297_v57  ;;  %v8343_v57 = vld [vmem:[%s10550_s1 + $0xa68] sm:$0xff]  }
 0x12d   :  { %7563 = vmatpush3.bf16.msra.mxu1 %v8298_v58  ;;  %7542 = vmatprep.subr.bf16.mxu0 %v8299_v59 }
 0x12e   :  { %7564 = vmatprep.subr.bf16.mxu1 %v8300_v60  ;;  %v8344_v60 = vld [vmem:[%s10550_s1 + $0xae8] sm:$0xff]  }
 0x130   :  { %7543 = vmatpush3.bf16.msra.mxu0 %v8301_v61 }
 0x131   :  { %7565 = vmatpush3.bf16.msra.mxu1 %v8302_v62  ;;  %7544 = vmatprep.subr.bf16.mxu0 %v8303_v63  ;;  %v8345_v63 = vld [vmem:[%s10550_s1 + $0xa28] sm:$0xff]  }
 0x132   :  { %7566 = vmatprep.subr.bf16.mxu1 %v8304_v0 }
 0x134   :  { %7545 = vmatpush3.bf16.msra.mxu0 %v8305_v2 }
 0x135   :  { %7567 = vmatpush3.bf16.msra.mxu1 %v8306_v4  ;;  %7546 = vmatprep.subr.bf16.mxu0 %v8307_v8  ;;  %v8347_v4 = vld [vmem:[%s10550_s1 + $0xa70] sm:$0xff]  }
 0x136   :  { %v7244_v1 = vpop.f32.mrb[8].mxu0  ;;  %7568 = vmatprep.subr.bf16.mxu1 %v8308_v10  ;;  %v8350_v8 = vld [vmem:[%s10550_s1 + $0xab0] sm:$0xff]   ;;  %v8352_v10 = vld [vmem:[%s10550_s1 + $0xaf8] sm:$0xff]  }
 0x137   :  { %v7266_v3 = vpop.f32.mrb[8].mxu1  ;;  %v7245_v5 = vpop.f32.mrb[9].mxu0 }
 0x138   :  { %v7246_v6 = vadd.f32 %v7245_v5, %v7244_v1  ;;  %v7267_v7 = vpop.f32.mrb[9].mxu1  ;;  %v7247_v11 = vpop.f32.mrb[10].mxu0  ;;  %7547 = vmatpush3.bf16.msra.mxu0 %v8309_v14  ;;  %v8346_v1 = vld [vmem:[%s10550_s1 + $0xaa8] sm:$0xff]  }
 0x139   :  { %v7268_v9 = vadd.f32 %v7267_v7, %v7266_v3  ;;  %v7269_v13 = vpop.f32.mrb[10].mxu1  ;;  %v7248_v16 = vpop.f32.mrb[11].mxu0  ;;  %7569 = vmatpush3.bf16.msra.mxu1 %v8310_v15  ;;  %7548 = vmatprep.subr.bf16.mxu0 %v8311_v19  ;;  %v8349_v7 = vld [vmem:[%s10550_s1 + $0xa30] sm:$0xff]   ;;  %v8353_v11 = vld [vmem:[%s10550_s1 + $0xa38] sm:$0xff]   ;;  %v8359_v19 = vld [vmem:[%s10550_s1 + $0xb40] sm:$0xff]  }
 0x13a   :  { %v5119_v12 = vadd.f32 %v7246_v6, %v9545_v32  ;;  %v7270_v18 = vpop.f32.mrb[11].mxu1  ;;  %7570 = vmatprep.subr.bf16.mxu1 %v8312_v20  ;;  %v8323_v32 = vld [vmem:[%s10550_s1 + $0xa40] sm:$0xff]   ;;  %v8348_v6 = vld [vmem:[%s10550_s1 + $0xaf0] sm:$0xff]   ;;  %v42_v16 = vld [vmem:[%s10551_s0 + $0xa8] sm:$0xff] }
 0x13b   :  { %v41_v13 = vld [vmem:[%s10551_s0 + $0xa0] sm:$0xff]  ;;  %v6526_v18 = vcombine.high %v42_v16, %v42_v16 }
 0x13c   :  { %v9650_v17 = vadd.f32 %v7268_v9, %v5119_v12  ;;  %7549 = vmatpush3.bf16.msra.mxu0 %v8313_v21  ;;  %v8351_v9 = vld [vmem:[%s10550_s1 + $0xa78] sm:$0xff]   ;;  %v6523_v14 = vcombine.low %v41_v13, %v41_v13  ;;  %v6524_v15 = vcombine.high %v41_v13, %v41_v13  ;;  %v8360_v20 = vld [vmem:[%s10550_s1 + $0xbc0] sm:$0xff]   ;;  %v8403_v13 = vld [vmem:[%s10550_s1 + $0xc50] sm:$0xff]  }
 0x13d   :  { %7571 = vmatpush3.bf16.msra.mxu1 %v8314_v22  ;;  %7550 = vmatprep.subr.bf16.mxu0 %v8315_v23  ;;  %v8354_v12 = vld [vmem:[%s10550_s1 + $0xab8] sm:$0xff]   ;;  %v8361_v21 = vld [vmem:[%s10550_s1 + $0xb00] sm:$0xff]   ;;  %v8363_v23 = vld [vmem:[%s10550_s1 + $0xb48] sm:$0xff]  }
 0x13e   :  { %7572 = vmatprep.subr.bf16.mxu1 %v8316_v24  ;;  %v8362_v22 = vld [vmem:[%s10550_s1 + $0xb80] sm:$0xff]   ;;  %v8364_v24 = vld [vmem:[%s10550_s1 + $0xbc8] sm:$0xff]  }
 0x140   :  { %7551 = vmatpush3.bf16.msra.mxu0 %v8317_v25  ;;  %v8365_v25 = vld [vmem:[%s10550_s1 + $0xb08] sm:$0xff]  }
 0x141   :  { %7573 = vmatpush3.bf16.msra.mxu1 %v8318_v26  ;;  %7580 = vmatprep.subr.bf16.mxu0 %v8323_v32  ;;  %v8366_v26 = vld [vmem:[%s10550_s1 + $0xb88] sm:$0xff]   ;;  %v8372_v32 = vld [vmem:[%s10550_s1 + $0xbd8] sm:$0xff]  }
 0x142   :  { %7602 = vmatprep.subr.bf16.mxu1 %v8324_v34  ;;  %v8374_v34 = vld [vmem:[%s10550_s1 + $0xb98] sm:$0xff]  }
 0x143   :  { %5677 = vmatmul.mubr.bf16.vlgmr.msra.gmra.mrb[36].mxu0 %v6519_v29  ;;  %v8369_v29 = vld [vmem:[%s10550_s1 + $0xb10] sm:$0xff]  }
 0x144   :  { %5717 = vmatmul.mubr.bf16.vlgmr.msra.gmra.mrb[36].mxu1 %v6521_v31  ;;  %7581 = vmatpush3.bf16.msra.mxu0 %v8325_v35  ;;  %v8371_v31 = vld [vmem:[%s10550_s1 + $0xb58] sm:$0xff]   ;;  %v8375_v35 = vld [vmem:[%s10550_s1 + $0xb60] sm:$0xff]  }
 0x145   :  { %7603 = vmatpush3.bf16.msra.mxu1 %v8326_v36  ;;  %7582 = vmatprep.subr.bf16.mxu0 %v8327_v37  ;;  %v8376_v36 = vld [vmem:[%s10550_s1 + $0xbe0] sm:$0xff]  }
 0x146   :  { %7604 = vmatprep.subr.bf16.mxu1 %v8328_v38  ;;  %5756 = vmatprep.mubr.bf16.mxu0 %v6524_v15  ;;  %v8377_v38 = vld [vmem:[%s10550_s1 + $0xb20] sm:$0xff]   ;;  %v8405_v15 = vld [vmem:[%s10550_s1 + $0xc10] sm:$0xff]  }
 0x147   :  { %5796 = vmatprep.mubr.bf16.mxu1 %v6526_v18  ;;  %v8408_v18 = vld [vmem:[%s10550_s1 + $0xcd8] sm:$0xff]  }
 0x148   :  { %7583 = vmatpush3.bf16.msra.mxu0 %v8329_v39 }
 0x149   :  { %7605 = vmatpush3.bf16.msra.mxu1 %v8330_v40  ;;  %7584 = vmatprep.subr.bf16.mxu0 %v8331_v41  ;;  %v8378_v40 = vld [vmem:[%s10550_s1 + $0xba0] sm:$0xff]  }
 0x14a   :  { %7606 = vmatprep.subr.bf16.mxu1 %v8332_v42 }
 0x14c   :  { %7585 = vmatpush3.bf16.msra.mxu0 %v8333_v43  ;;  %v8379_v43 = vld [vmem:[%s10550_s1 + $0xb68] sm:$0xff]  }
 0x14d   :  { %7607 = vmatpush3.bf16.msra.mxu1 %v8334_v44  ;;  %7586 = vmatprep.subr.bf16.mxu0 %v8335_v45 }
 0x14e   :  { %7608 = vmatprep.subr.bf16.mxu1 %v8336_v46  ;;  %v8380_v46 = vld [vmem:[%s10550_s1 + $0xbe8] sm:$0xff]  }
 0x150   :  { %7587 = vmatpush3.bf16.msra.mxu0 %v8337_v47 }
 0x151   :  { %7609 = vmatpush3.bf16.msra.mxu1 %v8338_v48  ;;  %7588 = vmatprep.subr.bf16.mxu0 %v8339_v49  ;;  %v8381_v49 = vld [vmem:[%s10550_s1 + $0xb28] sm:$0xff]  }
 0x152   :  { %7610 = vmatprep.subr.bf16.mxu1 %v8340_v50 }
 0x154   :  { %7589 = vmatpush3.bf16.msra.mxu0 %v8341_v52 }
 0x155   :  { %7611 = vmatpush3.bf16.msra.mxu1 %v8342_v54  ;;  %7590 = vmatprep.subr.bf16.mxu0 %v8343_v57  ;;  %v8383_v54 = vld [vmem:[%s10550_s1 + $0xb70] sm:$0xff]  }
 0x156   :  { %v7288_v51 = vpop.f32.mrb[12].mxu0  ;;  %7612 = vmatprep.subr.bf16.mxu1 %v8344_v60  ;;  %v8385_v57 = vld [vmem:[%s10550_s1 + $0xb30] sm:$0xff]   ;;  %v8388_v60 = vld [vmem:[%s10550_s1 + $0xbf8] sm:$0xff]  }
 0x157   :  { %v7310_v53 = vpop.f32.mrb[12].mxu1  ;;  %v7289_v55 = vpop.f32.mrb[13].mxu0 }
 0x158   :  { %v7311_v56 = vpop.f32.mrb[13].mxu1  ;;  %v7290_v58 = vadd.f32 %v7289_v55, %v7288_v51  ;;  %v7291_v61 = vpop.f32.mrb[14].mxu0  ;;  %7591 = vmatpush3.bf16.msra.mxu0 %v8345_v63  ;;  %v8382_v51 = vld [vmem:[%s10550_s1 + $0xba8] sm:$0xff]   ;;  %v43_v63 = vld [vmem:[%s10551_s0 + $0xb0] sm:$0xff] }
 0x159   :  { %v7312_v59 = vadd.f32 %v7311_v56, %v7310_v53  ;;  %v7313_v62 = vpop.f32.mrb[14].mxu1  ;;  %v7292_v2 = vpop.f32.mrb[15].mxu0  ;;  %7613 = vmatpush3.bf16.msra.mxu1 %v8346_v1  ;;  %7592 = vmatprep.subr.bf16.mxu0 %v8347_v4  ;;  %v8384_v56 = vld [vmem:[%s10550_s1 + $0xbf0] sm:$0xff]   ;;  %v8389_v61 = vld [vmem:[%s10550_s1 + $0xb38] sm:$0xff]   ;;  %v6527_v1 = vcombine.low %v43_v63, %v43_v63 }
 0x15a   :  { %v5199_v0 = vadd.f32 %v7290_v58, %v9650_v17  ;;  %v7314_v3 = vpop.f32.mrb[15].mxu1  ;;  %7614 = vmatprep.subr.bf16.mxu1 %v8348_v6  ;;  %v6525_v17 = vcombine.low %v42_v16, %v42_v16  ;;  %v8386_v58 = vld [vmem:[%s10550_s1 + $0xbb0] sm:$0xff]   ;;  %v8390_v62 = vld [vmem:[%s10550_s1 + $0xbb8] sm:$0xff]   ;;  %v6528_v2 = vcombine.high %v43_v63, %v43_v63  ;;  %v8396_v6 = vld [vmem:[%s10550_s1 + $0xcc0] sm:$0xff]  }
 0x15b   :  { %v8406_v16 = vld [vmem:[%s10550_s1 + $0xc90] sm:$0xff]  }
 0x15c   :  { %v9758_v5 = vadd.f32 %v7312_v59, %v5199_v0  ;;  %7593 = vmatpush3.bf16.msra.mxu0 %v8349_v7  ;;  %v8387_v59 = vld [vmem:[%s10550_s1 + $0xb78] sm:$0xff]   ;;  %v8397_v7 = vld [vmem:[%s10550_s1 + $0xc00] sm:$0xff]   ;;  %v8439_v63 = vld [vmem:[%s10550_s1 + $0xd50] sm:$0xff]  }
 0x15d   :  { %7615 = vmatpush3.bf16.msra.mxu1 %v8350_v8  ;;  %7594 = vmatprep.subr.bf16.mxu0 %v8351_v9  ;;  %v44_v0 = vld [vmem:[%s10551_s0 + $0xb8] sm:$0xff]  ;;  %v8398_v8 = vld [vmem:[%s10550_s1 + $0xc80] sm:$0xff]   ;;  %v8399_v9 = vld [vmem:[%s10550_s1 + $0xc48] sm:$0xff]  }
 0x15e   :  { %7616 = vmatprep.subr.bf16.mxu1 %v8352_v10  ;;  %v6529_v3 = vcombine.low %v44_v0, %v44_v0  ;;  %v6530_v4 = vcombine.high %v44_v0, %v44_v0  ;;  %v8400_v10 = vld [vmem:[%s10550_s1 + $0xcc8] sm:$0xff]   ;;  %v8440_v0 = vld [vmem:[%s10550_s1 + $0xdd0] sm:$0xff]  }
 0x160   :  { %7595 = vmatpush3.bf16.msra.mxu0 %v8353_v11  ;;  %v8401_v11 = vld [vmem:[%s10550_s1 + $0xc08] sm:$0xff]  }
 0x161   :  { %7617 = vmatpush3.bf16.msra.mxu1 %v8354_v12  ;;  %7624 = vmatprep.subr.bf16.mxu0 %v8359_v19  ;;  %v8402_v12 = vld [vmem:[%s10550_s1 + $0xc88] sm:$0xff]   ;;  %v8409_v19 = vld [vmem:[%s10550_s1 + $0xc18] sm:$0xff]  }
 0x162   :  { %7646 = vmatprep.subr.bf16.mxu1 %v8360_v20  ;;  %v8410_v20 = vld [vmem:[%s10550_s1 + $0xc98] sm:$0xff]  }
 0x163   :  { %5757 = vmatmul.mubr.bf16.vlgmr.msra.gmra.mrb[40].mxu0 %v6523_v14  ;;  %v8404_v14 = vld [vmem:[%s10550_s1 + $0xcd0] sm:$0xff]  }
 0x164   :  { %5797 = vmatmul.mubr.bf16.vlgmr.msra.gmra.mrb[40].mxu1 %v6525_v17  ;;  %7625 = vmatpush3.bf16.msra.mxu0 %v8361_v21  ;;  %v8407_v17 = vld [vmem:[%s10550_s1 + $0xc58] sm:$0xff]   ;;  %v8411_v21 = vld [vmem:[%s10550_s1 + $0xc60] sm:$0xff]  }
 0x165   :  { %7647 = vmatpush3.bf16.msra.mxu1 %v8362_v22  ;;  %7626 = vmatprep.subr.bf16.mxu0 %v8363_v23  ;;  %v8412_v22 = vld [vmem:[%s10550_s1 + $0xce0] sm:$0xff]  }
 0x166   :  { %7648 = vmatprep.subr.bf16.mxu1 %v8364_v24  ;;  %5836 = vmatprep.mubr.bf16.mxu0 %v6528_v2  ;;  %v8413_v24 = vld [vmem:[%s10550_s1 + $0xc20] sm:$0xff]   ;;  %v8442_v2 = vld [vmem:[%s10550_s1 + $0xd90] sm:$0xff]  }
 0x167   :  { %5876 = vmatprep.mubr.bf16.mxu1 %v6530_v4  ;;  %v8444_v4 = vld [vmem:[%s10550_s1 + $0xdd8] sm:$0xff]  }
 0x168   :  { %7627 = vmatpush3.bf16.msra.mxu0 %v8365_v25 }
 0x169   :  { %7649 = vmatpush3.bf16.msra.mxu1 %v8366_v26  ;;  %7628 = vmatprep.subr.bf16.mxu0 %v8367_v27  ;;  %v8414_v26 = vld [vmem:[%s10550_s1 + $0xca0] sm:$0xff]  }
 0x16a   :  { %7650 = vmatprep.subr.bf16.mxu1 %v8368_v28 }
 0x16c   :  { %7629 = vmatpush3.bf16.msra.mxu0 %v8369_v29 }
 0x16d   :  { %7651 = vmatpush3.bf16.msra.mxu1 %v8370_v30  ;;  %7630 = vmatprep.subr.bf16.mxu0 %v8371_v31  ;;  %v8415_v30 = vld [vmem:[%s10550_s1 + $0xc68] sm:$0xff]  }
 0x16e   :  { %7652 = vmatprep.subr.bf16.mxu1 %v8372_v32  ;;  %v8416_v32 = vld [vmem:[%s10550_s1 + $0xce8] sm:$0xff]  }
 0x170   :  { %7631 = vmatpush3.bf16.msra.mxu0 %v8373_v33 }
 0x171   :  { %7653 = vmatpush3.bf16.msra.mxu1 %v8374_v34  ;;  %7632 = vmatprep.subr.bf16.mxu0 %v8375_v35 }
 0x172   :  { %7654 = vmatprep.subr.bf16.mxu1 %v8376_v36  ;;  %v8417_v36 = vld [vmem:[%s10550_s1 + $0xc28] sm:$0xff]  }
 0x174   :  { %7633 = vmatpush3.bf16.msra.mxu0 %v8377_v38 }
 0x175   :  { %7655 = vmatpush3.bf16.msra.mxu1 %v8378_v40  ;;  %7634 = vmatprep.subr.bf16.mxu0 %v8379_v43  ;;  %v8421_v43 = vld [vmem:[%s10550_s1 + $0xc30] sm:$0xff]  }
 0x176   :  { %v7332_v37 = vpop.f32.mrb[16].mxu0  ;;  %7656 = vmatprep.subr.bf16.mxu1 %v8380_v46  ;;  %v8424_v46 = vld [vmem:[%s10550_s1 + $0xcf8] sm:$0xff]  }
 0x177   :  { %v7354_v39 = vpop.f32.mrb[16].mxu1  ;;  %v7333_v41 = vpop.f32.mrb[17].mxu0 }
 0x178   :  { %v7355_v42 = vpop.f32.mrb[17].mxu1  ;;  %v7334_v44 = vadd.f32 %v7333_v41, %v7332_v37  ;;  %v7335_v47 = vpop.f32.mrb[18].mxu0  ;;  %7635 = vmatpush3.bf16.msra.mxu0 %v8381_v49  ;;  %v8418_v37 = vld [vmem:[%s10550_s1 + $0xca8] sm:$0xff]   ;;  %v8419_v41 = vld [vmem:[%s10550_s1 + $0xc70] sm:$0xff]   ;;  %v45_v49 = vld [vmem:[%s10551_s0 + $0xc0] sm:$0xff] }
 0x179   :  { %v7356_v45 = vadd.f32 %v7355_v42, %v7354_v39  ;;  %v7357_v48 = vpop.f32.mrb[18].mxu1  ;;  %v7336_v52 = vpop.f32.mrb[19].mxu0  ;;  %7657 = vmatpush3.bf16.msra.mxu1 %v8382_v51  ;;  %7636 = vmatprep.subr.bf16.mxu0 %v8383_v54  ;;  %v8420_v42 = vld [vmem:[%s10550_s1 + $0xcf0] sm:$0xff]   ;;  %v8425_v47 = vld [vmem:[%s10550_s1 + $0xc38] sm:$0xff]   ;;  %v6531_v51 = vcombine.low %v45_v49, %v45_v49  ;;  %v8431_v54 = vld [vmem:[%s10550_s1 + $0xd40] sm:$0xff]  }
 0x17a   :  { %v5279_v50 = vadd.f32 %v7334_v44, %v9758_v5  ;;  %v7358_v53 = vpop.f32.mrb[19].mxu1  ;;  %7658 = vmatprep.subr.bf16.mxu1 %v8384_v56  ;;  %v8395_v5 = vld [vmem:[%s10550_s1 + $0xc40] sm:$0xff]   ;;  %v8422_v44 = vld [vmem:[%s10550_s1 + $0xcb0] sm:$0xff]   ;;  %v8426_v48 = vld [vmem:[%s10550_s1 + $0xcb8] sm:$0xff]   ;;  %v6532_v52 = vcombine.high %v45_v49, %v45_v49 }
 0x17b   :  { %v8432_v56 = vld [vmem:[%s10550_s1 + $0xdc0] sm:$0xff]   ;;  %v8475_v49 = vld [vmem:[%s10550_s1 + $0xe50] sm:$0xff]  }
 0x17c   :  { %v9863_v55 = vadd.f32 %v7356_v45, %v5279_v50  ;;  %7637 = vmatpush3.bf16.msra.mxu0 %v8385_v57  ;;  %v8423_v45 = vld [vmem:[%s10550_s1 + $0xc78] sm:$0xff]   ;;  %v46_v50 = vld [vmem:[%s10551_s0 + $0xc8] sm:$0xff]  ;;  %v8433_v57 = vld [vmem:[%s10550_s1 + $0xd00] sm:$0xff]  }
 0x17d   :  { %7659 = vmatpush3.bf16.msra.mxu1 %v8386_v58  ;;  %7638 = vmatprep.subr.bf16.mxu0 %v8387_v59  ;;  %v6533_v53 = vcombine.low %v46_v50, %v46_v50  ;;  %v8434_v58 = vld [vmem:[%s10550_s1 + $0xd80] sm:$0xff]   ;;  %v8435_v59 = vld [vmem:[%s10550_s1 + $0xd48] sm:$0xff]  }
 0x17e   :  { %7660 = vmatprep.subr.bf16.mxu1 %v8388_v60  ;;  %v8436_v60 = vld [vmem:[%s10550_s1 + $0xdc8] sm:$0xff]  }
 0x180   :  { %7639 = vmatpush3.bf16.msra.mxu0 %v8389_v61  ;;  %v8437_v61 = vld [vmem:[%s10550_s1 + $0xd08] sm:$0xff]  }
 0x181   :  { %7661 = vmatpush3.bf16.msra.mxu1 %v8390_v62  ;;  %7668 = vmatprep.subr.bf16.mxu0 %v8395_v5  ;;  %v8438_v62 = vld [vmem:[%s10550_s1 + $0xd88] sm:$0xff]   ;;  %v8445_v5 = vld [vmem:[%s10550_s1 + $0xd18] sm:$0xff]  }
 0x182   :  { %7690 = vmatprep.subr.bf16.mxu1 %v8396_v6  ;;  %v8446_v6 = vld [vmem:[%s10550_s1 + $0xd98] sm:$0xff]  }
 0x183   :  { %5837 = vmatmul.mubr.bf16.vlgmr.msra.gmra.mrb[44].mxu0 %v6527_v1  ;;  %v8441_v1 = vld [vmem:[%s10550_s1 + $0xd10] sm:$0xff]  }
 0x184   :  { %5877 = vmatmul.mubr.bf16.vlgmr.msra.gmra.mrb[44].mxu1 %v6529_v3  ;;  %7669 = vmatpush3.bf16.msra.mxu0 %v8397_v7  ;;  %v8443_v3 = vld [vmem:[%s10550_s1 + $0xd58] sm:$0xff]   ;;  %v8447_v7 = vld [vmem:[%s10550_s1 + $0xd60] sm:$0xff]  }
 0x185   :  { %7691 = vmatpush3.bf16.msra.mxu1 %v8398_v8  ;;  %7670 = vmatprep.subr.bf16.mxu0 %v8399_v9  ;;  %v8448_v8 = vld [vmem:[%s10550_s1 + $0xde0] sm:$0xff]  }
 0x186   :  { %7692 = vmatprep.subr.bf16.mxu1 %v8400_v10  ;;  %5916 = vmatprep.mubr.bf16.mxu0 %v6532_v52  ;;  %v8449_v10 = vld [vmem:[%s10550_s1 + $0xd20] sm:$0xff]   ;;  %v8478_v52 = vld [vmem:[%s10550_s1 + $0xe90] sm:$0xff]  }
 0x188   :  { %7671 = vmatpush3.bf16.msra.mxu0 %v8401_v11 }
 0x189   :  { %7693 = vmatpush3.bf16.msra.mxu1 %v8402_v12  ;;  %7672 = vmatprep.subr.bf16.mxu0 %v8403_v13  ;;  %v8450_v12 = vld [vmem:[%s10550_s1 + $0xda0] sm:$0xff]  }
 0x18a   :  { %7694 = vmatprep.subr.bf16.mxu1 %v8404_v14 }
 0x18c   :  { %7673 = vmatpush3.bf16.msra.mxu0 %v8405_v15  ;;  %v8451_v15 = vld [vmem:[%s10550_s1 + $0xd68] sm:$0xff]  }
 0x18d   :  { %7695 = vmatpush3.bf16.msra.mxu1 %v8406_v16  ;;  %7674 = vmatprep.subr.bf16.mxu0 %v8407_v17 }
 0x18e   :  { %7696 = vmatprep.subr.bf16.mxu1 %v8408_v18  ;;  %v8452_v18 = vld [vmem:[%s10550_s1 + $0xde8] sm:$0xff]  }
 0x190   :  { %7675 = vmatpush3.bf16.msra.mxu0 %v8409_v19 }
 0x191   :  { %7697 = vmatpush3.bf16.msra.mxu1 %v8410_v20  ;;  %7676 = vmatprep.subr.bf16.mxu0 %v8411_v21  ;;  %v8453_v21 = vld [vmem:[%s10550_s1 + $0xd28] sm:$0xff]  }
 0x192   :  { %7698 = vmatprep.subr.bf16.mxu1 %v8412_v22 }
 0x194   :  { %7677 = vmatpush3.bf16.msra.mxu0 %v8413_v24 }
 0x195   :  { %7699 = vmatpush3.bf16.msra.mxu1 %v8414_v26  ;;  %7678 = vmatprep.subr.bf16.mxu0 %v8415_v30  ;;  %v8455_v26 = vld [vmem:[%s10550_s1 + $0xd70] sm:$0xff]  }
 0x196   :  { %v7376_v23 = vpop.f32.mrb[20].mxu0  ;;  %7700 = vmatprep.subr.bf16.mxu1 %v8416_v32  ;;  %v8458_v30 = vld [vmem:[%s10550_s1 + $0xdb0] sm:$0xff]   ;;  %v8460_v32 = vld [vmem:[%s10550_s1 + $0xdf8] sm:$0xff]  }
 0x197   :  { %v7398_v25 = vpop.f32.mrb[20].mxu1  ;;  %v7377_v27 = vpop.f32.mrb[21].mxu0 }
 0x198   :  { %v7378_v28 = vadd.f32 %v7377_v27, %v7376_v23  ;;  %v7399_v29 = vpop.f32.mrb[21].mxu1  ;;  %v7379_v33 = vpop.f32.mrb[22].mxu0  ;;  %7679 = vmatpush3.bf16.msra.mxu0 %v8417_v36  ;;  %v8454_v23 = vld [vmem:[%s10550_s1 + $0xda8] sm:$0xff]  }
 0x199   :  { %v7400_v31 = vadd.f32 %v7399_v29, %v7398_v25  ;;  %v7401_v35 = vpop.f32.mrb[22].mxu1  ;;  %v7380_v38 = vpop.f32.mrb[23].mxu0  ;;  %7701 = vmatpush3.bf16.msra.mxu1 %v8418_v37  ;;  %7680 = vmatprep.subr.bf16.mxu0 %v8419_v41  ;;  %v8457_v29 = vld [vmem:[%s10550_s1 + $0xd30] sm:$0xff]   ;;  %v8461_v33 = vld [vmem:[%s10550_s1 + $0xd38] sm:$0xff]   ;;  %v8467_v41 = vld [vmem:[%s10550_s1 + $0xe40] sm:$0xff]  }
 0x19a   :  { %v5359_v34 = vadd.f32 %v7378_v28, %v9863_v55  ;;  %v7402_v40 = vpop.f32.mrb[23].mxu1  ;;  %7702 = vmatprep.subr.bf16.mxu1 %v8420_v42  ;;  %v6534_v55 = vcombine.high %v46_v50, %v46_v50  ;;  %v8456_v28 = vld [vmem:[%s10550_s1 + $0xdf0] sm:$0xff]   ;;  %v48_v38 = vld [vmem:[%s10551_s0 + $0xd8] sm:$0xff]  ;;  %v8468_v42 = vld [vmem:[%s10550_s1 + $0xec0] sm:$0xff]  }
 0x19b   :  { %v47_v35 = vld [vmem:[%s10551_s0 + $0xd0] sm:$0xff]  ;;  %v6538_v40 = vcombine.high %v48_v38, %v48_v38 }
 0x19c   :  { %v9965_v39 = vadd.f32 %v7400_v31, %v5359_v34  ;;  %7681 = vmatpush3.bf16.msra.mxu0 %v8421_v43  ;;  %5956 = vmatprep.mubr.bf16.mxu1 %v6534_v55  ;;  %v8459_v31 = vld [vmem:[%s10550_s1 + $0xd78] sm:$0xff]   ;;  %v6535_v36 = vcombine.low %v47_v35, %v47_v35  ;;  %v6536_v37 = vcombine.high %v47_v35, %v47_v35  ;;  %v8469_v43 = vld [vmem:[%s10550_s1 + $0xe00] sm:$0xff]   ;;  %v8476_v50 = vld [vmem:[%s10550_s1 + $0xed0] sm:$0xff]  }
 0x19d   :  { %7703 = vmatpush3.bf16.msra.mxu1 %v8422_v44  ;;  %7682 = vmatprep.subr.bf16.mxu0 %v8423_v45  ;;  %v8462_v34 = vld [vmem:[%s10550_s1 + $0xdb8] sm:$0xff]   ;;  %v8470_v44 = vld [vmem:[%s10550_s1 + $0xe80] sm:$0xff]   ;;  %v8471_v45 = vld [vmem:[%s10550_s1 + $0xe48] sm:$0xff]  }
 0x19e   :  { %7704 = vmatprep.subr.bf16.mxu1 %v8424_v46  ;;  %v8472_v46 = vld [vmem:[%s10550_s1 + $0xec8] sm:$0xff]   ;;  %v8481_v55 = vld [vmem:[%s10550_s1 + $0xe18] sm:$0xff]   ;;  %v8511_v35 = vld [vmem:[%s10550_s1 + $0xf50] sm:$0xff]  }
 0x1a0   :  { %7683 = vmatpush3.bf16.msra.mxu0 %v8425_v47  ;;  %v8473_v47 = vld [vmem:[%s10550_s1 + $0xe08] sm:$0xff]  }
 0x1a1   :  { %7705 = vmatpush3.bf16.msra.mxu1 %v8426_v48  ;;  %7712 = vmatprep.subr.bf16.mxu0 %v8431_v54  ;;  %v8474_v48 = vld [vmem:[%s10550_s1 + $0xe88] sm:$0xff]   ;;  %v8480_v54 = vld [vmem:[%s10550_s1 + $0xed8] sm:$0xff]  }
 0x1a2   :  { %7734 = vmatprep.subr.bf16.mxu1 %v8432_v56  ;;  %v8482_v56 = vld [vmem:[%s10550_s1 + $0xe98] sm:$0xff]  }
 0x1a3   :  { %5917 = vmatmul.mubr.bf16.vlgmr.msra.gmra.mrb[48].mxu0 %v6531_v51  ;;  %v8477_v51 = vld [vmem:[%s10550_s1 + $0xe10] sm:$0xff]  }
 0x1a4   :  { %5957 = vmatmul.mubr.bf16.vlgmr.msra.gmra.mrb[48].mxu1 %v6533_v53  ;;  %7713 = vmatpush3.bf16.msra.mxu0 %v8433_v57  ;;  %v8479_v53 = vld [vmem:[%s10550_s1 + $0xe58] sm:$0xff]   ;;  %v8483_v57 = vld [vmem:[%s10550_s1 + $0xe60] sm:$0xff]  }
 0x1a5   :  { %7735 = vmatpush3.bf16.msra.mxu1 %v8434_v58  ;;  %7714 = vmatprep.subr.bf16.mxu0 %v8435_v59  ;;  %v8484_v58 = vld [vmem:[%s10550_s1 + $0xee0] sm:$0xff]  }
 0x1a6   :  { %7736 = vmatprep.subr.bf16.mxu1 %v8436_v60  ;;  %5996 = vmatprep.mubr.bf16.mxu0 %v6536_v37  ;;  %v8485_v60 = vld [vmem:[%s10550_s1 + $0xe20] sm:$0xff]   ;;  %v8513_v37 = vld [vmem:[%s10550_s1 + $0xf10] sm:$0xff]  }
 0x1a7   :  { %6036 = vmatprep.mubr.bf16.mxu1 %v6538_v40  ;;  %v8516_v40 = vld [vmem:[%s10550_s1 + $0xfd8] sm:$0xff]  }
 0x1a8   :  { %7715 = vmatpush3.bf16.msra.mxu0 %v8437_v61 }
 0x1a9   :  { %7737 = vmatpush3.bf16.msra.mxu1 %v8438_v62  ;;  %7716 = vmatprep.subr.bf16.mxu0 %v8439_v63  ;;  %v8486_v62 = vld [vmem:[%s10550_s1 + $0xea0] sm:$0xff]  }
 0x1aa   :  { %7738 = vmatprep.subr.bf16.mxu1 %v8440_v0 }
 0x1ac   :  { %7717 = vmatpush3.bf16.msra.mxu0 %v8441_v1  ;;  %v8487_v1 = vld [vmem:[%s10550_s1 + $0xe68] sm:$0xff]  }
 0x1ad   :  { %7739 = vmatpush3.bf16.msra.mxu1 %v8442_v2  ;;  %7718 = vmatprep.subr.bf16.mxu0 %v8443_v3 }
 0x1ae   :  { %7740 = vmatprep.subr.bf16.mxu1 %v8444_v4  ;;  %v8488_v4 = vld [vmem:[%s10550_s1 + $0xee8] sm:$0xff]  }
 0x1b0   :  { %7719 = vmatpush3.bf16.msra.mxu0 %v8445_v5 }
 0x1b1   :  { %7741 = vmatpush3.bf16.msra.mxu1 %v8446_v6  ;;  %7720 = vmatprep.subr.bf16.mxu0 %v8447_v7  ;;  %v8489_v7 = vld [vmem:[%s10550_s1 + $0xe28] sm:$0xff]  }
 0x1b2   :  { %7742 = vmatprep.subr.bf16.mxu1 %v8448_v8 }
 0x1b4   :  { %7721 = vmatpush3.bf16.msra.mxu0 %v8449_v10 }
 0x1b5   :  { %7743 = vmatpush3.bf16.msra.mxu1 %v8450_v12  ;;  %7722 = vmatprep.subr.bf16.mxu0 %v8451_v15  ;;  %v8491_v12 = vld [vmem:[%s10550_s1 + $0xe70] sm:$0xff]  }
 0x1b6   :  { %v7420_v9 = vpop.f32.mrb[24].mxu0  ;;  %7744 = vmatprep.subr.bf16.mxu1 %v8452_v18  ;;  %v8493_v15 = vld [vmem:[%s10550_s1 + $0xe30] sm:$0xff]   ;;  %v8496_v18 = vld [vmem:[%s10550_s1 + $0xef8] sm:$0xff]  }
 0x1b7   :  { %v7442_v11 = vpop.f32.mrb[24].mxu1  ;;  %v7421_v13 = vpop.f32.mrb[25].mxu0 }
 0x1b8   :  { %v7443_v14 = vpop.f32.mrb[25].mxu1  ;;  %v7422_v16 = vadd.f32 %v7421_v13, %v7420_v9  ;;  %v7423_v19 = vpop.f32.mrb[26].mxu0  ;;  %7723 = vmatpush3.bf16.msra.mxu0 %v8453_v21  ;;  %v8490_v9 = vld [vmem:[%s10550_s1 + $0xea8] sm:$0xff]   ;;  %v49_v21 = vld [vmem:[%s10551_s0 + $0xe0] sm:$0xff] }
 0x1b9   :  { %v7444_v17 = vadd.f32 %v7443_v14, %v7442_v11  ;;  %v7445_v20 = vpop.f32.mrb[26].mxu1  ;;  %v7424_v24 = vpop.f32.mrb[27].mxu0  ;;  %7745 = vmatpush3.bf16.msra.mxu1 %v8454_v23  ;;  %7724 = vmatprep.subr.bf16.mxu0 %v8455_v26  ;;  %v8492_v14 = vld [vmem:[%s10550_s1 + $0xef0] sm:$0xff]   ;;  %v8497_v19 = vld [vmem:[%s10550_s1 + $0xe38] sm:$0xff]   ;;  %v6539_v23 = vcombine.low %v49_v21, %v49_v21 }
 0x1ba   :  { %v5439_v22 = vadd.f32 %v7422_v16, %v9965_v39  ;;  %v7446_v25 = vpop.f32.mrb[27].mxu1  ;;  %7746 = vmatprep.subr.bf16.mxu1 %v8456_v28  ;;  %v6537_v39 = vcombine.low %v48_v38, %v48_v38  ;;  %v8494_v16 = vld [vmem:[%s10550_s1 + $0xeb0] sm:$0xff]   ;;  %v8498_v20 = vld [vmem:[%s10550_s1 + $0xeb8] sm:$0xff]   ;;  %v6540_v24 = vcombine.high %v49_v21, %v49_v21  ;;  %v8504_v28 = vld [vmem:[%s10550_s1 + $0xfc0] sm:$0xff]  }
 0x1bb   :  { %v8514_v38 = vld [vmem:[%s10550_s1 + $0xf90] sm:$0xff]  }
 0x1bc   :  { %v10073_v27 = vadd.f32 %v7444_v17, %v5439_v22  ;;  %7725 = vmatpush3.bf16.msra.mxu0 %v8457_v29  ;;  %v8495_v17 = vld [vmem:[%s10550_s1 + $0xe78] sm:$0xff]   ;;  %v50_v22 = vld [vmem:[%s10551_s0 + $0xe8] sm:$0xff]  ;;  %v8505_v29 = vld [vmem:[%s10550_s1 + $0xf00] sm:$0xff]  }
 0x1bd   :  { %7747 = vmatpush3.bf16.msra.mxu1 %v8458_v30  ;;  %7726 = vmatprep.subr.bf16.mxu0 %v8459_v31  ;;  %v6541_v25 = vcombine.low %v50_v22, %v50_v22  ;;  %v6542_v26 = vcombine.high %v50_v22, %v50_v22  ;;  %v8506_v30 = vld [vmem:[%s10550_s1 + $0xf80] sm:$0xff]   ;;  %v8507_v31 = vld [vmem:[%s10550_s1 + $0xf48] sm:$0xff]   ;;  %v8547_v21 = vld [vmem:[%s10550_s1 + $0x1050] sm:$0xff]  }
 0x1be   :  { %7748 = vmatprep.subr.bf16.mxu1 %v8460_v32  ;;  %v8508_v32 = vld [vmem:[%s10550_s1 + $0xfc8] sm:$0xff]   ;;  %v8548_v22 = vld [vmem:[%s10550_s1 + $0x10d0] sm:$0xff]  }
 0x1c0   :  { %7727 = vmatpush3.bf16.msra.mxu0 %v8461_v33  ;;  %v8509_v33 = vld [vmem:[%s10550_s1 + $0xf08] sm:$0xff]  }
 0x1c1   :  { %7749 = vmatpush3.bf16.msra.mxu1 %v8462_v34  ;;  %7756 = vmatprep.subr.bf16.mxu0 %v8467_v41  ;;  %v8510_v34 = vld [vmem:[%s10550_s1 + $0xf88] sm:$0xff]   ;;  %v8517_v41 = vld [vmem:[%s10550_s1 + $0xf18] sm:$0xff]  }
 0x1c2   :  { %7778 = vmatprep.subr.bf16.mxu1 %v8468_v42  ;;  %v8518_v42 = vld [vmem:[%s10550_s1 + $0xf98] sm:$0xff]  }
 0x1c3   :  { %5997 = vmatmul.mubr.bf16.vlgmr.msra.gmra.mrb[52].mxu0 %v6535_v36  ;;  %v8512_v36 = vld [vmem:[%s10550_s1 + $0xfd0] sm:$0xff]  }
 0x1c4   :  { %6037 = vmatmul.mubr.bf16.vlgmr.msra.gmra.mrb[52].mxu1 %v6537_v39  ;;  %7757 = vmatpush3.bf16.msra.mxu0 %v8469_v43  ;;  %v8515_v39 = vld [vmem:[%s10550_s1 + $0xf58] sm:$0xff]   ;;  %v8519_v43 = vld [vmem:[%s10550_s1 + $0xf60] sm:$0xff]  }
 0x1c5   :  { %7779 = vmatpush3.bf16.msra.mxu1 %v8470_v44  ;;  %7758 = vmatprep.subr.bf16.mxu0 %v8471_v45  ;;  %v8520_v44 = vld [vmem:[%s10550_s1 + $0xfe0] sm:$0xff]  }
 0x1c6   :  { %7780 = vmatprep.subr.bf16.mxu1 %v8472_v46  ;;  %6076 = vmatprep.mubr.bf16.mxu0 %v6540_v24  ;;  %v8521_v45 = vld [vmem:[%s10550_s1 + $0xf20] sm:$0xff]   ;;  %v8550_v24 = vld [vmem:[%s10550_s1 + $0x1090] sm:$0xff]  }
 0x1c7   :  { %6116 = vmatprep.mubr.bf16.mxu1 %v6542_v26  ;;  %v8552_v26 = vld [vmem:[%s10550_s1 + $0x10d8] sm:$0xff]  }
 0x1c8   :  { %7759 = vmatpush3.bf16.msra.mxu0 %v8473_v47  ;;  %v8522_v47 = vld [vmem:[%s10550_s1 + $0xfa0] sm:$0xff]  }
 0x1c9   :  { %7781 = vmatpush3.bf16.msra.mxu1 %v8474_v48  ;;  %7760 = vmatprep.subr.bf16.mxu0 %v8475_v49 }
 0x1ca   :  { %7782 = vmatprep.subr.bf16.mxu1 %v8476_v50 }
 0x1cc   :  { %7761 = vmatpush3.bf16.msra.mxu0 %v8477_v51 }
 0x1cd   :  { %7783 = vmatpush3.bf16.msra.mxu1 %v8478_v52  ;;  %7762 = vmatprep.subr.bf16.mxu0 %v8479_v53  ;;  %v8523_v53 = vld [vmem:[%s10550_s1 + $0xf68] sm:$0xff]  }
 0x1ce   :  { %7784 = vmatprep.subr.bf16.mxu1 %v8480_v54 }
 0x1d0   :  { %7763 = vmatpush3.bf16.msra.mxu0 %v8481_v55  ;;  %v8524_v55 = vld [vmem:[%s10550_s1 + $0xfe8] sm:$0xff]  }
 0x1d1   :  { %7785 = vmatpush3.bf16.msra.mxu1 %v8482_v56  ;;  %7764 = vmatprep.subr.bf16.mxu0 %v8483_v57 }
 0x1d2   :  { %7786 = vmatprep.subr.bf16.mxu1 %v8484_v58  ;;  %v8525_v58 = vld [vmem:[%s10550_s1 + $0xf28] sm:$0xff]  }
 0x1d4   :  { %7765 = vmatpush3.bf16.msra.mxu0 %v8485_v60  ;;  %v8526_v60 = vld [vmem:[%s10550_s1 + $0xfa8] sm:$0xff]  }
 0x1d5   :  { %7787 = vmatpush3.bf16.msra.mxu1 %v8486_v62  ;;  %7766 = vmatprep.subr.bf16.mxu0 %v8487_v1  ;;  %v8529_v1 = vld [vmem:[%s10550_s1 + $0xf30] sm:$0xff]  }
 0x1d6   :  { %v7464_v59 = vpop.f32.mrb[28].mxu0  ;;  %7788 = vmatprep.subr.bf16.mxu1 %v8488_v4  ;;  %v8532_v4 = vld [vmem:[%s10550_s1 + $0xff8] sm:$0xff]  }
 0x1d7   :  { %v7486_v61 = vpop.f32.mrb[28].mxu1  ;;  %v7465_v63 = vpop.f32.mrb[29].mxu0 }
 0x1d8   :  { %v7487_v0 = vpop.f32.mrb[29].mxu1  ;;  %v7466_v2 = vadd.f32 %v7465_v63, %v7464_v59  ;;  %v7467_v5 = vpop.f32.mrb[30].mxu0  ;;  %7767 = vmatpush3.bf16.msra.mxu0 %v8489_v7  ;;  %v8527_v63 = vld [vmem:[%s10550_s1 + $0xf70] sm:$0xff]  }
 0x1d9   :  { %v7488_v3 = vadd.f32 %v7487_v0, %v7486_v61  ;;  %v7489_v6 = vpop.f32.mrb[30].mxu1  ;;  %v7468_v10 = vpop.f32.mrb[31].mxu0  ;;  %7789 = vmatpush3.bf16.msra.mxu1 %v8490_v9  ;;  %7768 = vmatprep.subr.bf16.mxu0 %v8491_v12  ;;  %v8528_v0 = vld [vmem:[%s10550_s1 + $0xff0] sm:$0xff]   ;;  %v8533_v5 = vld [vmem:[%s10550_s1 + $0xf38] sm:$0xff]  }
 0x1da   :  { %v5519_v8 = vadd.f32 %v7466_v2, %v10073_v27  ;;  %v7490_v11 = vpop.f32.mrb[31].mxu1  ;;  %7790 = vmatprep.subr.bf16.mxu1 %v8492_v14  ;;  %v8503_v27 = vld [vmem:[%s10550_s1 + $0xf40] sm:$0xff]   ;;  %v8530_v2 = vld [vmem:[%s10550_s1 + $0xfb0] sm:$0xff]   ;;  %v8534_v6 = vld [vmem:[%s10550_s1 + $0xfb8] sm:$0xff]  }
 0x1db   :  { %v51_v7 = vld [vmem:[%s10551_s0 + $0xf0] sm:$0xff]  ;;  %v8540_v14 = vld [vmem:[%s10550_s1 + $0x10c0] sm:$0xff]  }
 0x1dc   :  { %v10178_v13 = vadd.f32 %v7488_v3, %v5519_v8  ;;  %7769 = vmatpush3.bf16.msra.mxu0 %v8493_v15  ;;  %v8531_v3 = vld [vmem:[%s10550_s1 + $0xf78] sm:$0xff]   ;;  %v6543_v9 = vcombine.low %v51_v7, %v51_v7  ;;  %v6544_v10 = vcombine.high %v51_v7, %v51_v7  ;;  %v8541_v15 = vld [vmem:[%s10550_s1 + $0x1000] sm:$0xff]   ;;  %v8583_v7 = vld [vmem:[%s10550_s1 + $0x1150] sm:$0xff]  }
 0x1dd   :  { %7791 = vmatpush3.bf16.msra.mxu1 %v8494_v16  ;;  %7770 = vmatprep.subr.bf16.mxu0 %v8495_v17  ;;  %v52_v8 = vld [vmem:[%s10551_s0 + $0xf8] sm:$0xff]  ;;  %v8542_v16 = vld [vmem:[%s10550_s1 + $0x1080] sm:$0xff]   ;;  %v8543_v17 = vld [vmem:[%s10550_s1 + $0x1048] sm:$0xff]  }
 0x1de   :  { %7792 = vmatprep.subr.bf16.mxu1 %v8496_v18  ;;  %v6545_v11 = vcombine.low %v52_v8, %v52_v8  ;;  %v6546_v12 = vcombine.high %v52_v8, %v52_v8  ;;  %v8544_v18 = vld [vmem:[%s10550_s1 + $0x10c8] sm:$0xff]   ;;  %v8584_v8 = vld [vmem:[%s10550_s1 + $0x11d0] sm:$0xff]  }
 0x1e0   :  { %7771 = vmatpush3.bf16.msra.mxu0 %v8497_v19  ;;  %v8545_v19 = vld [vmem:[%s10550_s1 + $0x1008] sm:$0xff]  }
 0x1e1   :  { %7793 = vmatpush3.bf16.msra.mxu1 %v8498_v20  ;;  %7800 = vmatprep.subr.bf16.mxu0 %v8503_v27  ;;  %v8546_v20 = vld [vmem:[%s10550_s1 + $0x1088] sm:$0xff]   ;;  %v8553_v27 = vld [vmem:[%s10550_s1 + $0x1018] sm:$0xff]  }
 0x1e2   :  { %7822 = vmatprep.subr.bf16.mxu1 %v8504_v28  ;;  %v8554_v28 = vld [vmem:[%s10550_s1 + $0x1098] sm:$0xff]  }
 0x1e3   :  { %6077 = vmatmul.mubr.bf16.vlgmr.msra.gmra.mrb[56].mxu0 %v6539_v23  ;;  %v8549_v23 = vld [vmem:[%s10550_s1 + $0x1010] sm:$0xff]  }
 0x1e4   :  { %6117 = vmatmul.mubr.bf16.vlgmr.msra.gmra.mrb[56].mxu1 %v6541_v25  ;;  %7801 = vmatpush3.bf16.msra.mxu0 %v8505_v29  ;;  %v8551_v25 = vld [vmem:[%s10550_s1 + $0x1058] sm:$0xff]   ;;  %v8555_v29 = vld [vmem:[%s10550_s1 + $0x1060] sm:$0xff]  }
 0x1e5   :  { %7823 = vmatpush3.bf16.msra.mxu1 %v8506_v30  ;;  %7802 = vmatprep.subr.bf16.mxu0 %v8507_v31  ;;  %v8556_v30 = vld [vmem:[%s10550_s1 + $0x10e0] sm:$0xff]  }
 0x1e6   :  { %7824 = vmatprep.subr.bf16.mxu1 %v8508_v32  ;;  %6156 = vmatprep.mubr.bf16.mxu0 %v6544_v10  ;;  %v8557_v31 = vld [vmem:[%s10550_s1 + $0x1020] sm:$0xff]   ;;  %v8586_v10 = vld [vmem:[%s10550_s1 + $0x1190] sm:$0xff]  }
 0x1e7   :  { %6196 = vmatprep.mubr.bf16.mxu1 %v6546_v12  ;;  %v8588_v12 = vld [vmem:[%s10550_s1 + $0x11d8] sm:$0xff]  }
 0x1e8   :  { %7803 = vmatpush3.bf16.msra.mxu0 %v8509_v33  ;;  %v8558_v33 = vld [vmem:[%s10550_s1 + $0x10a0] sm:$0xff]  }
 0x1e9   :  { %7825 = vmatpush3.bf16.msra.mxu1 %v8510_v34  ;;  %7804 = vmatprep.subr.bf16.mxu0 %v8511_v35 }
 0x1ea   :  { %7826 = vmatprep.subr.bf16.mxu1 %v8512_v36 }
 0x1ec   :  { %7805 = vmatpush3.bf16.msra.mxu0 %v8513_v37 }
 0x1ed   :  { %7827 = vmatpush3.bf16.msra.mxu1 %v8514_v38  ;;  %7806 = vmatprep.subr.bf16.mxu0 %v8515_v39  ;;  %v8559_v39 = vld [vmem:[%s10550_s1 + $0x1068] sm:$0xff]  }
 0x1ee   :  { %7828 = vmatprep.subr.bf16.mxu1 %v8516_v40 }
 0x1f0   :  { %7807 = vmatpush3.bf16.msra.mxu0 %v8517_v41  ;;  %v8560_v41 = vld [vmem:[%s10550_s1 + $0x10e8] sm:$0xff]  }
 0x1f1   :  { %7829 = vmatpush3.bf16.msra.mxu1 %v8518_v42  ;;  %7808 = vmatprep.subr.bf16.mxu0 %v8519_v43 }
 0x1f2   :  { %7830 = vmatprep.subr.bf16.mxu1 %v8520_v44  ;;  %v8561_v44 = vld [vmem:[%s10550_s1 + $0x1028] sm:$0xff]  }
 0x1f4   :  { %7809 = vmatpush3.bf16.msra.mxu0 %v8521_v45 }
 0x1f5   :  { %7831 = vmatpush3.bf16.msra.mxu1 %v8522_v47  ;;  %7810 = vmatprep.subr.bf16.mxu0 %v8523_v53  ;;  %v8567_v53 = vld [vmem:[%s10550_s1 + $0x1078] sm:$0xff]  }
 0x1f6   :  { %v7508_v46 = vpop.f32.mrb[32].mxu0  ;;  %7832 = vmatprep.subr.bf16.mxu1 %v8524_v55  ;;  %v8569_v55 = vld [vmem:[%s10550_s1 + $0x1038] sm:$0xff]  }
 0x1f7   :  { %v7530_v48 = vpop.f32.mrb[32].mxu1  ;;  %v7509_v49 = vpop.f32.mrb[33].mxu0 }
 0x1f8   :  { %v7531_v50 = vpop.f32.mrb[33].mxu1  ;;  %v7510_v51 = vadd.f32 %v7509_v49, %v7508_v46  ;;  %v7511_v54 = vpop.f32.mrb[34].mxu0  ;;  %7811 = vmatpush3.bf16.msra.mxu0 %v8525_v58  ;;  %v8562_v46 = vld [vmem:[%s10550_s1 + $0x10a8] sm:$0xff]   ;;  %v8563_v49 = vld [vmem:[%s10550_s1 + $0x1070] sm:$0xff]  }
 0x1f9   :  { %v7532_v52 = vadd.f32 %v7531_v50, %v7530_v48  ;;  %v7533_v56 = vpop.f32.mrb[34].mxu1  ;;  %v7512_v59 = vpop.f32.mrb[35].mxu0  ;;  %7833 = vmatpush3.bf16.msra.mxu1 %v8526_v60  ;;  %7812 = vmatprep.subr.bf16.mxu0 %v8527_v63  ;;  %v8564_v50 = vld [vmem:[%s10550_s1 + $0x10f0] sm:$0xff]   ;;  %v8568_v54 = vld [vmem:[%s10550_s1 + $0x10f8] sm:$0xff]   ;;  %v54_v58 = vld [vmem:[%s10551_s0 + $0x108] sm:$0xff] }
 0x1fa   :  { %v5599_v57 = vadd.f32 %v7510_v51, %v10178_v13  ;;  %v7534_v61 = vpop.f32.mrb[35].mxu1  ;;  %7834 = vmatprep.subr.bf16.mxu1 %v8528_v0  ;;  %v8539_v13 = vld [vmem:[%s10550_s1 + $0x1040] sm:$0xff]   ;;  %v8565_v51 = vld [vmem:[%s10550_s1 + $0x1030] sm:$0xff]   ;;  %v8570_v56 = vld [vmem:[%s10550_s1 + $0x10b8] sm:$0xff]  }
 0x1fb   :  { %v6549_v61 = vcombine.low %v54_v58, %v54_v58  ;;  %v8575_v63 = vld [vmem:[%s10550_s1 + $0x1140] sm:$0xff]  }
 0x1fc   :  { %v10280_v62 = vadd.f32 %v7532_v52, %v5599_v57  ;;  %7813 = vmatpush3.bf16.msra.mxu0 %v8529_v1  ;;  %v8566_v52 = vld [vmem:[%s10550_s1 + $0x10b0] sm:$0xff]   ;;  %v53_v57 = vld [vmem:[%s10551_s0 + $0x100] sm:$0xff] }
 0x1fd   :  { %7835 = vmatpush3.bf16.msra.mxu1 %v8530_v2  ;;  %7814 = vmatprep.subr.bf16.mxu0 %v8531_v3  ;;  %v6547_v59 = vcombine.low %v53_v57, %v53_v57  ;;  %v6548_v60 = vcombine.high %v53_v57, %v53_v57  ;;  %v8576_v0 = vld [vmem:[%s10550_s1 + $0x11c0] sm:$0xff]   ;;  %v8579_v3 = vld [vmem:[%s10550_s1 + $0x1148] sm:$0xff]  }
 0x1fe   :  { %7836 = vmatprep.subr.bf16.mxu1 %v8532_v4  ;;  %v8577_v1 = vld [vmem:[%s10550_s1 + $0x1100] sm:$0xff]   ;;  %v8580_v4 = vld [vmem:[%s10550_s1 + $0x11c8] sm:$0xff]  }
 0x1ff   :  { %v8578_v2 = vld [vmem:[%s10550_s1 + $0x1180] sm:$0xff]  }
 0x200   :  { %7815 = vmatpush3.bf16.msra.mxu0 %v8533_v5  ;;  %v8581_v5 = vld [vmem:[%s10550_s1 + $0x1108] sm:$0xff]  }
 0x201   :  { %7837 = vmatpush3.bf16.msra.mxu1 %v8534_v6  ;;  %7844 = vmatprep.subr.bf16.mxu0 %v8539_v13  ;;  %v8582_v6 = vld [vmem:[%s10550_s1 + $0x1188] sm:$0xff]   ;;  %v8589_v13 = vld [vmem:[%s10550_s1 + $0x1118] sm:$0xff]  }
 0x202   :  { %7866 = vmatprep.subr.bf16.mxu1 %v8540_v14  ;;  %v8590_v14 = vld [vmem:[%s10550_s1 + $0x1198] sm:$0xff]  }
 0x203   :  { %6157 = vmatmul.mubr.bf16.vlgmr.msra.gmra.mrb[60].mxu0 %v6543_v9  ;;  %v8585_v9 = vld [vmem:[%s10550_s1 + $0x1110] sm:$0xff]  }
 0x204   :  { %6197 = vmatmul.mubr.bf16.vlgmr.msra.gmra.mrb[60].mxu1 %v6545_v11  ;;  %7845 = vmatpush3.bf16.msra.mxu0 %v8541_v15  ;;  %v8587_v11 = vld [vmem:[%s10550_s1 + $0x1158] sm:$0xff]   ;;  %v8591_v15 = vld [vmem:[%s10550_s1 + $0x1160] sm:$0xff]  }
 0x205   :  { %7867 = vmatpush3.bf16.msra.mxu1 %v8542_v16  ;;  %7846 = vmatprep.subr.bf16.mxu0 %v8543_v17  ;;  %v8592_v16 = vld [vmem:[%s10550_s1 + $0x11e0] sm:$0xff]  }
 0x206   :  { %7868 = vmatprep.subr.bf16.mxu1 %v8544_v18  ;;  %6236 = vmatprep.mubr.bf16.mxu0 %v6548_v60  ;;  %v8593_v17 = vld [vmem:[%s10550_s1 + $0x1120] sm:$0xff]  }
 0x208   :  { %7847 = vmatpush3.bf16.msra.mxu0 %v8545_v19  ;;  %v8594_v19 = vld [vmem:[%s10550_s1 + $0x11a0] sm:$0xff]  }
 0x209   :  { %7869 = vmatpush3.bf16.msra.mxu1 %v8546_v20  ;;  %7848 = vmatprep.subr.bf16.mxu0 %v8547_v21 }
 0x20a   :  { %7870 = vmatprep.subr.bf16.mxu1 %v8548_v22 }
 0x20c   :  { %7849 = vmatpush3.bf16.msra.mxu0 %v8549_v23 }
 0x20d   :  { %7871 = vmatpush3.bf16.msra.mxu1 %v8550_v24  ;;  %7850 = vmatprep.subr.bf16.mxu0 %v8551_v25  ;;  %v8595_v25 = vld [vmem:[%s10550_s1 + $0x1168] sm:$0xff]  }
 0x20e   :  { %7872 = vmatprep.subr.bf16.mxu1 %v8552_v26 }
 0x210   :  { %7851 = vmatpush3.bf16.msra.mxu0 %v8553_v27  ;;  %v8596_v27 = vld [vmem:[%s10550_s1 + $0x11e8] sm:$0xff]  }
 0x211   :  { %7873 = vmatpush3.bf16.msra.mxu1 %v8554_v28  ;;  %7852 = vmatprep.subr.bf16.mxu0 %v8555_v29 }
 0x212   :  { %7874 = vmatprep.subr.bf16.mxu1 %v8556_v30  ;;  %v8597_v30 = vld [vmem:[%s10550_s1 + $0x1128] sm:$0xff]  }
 0x214   :  { %7853 = vmatpush3.bf16.msra.mxu0 %v8557_v31 }
 0x215   :  { %7875 = vmatpush3.bf16.msra.mxu1 %v8558_v33  ;;  %7854 = vmatprep.subr.bf16.mxu0 %v8559_v39  ;;  %v8603_v39 = vld [vmem:[%s10550_s1 + $0x1178] sm:$0xff]  }
 0x216   :  { %v7552_v32 = vpop.f32.mrb[36].mxu0  ;;  %7876 = vmatprep.subr.bf16.mxu1 %v8560_v41  ;;  %v8605_v41 = vld [vmem:[%s10550_s1 + $0x1138] sm:$0xff]  }
 0x217   :  { %v7574_v34 = vpop.f32.mrb[36].mxu1  ;;  %v7553_v35 = vpop.f32.mrb[37].mxu0 }
 0x218   :  { %v7575_v36 = vpop.f32.mrb[37].mxu1  ;;  %v7554_v37 = vadd.f32 %v7553_v35, %v7552_v32  ;;  %v7555_v40 = vpop.f32.mrb[38].mxu0  ;;  %7855 = vmatpush3.bf16.msra.mxu0 %v8561_v44  ;;  %v8598_v32 = vld [vmem:[%s10550_s1 + $0x11a8] sm:$0xff]   ;;  %v8599_v35 = vld [vmem:[%s10550_s1 + $0x1170] sm:$0xff]   ;;  %v56_v44 = vld [vmem:[%s10551_s0 + $0x118] sm:$0xff] }
 0x219   :  { %v7576_v38 = vadd.f32 %v7575_v36, %v7574_v34  ;;  %v7577_v42 = vpop.f32.mrb[38].mxu1  ;;  %v7556_v45 = vpop.f32.mrb[39].mxu0  ;;  %7877 = vmatpush3.bf16.msra.mxu1 %v8562_v46  ;;  %7856 = vmatprep.subr.bf16.mxu0 %v8563_v49  ;;  %v8600_v36 = vld [vmem:[%s10550_s1 + $0x11f0] sm:$0xff]   ;;  %v8604_v40 = vld [vmem:[%s10550_s1 + $0x11f8] sm:$0xff]  }
 0x21a   :  { %v5679_v43 = vadd.f32 %v7554_v37, %v10280_v62  ;;  %v7578_v47 = vpop.f32.mrb[39].mxu1  ;;  %7878 = vmatprep.subr.bf16.mxu1 %v8564_v50  ;;  %v6550_v62 = vcombine.high %v54_v58, %v54_v58  ;;  %v8601_v37 = vld [vmem:[%s10550_s1 + $0x1130] sm:$0xff]   ;;  %v8606_v42 = vld [vmem:[%s10550_s1 + $0x11b8] sm:$0xff]  }
 0x21b   :  { %v6553_v47 = vcombine.low %v56_v44, %v56_v44 }
 0x21c   :  { %v10385_v48 = vadd.f32 %v7576_v38, %v5679_v43  ;;  %7857 = vmatpush3.bf16.msra.mxu0 %v8565_v51  ;;  %6276 = vmatprep.mubr.bf16.mxu1 %v6550_v62  ;;  %v8602_v38 = vld [vmem:[%s10550_s1 + $0x11b0] sm:$0xff]  }
 0x21d   :  { %7879 = vmatpush3.bf16.msra.mxu1 %v8566_v52  ;;  %7858 = vmatprep.subr.bf16.mxu0 %v8567_v53  ;;  %v55_v43 = vld [vmem:[%s10551_s0 + $0x110] sm:$0xff] }
 0x21e   :  { %7880 = vmatprep.subr.bf16.mxu1 %v8568_v54  ;;  %v6551_v45 = vcombine.low %v55_v43, %v55_v43  ;;  %v6552_v46 = vcombine.high %v55_v43, %v55_v43 }
 0x220   :  { %7859 = vmatpush3.bf16.msra.mxu0 %v8569_v55 }
 0x221   :  { %7881 = vmatpush3.bf16.msra.mxu1 %v8570_v56  ;;  %7888 = vmatprep.subr.bf16.mxu0 %v8575_v63 }
 0x222   :  { %7910 = vmatprep.subr.bf16.mxu1 %v8576_v0 }
 0x223   :  { %6237 = vmatmul.mubr.bf16.vlgmr.msra.gmra.mrb[64].mxu0 %v6547_v59 }
 0x224   :  { %6277 = vmatmul.mubr.bf16.vlgmr.msra.gmra.mrb[64].mxu1 %v6549_v61  ;;  %7889 = vmatpush3.bf16.msra.mxu0 %v8577_v1 }
 0x225   :  { %7911 = vmatpush3.bf16.msra.mxu1 %v8578_v2  ;;  %7890 = vmatprep.subr.bf16.mxu0 %v8579_v3 }
 0x226   :  { %7912 = vmatprep.subr.bf16.mxu1 %v8580_v4  ;;  %6316 = vmatprep.mubr.bf16.mxu0 %v6552_v46 }
 0x228   :  { %7891 = vmatpush3.bf16.msra.mxu0 %v8581_v5 }
 0x229   :  { %7913 = vmatpush3.bf16.msra.mxu1 %v8582_v6  ;;  %7892 = vmatprep.subr.bf16.mxu0 %v8583_v7 }
 0x22a   :  { %7914 = vmatprep.subr.bf16.mxu1 %v8584_v8 }
 0x22c   :  { %7893 = vmatpush3.bf16.msra.mxu0 %v8585_v9  ;;  %v8619_v9 = vmov 0.0  }
 0x22d   :  { %7915 = vmatpush3.bf16.msra.mxu1 %v8586_v10  ;;  %7894 = vmatprep.subr.bf16.mxu0 %v8587_v11  ;;  %v8611_v10 = vld [vmem:[%s10553_s3] sm:$0xff]   ;;  %v8612_v11 = vld [vmem:[%s10553_s3 + $0x8] sm:$0xff]  }
 0x22e   :  { %7916 = vmatprep.subr.bf16.mxu1 %v8588_v12  ;;  %v8613_v12 = vld [vmem:[%s10553_s3 + $0x10] sm:$0xff]  }
 0x230   :  { %7895 = vmatpush3.bf16.msra.mxu0 %v8589_v13  ;;  %v8614_v13 = vld [vmem:[%s10553_s3 + $0x18] sm:$0xff]  }
 0x231   :  { %7917 = vmatpush3.bf16.msra.mxu1 %v8590_v14  ;;  %7896 = vmatprep.subr.bf16.mxu0 %v8591_v15  ;;  %v8615_v14 = vld [vmem:[%s10553_s3 + $0x20] sm:$0xff]  }
 0x232   :  { %7918 = vmatprep.subr.bf16.mxu1 %v8592_v16 }
 0x234   :  { %7897 = vmatpush3.bf16.msra.mxu0 %v8593_v17 }
 0x235   :  { %7919 = vmatpush3.bf16.msra.mxu1 %v8594_v19  ;;  %7898 = vmatprep.subr.bf16.mxu0 %v8595_v25  ;;  %v8616_v25 = vld [vmem:[%s10553_s3 + $0x28] sm:$0xff]  }
 0x236   :  { %v7596_v18 = vpop.f32.mrb[40].mxu0  ;;  %7920 = vmatprep.subr.bf16.mxu1 %v8596_v27 }
 0x237   :  { %v7618_v20 = vpop.f32.mrb[40].mxu1  ;;  %v7597_v21 = vpop.f32.mrb[41].mxu0 }
 0x238   :  { %v7619_v22 = vpop.f32.mrb[41].mxu1  ;;  %v7598_v23 = vadd.f32 %v7597_v21, %v7596_v18  ;;  %v7599_v26 = vpop.f32.mrb[42].mxu0  ;;  %7899 = vmatpush3.bf16.msra.mxu0 %v8597_v30 }
 0x239   :  { %v7620_v24 = vadd.f32 %v7619_v22, %v7618_v20  ;;  %v7621_v28 = vpop.f32.mrb[42].mxu1  ;;  %v7600_v31 = vpop.f32.mrb[43].mxu0  ;;  %7921 = vmatpush3.bf16.msra.mxu1 %v8598_v32  ;;  %7900 = vmatprep.subr.bf16.mxu0 %v8599_v35 }
 0x23a   :  { %v5759_v29 = vadd.f32 %v7598_v23, %v10385_v48  ;;  %v7622_v33 = vpop.f32.mrb[43].mxu1  ;;  %7922 = vmatprep.subr.bf16.mxu1 %v8600_v36  ;;  %v6554_v48 = vcombine.high %v56_v44, %v56_v44  ;;  %v8617_v28 = vld [vmem:[%s10553_s3 + $0x30] sm:$0xff]  }
 0x23c   :  { %v5799_v34 = vadd.f32 %v7620_v24, %v5759_v29  ;;  %7901 = vmatpush3.bf16.msra.mxu0 %v8601_v37  ;;  %6356 = vmatprep.mubr.bf16.mxu1 %v6554_v48  ;;  %v8618_v29 = vld [vmem:[%s10553_s3 + $0x38] sm:$0xff]  }
 0x23d   :  { %7923 = vmatpush3.bf16.msra.mxu1 %v8602_v38  ;;  %7902 = vmatprep.subr.bf16.mxu0 %v8603_v39 }
 0x23e   :  { %7924 = vmatprep.subr.bf16.mxu1 %v8604_v40 }
 0x240   :  { %7903 = vmatpush3.bf16.msra.mxu0 %v8605_v41 }
 0x241   :  { %7925 = vmatpush3.bf16.msra.mxu1 %v8606_v42  ;;  %7941 = vmatprep.subr.bf16.mxu0 %v8619_v9 }
 0x243   :  { %6317 = vmatmul.mubr.bf16.vlgmr.msra.gmra.mrb[68].mxu0 %v6551_v45 }
 0x244   :  { %6357 = vmatmul.mubr.bf16.vlgmr.msra.gmra.mrb[68].mxu1 %v6553_v47  ;;  %7942 = vmatpush3.bf16.msra.mxu0 %v8611_v10 }
 0x245   :  { %7943 = vmatprep.subr.bf16.mxu0 %v8619_v9  ;;  %7957 = vmatprep.mubr.msk.bf16.mxu0 %vm8620_vm0, %v8619_v9 }
 0x248   :  { %7944 = vmatpush3.bf16.msra.mxu0 %v8612_v11 }
 0x249   :  { %7945 = vmatprep.subr.bf16.mxu0 %v8619_v9 }
 0x24c   :  { %7946 = vmatpush3.bf16.msra.mxu0 %v8613_v12 }
 0x24d   :  { %7947 = vmatprep.subr.bf16.mxu0 %v8619_v9 }
 0x250   :  { %7948 = vmatpush3.bf16.msra.mxu0 %v8614_v13 }
 0x251   :  { %7949 = vmatprep.subr.bf16.mxu0 %v8619_v9 }
 0x254   :  { %7950 = vmatpush3.bf16.msra.mxu0 %v8615_v14 }
 0x255   :  { %7951 = vmatprep.subr.bf16.mxu0 %v8619_v9 }
 0x256   :  { %v7640_v49 = vpop.f32.mrb[44].mxu0 }
 0x257   :  { %v7662_v50 = vpop.f32.mrb[44].mxu1  ;;  %v7641_v51 = vpop.f32.mrb[45].mxu0 }
 0x258   :  { %v7642_v52 = vadd.f32 %v7641_v51, %v7640_v49  ;;  %v7663_v53 = vpop.f32.mrb[45].mxu1  ;;  %v7643_v54 = vpop.f32.mrb[46].mxu0  ;;  %7952 = vmatpush3.bf16.msra.mxu0 %v8616_v25 }
 0x259   :  { %v7664_v55 = vadd.f32 %v7663_v53, %v7662_v50  ;;  %v7665_v56 = vpop.f32.mrb[46].mxu1  ;;  %v7644_v57 = vpop.f32.mrb[47].mxu0  ;;  %7953 = vmatprep.subr.bf16.mxu0 %v8619_v9 }
 0x25a   :  { %v5839_v58 = vadd.f32 %v7642_v52, %v5799_v34  ;;  %v7666_v59 = vpop.f32.mrb[47].mxu1 }
 0x25c   :  { %v5879_v60 = vadd.f32 %v7664_v55, %v5839_v58  ;;  %7954 = vmatpush3.bf16.msra.mxu0 %v8617_v28 }
 0x25d   :  { %7955 = vmatprep.subr.bf16.mxu0 %v8619_v9 }
 0x260   :  { %7956 = vmatpush3.bf16.msra.mxu0 %v8618_v29 }
 0x276   :  { %v7684_v61 = vpop.f32.mrb[48].mxu0 }
 0x277   :  { %v7706_v62 = vpop.f32.mrb[48].mxu1  ;;  %v7685_v63 = vpop.f32.mrb[49].mxu0 }
 0x278   :  { %v7686_v0 = vadd.f32 %v7685_v63, %v7684_v61  ;;  %v7707_v1 = vpop.f32.mrb[49].mxu1  ;;  %v7687_v2 = vpop.f32.mrb[50].mxu0 }
 0x279   :  { %v7708_v3 = vadd.f32 %v7707_v1, %v7706_v62  ;;  %v7709_v4 = vpop.f32.mrb[50].mxu1  ;;  %v7688_v5 = vpop.f32.mrb[51].mxu0 }
 0x27a   :  { %v5919_v6 = vadd.f32 %v7686_v0, %v5879_v60  ;;  %v7710_v7 = vpop.f32.mrb[51].mxu1 }
 0x27c   :  { %v5959_v8 = vadd.f32 %v7708_v3, %v5919_v6 }
 0x296   :  { %v7728_v15 = vpop.f32.mrb[52].mxu0 }
 0x297   :  { %v7750_v16 = vpop.f32.mrb[52].mxu1  ;;  %v7729_v17 = vpop.f32.mrb[53].mxu0 }
 0x298   :  { %v7751_v18 = vpop.f32.mrb[53].mxu1  ;;  %v7730_v19 = vadd.f32 %v7729_v17, %v7728_v15  ;;  %v7731_v21 = vpop.f32.mrb[54].mxu0 }
 0x299   :  { %v7752_v20 = vadd.f32 %v7751_v18, %v7750_v16  ;;  %v7753_v22 = vpop.f32.mrb[54].mxu1  ;;  %v7732_v23 = vpop.f32.mrb[55].mxu0  ;;  %v7131_v16 = vld [vmem:[%s10554_s4] ss:$0 sm:$0xff] }
 0x29a   :  { %v7754_v24 = vpop.f32.mrb[55].mxu1  ;;  %v5999_v26 = vadd.f32 %v7730_v19, %v5959_v8 }
 0x29c   :  { %v6039_v27 = vadd.f32 %v7752_v20, %v5999_v26 }
 0x2b6   :  { %v7772_v30 = vpop.f32.mrb[56].mxu0 }
 0x2b7   :  { %v7794_v31 = vpop.f32.mrb[56].mxu1  ;;  %v7773_v32 = vpop.f32.mrb[57].mxu0 }
 0x2b8   :  { %v7774_v33 = vadd.f32 %v7773_v32, %v7772_v30  ;;  %v7795_v34 = vpop.f32.mrb[57].mxu1  ;;  %v7775_v35 = vpop.f32.mrb[58].mxu0 }
 0x2b9   :  { %v7796_v36 = vadd.f32 %v7795_v34, %v7794_v31  ;;  %v7797_v37 = vpop.f32.mrb[58].mxu1  ;;  %v7776_v38 = vpop.f32.mrb[59].mxu0 }
 0x2ba   :  { %v6079_v39 = vadd.f32 %v7774_v33, %v6039_v27  ;;  %v7798_v40 = vpop.f32.mrb[59].mxu1 }
 0x2bc   :  { %v6119_v41 = vadd.f32 %v7796_v36, %v6079_v39 }
 0x2d6   :  { %v7816_v42 = vpop.f32.mrb[60].mxu0 }
 0x2d7   :  { %v7838_v43 = vpop.f32.mrb[60].mxu1  ;;  %v7817_v44 = vpop.f32.mrb[61].mxu0 }
 0x2d8   :  { %v7818_v45 = vadd.f32 %v7817_v44, %v7816_v42  ;;  %v7839_v46 = vpop.f32.mrb[61].mxu1  ;;  %v7819_v47 = vpop.f32.mrb[62].mxu0 }
 0x2d9   :  { %v7840_v48 = vadd.f32 %v7839_v46, %v7838_v43  ;;  %v7841_v49 = vpop.f32.mrb[62].mxu1  ;;  %v7820_v50 = vpop.f32.mrb[63].mxu0 }
 0x2da   :  { %v6159_v51 = vadd.f32 %v7818_v45, %v6119_v41  ;;  %v7842_v52 = vpop.f32.mrb[63].mxu1 }
 0x2dc   :  { %v6199_v53 = vadd.f32 %v7840_v48, %v6159_v51 }
 0x2f6   :  { %v7860_v54 = vpop.f32.mrb[64].mxu0 }
 0x2f7   :  { %v7882_v55 = vpop.f32.mrb[64].mxu1  ;;  %v7861_v56 = vpop.f32.mrb[65].mxu0 }
 0x2f8   :  { %v7862_v57 = vadd.f32 %v7861_v56, %v7860_v54  ;;  %v7883_v58 = vpop.f32.mrb[65].mxu1  ;;  %v7863_v59 = vpop.f32.mrb[66].mxu0 }
 0x2f9   :  { %v7884_v60 = vadd.f32 %v7883_v58, %v7882_v55  ;;  %v7885_v61 = vpop.f32.mrb[66].mxu1  ;;  %v7864_v62 = vpop.f32.mrb[67].mxu0 }
 0x2fa   :  { %v6239_v63 = vadd.f32 %v7862_v57, %v6199_v53  ;;  %v7886_v0 = vpop.f32.mrb[67].mxu1 }
 0x2fc   :  { %v6279_v1 = vadd.f32 %v7884_v60, %v6239_v63 }
 0x316   :  { %v7904_v2 = vpop.f32.mrb[68].mxu0 }
 0x317   :  { %v7926_v3 = vpop.f32.mrb[68].mxu1  ;;  %v7905_v4 = vpop.f32.mrb[69].mxu0 }
 0x318   :  { %v7906_v5 = vadd.f32 %v7905_v4, %v7904_v2  ;;  %v7927_v6 = vpop.f32.mrb[69].mxu1  ;;  %v7907_v7 = vpop.f32.mrb[70].mxu0 }
 0x319   :  { %v7928_v8 = vadd.f32 %v7927_v6, %v7926_v3  ;;  %v7929_v9 = vpop.f32.mrb[70].mxu1  ;;  %v7908_v10 = vpop.f32.mrb[71].mxu0 }
 0x31a   :  { %v6319_v11 = vadd.f32 %v7906_v5, %v6279_v1  ;;  %v7930_v12 = vpop.f32.mrb[71].mxu1 }
 0x31c   :  { %v6359_v13 = vadd.f32 %v7928_v8, %v6319_v11 }
 0x31e   :  { %v6364_v14 = vmax.f32 %v6359_v13, 0.0 }
 0x320   :  { %v6365_v15 = vpack.c.bf16 %v6364_v14, %v6364_v14 }
 0x322   :  { %7958 = vmatmul.mubr.bf16.vlgmr.msra.gmra.mrb[72].mxu0 %v6365_v15 }
 0x3f5   :  { %v6471_v17 = vpop.f32.mrb[72].mxu0 }
 0x3f6   :  { %v6472_v18 = vadd.f32 %v7131_v16, %v6471_v17  ;;  %v7959_v19 = vpop.f32.mrb[73].mxu0 }
 0x3f7   :  { %v6474_v20 = vpop.f32.mrb[74].mxu0 }
 0x3f8   :  { %6477 = vst [vmem:[%s10555_s5] sm:$0xff] %v6472_v18  ;;  %v7960_v21 = vpop.f32.mrb[75].mxu0 }

</bundles_post_ra>
